<compile_context>
chip_gen: v5e
topology: v5e:2x2
jax: 0.10.0
libtpu: 0.0.40
codegen_flags: <defaults>
</compile_context>

<pallas_src>
import jax
import jax.numpy as jnp
import numpy as np
from jax.experimental import pallas as pl
from jax.experimental.pallas import tpu as pltpu

IN_DIM = 7618
H1, H2, H3, OUT = 1024, 256, 32, 2

IN_PAD = 7680        # 7618 padded up to a multiple of 128 (60 * 128)
TN = 512             # layer-1 output-column tile (H1 / TN = 2)
TK_FUSED = 1280      # K tile, fused single-TC path   -> grid (2, 6)
TK_SPLIT = 1920      # K tile, 2-TC two-kernel path   -> grid (2, 4)


def _is_multi_tensorcore():
    """True for devices with >1 TensorCore per device (v7x-class)."""
    try:
        kind = str(getattr(jax.devices()[0], "device_kind", "")).lower()
    except Exception:
        return False
    return "v7" in kind


_SPLIT_PATH = _is_multi_tensorcore()


# ------------------------------------------------------------ fused kernel --
def fused_kernel(x_ref, w1_ref, b1_ref, w2_ref, b2_ref, w3_ref, b3_ref,
                 w4_ref, b4_ref, out_ref, acc_ref, h2_ref):
    """Whole forward pass; grid = (column tile j, K tile k), both arbitrary.

    acc_ref : (b_pad, TN)  f32  layer-1 accumulator for the current j tile
    h2_ref  : (b_pad, H2)  f32  layer-2 accumulator, persists across j tiles
    """
    j = pl.program_id(0)
    k = pl.program_id(1)
    n_j = pl.num_programs(0)
    n_k = pl.num_programs(1)

    @pl.when(k == 0)
    def _():
        # Fold the layer-1 bias into the accumulator init.
        acc_ref[...] = jnp.broadcast_to(b1_ref[...], acc_ref.shape)

    @pl.when((j == 0) & (k == 0))
    def _():
        # Fold the layer-2 bias into its accumulator init.
        h2_ref[...] = jnp.broadcast_to(b2_ref[...], h2_ref.shape)

    # x is fully VMEM-resident as (n_k, b_pad, TK) contiguous chunks.
    acc_ref[...] += jnp.dot(x_ref[k], w1_ref[...],
                            preferred_element_type=jnp.float32)

    @pl.when(k == n_k - 1)
    def _():
        # Finish layer 1 for this column tile and fold it into layer 2.
        h1_tile = jnp.maximum(acc_ref[...], 0.0)
        h2_ref[...] += jnp.dot(h1_tile, w2_ref[...],
                               preferred_element_type=jnp.float32)

    @pl.when((k == n_k - 1) & (j == n_j - 1))
    def _():
        # Tiny tail: ReLU -> Linear(256,32) -> ReLU -> Linear(32,2) -> softmax.
        h2 = jnp.maximum(h2_ref[...], 0.0)
        h3 = jnp.maximum(
            jnp.dot(h2, w3_ref[...],
                    preferred_element_type=jnp.float32) + b3_ref[...], 0.0)
        logits = jnp.dot(h3, w4_ref[...],
                         preferred_element_type=jnp.float32) + b4_ref[...]
        m = jnp.max(logits, axis=1, keepdims=True)
        e = jnp.exp(logits - m)
        out_ref[...] = (e / jnp.sum(e, axis=1, keepdims=True)
                        ).astype(out_ref.dtype)


# -------------------------------------------- split path (multi-TC) kernels --
def layer1_kernel(x_ref, w1_ref, b1_ref, h1_ref, acc_ref):
    """One (column-tile j, K-tile k) step of  h1 = relu(x @ W1 + b1)."""
    k = pl.program_id(1)

    @pl.when(k == 0)
    def _():
        acc_ref[...] = jnp.broadcast_to(b1_ref[...], acc_ref.shape)

    acc_ref[...] += jnp.dot(x_ref[k], w1_ref[...],
                            preferred_element_type=jnp.float32)

    @pl.when(k == pl.num_programs(1) - 1)
    def _():
        h1_ref[...] = jnp.maximum(acc_ref[...], 0.0).astype(h1_ref.dtype)


def tail_kernel(h1_ref, w2_ref, b2_ref, w3_ref, b3_ref, w4_ref, b4_ref,
                out_ref):
    """Linear(1024,256)+ReLU -> Linear(256,32)+ReLU -> Linear(32,2) -> softmax."""
    h2 = jnp.maximum(jnp.dot(h1_ref[...], w2_ref[...],
                             preferred_element_type=jnp.float32) + b2_ref[...],
                     0.0)
    h3 = jnp.maximum(jnp.dot(h2, w3_ref[...],
                             preferred_element_type=jnp.float32) + b3_ref[...],
                     0.0)
    logits = jnp.dot(h3, w4_ref[...],
                     preferred_element_type=jnp.float32) + b4_ref[...]
    m = jnp.max(logits, axis=1, keepdims=True)
    e = jnp.exp(logits - m)
    out_ref[...] = (e / jnp.sum(e, axis=1, keepdims=True)).astype(out_ref.dtype)


# ----------------------------------------------------------------- wrapper --
def prepare_params(params):
    """One-time packing (hoisted out of the hot path): pad+bf16-cast W1;
    keep the small tail weights in f32; reshape biases to 2-D rows."""
    w1, b1, w2, b2, w3, b3, w4, b4 = params
    w1_p = jnp.zeros((IN_PAD, H1), jnp.bfloat16).at[:IN_DIM, :].set(
        w1.astype(jnp.bfloat16))
    return (w1_p,
            b1.reshape(1, H1).astype(jnp.float32),
            w2.astype(jnp.float32),
            b2.reshape(1, H2).astype(jnp.float32),
            w3.astype(jnp.float32),
            b3.reshape(1, H3).astype(jnp.float32),
            w4.astype(jnp.float32),
            b4.reshape(1, OUT).astype(jnp.float32))


def _forward_fused(x_blk, prepped, b_pad):
    """Single fused kernel (single-TensorCore chips: v5e / v6e)."""
    w1_p, b1r, w2, b2r, w3, b3r, w4, b4r = prepped
    n_j = H1 // TN
    n_k = IN_PAD // TK_FUSED
    cost = pl.CostEstimate(
        flops=2 * b_pad * (IN_PAD * H1 + H1 * H2 + H2 * H3 + H3 * OUT),
        transcendentals=b_pad * OUT,
        bytes_accessed=(IN_PAD * H1 * 2            # W1 stream (bf16)
                        + b_pad * IN_PAD * 2        # x (resident, fetched once)
                        + H1 * H2 * 4 + H2 * H3 * 4 + H3 * OUT * 4
                        + (H1 + H2 + H3 + OUT) * 4
                        + b_pad * OUT * 4))
    return pl.pallas_call(
        fused_kernel,
        out_shape=jax.ShapeDtypeStruct((b_pad, OUT), jnp.float32),
        grid_spec=pltpu.PrefetchScalarGridSpec(
            num_scalar_prefetch=0,
            grid=(n_j, n_k),
            in_specs=[
                pl.BlockSpec((n_k, b_pad, TK_FUSED), lambda j, k: (0, 0, 0)),
                pl.BlockSpec((TK_FUSED, TN), lambda j, k: (k, j)),   # W1 tile
                pl.BlockSpec((1, TN),        lambda j, k: (0, j)),   # b1 tile
                pl.BlockSpec((TN, H2),       lambda j, k: (j, 0)),   # W2 rows
                pl.BlockSpec((1, H2),        lambda j, k: (0, 0)),   # b2
                pl.BlockSpec((H2, H3),       lambda j, k: (0, 0)),   # W3
                pl.BlockSpec((1, H3),        lambda j, k: (0, 0)),   # b3
                pl.BlockSpec((H3, OUT),      lambda j, k: (0, 0)),   # W4
                pl.BlockSpec((1, OUT),       lambda j, k: (0, 0)),   # b4
            ],
            out_specs=pl.BlockSpec((b_pad, OUT), lambda j, k: (0, 0)),
            scratch_shapes=[pltpu.VMEM((b_pad, TN), jnp.float32),
                            pltpu.VMEM((b_pad, H2), jnp.float32)],
        ),
        compiler_params=pltpu.CompilerParams(
            dimension_semantics=("arbitrary", "arbitrary")),
        cost_estimate=cost,
    )(x_blk, w1_p, b1r, w2, b2r, w3, b3r, w4, b4r)


def _forward_split(x_blk, prepped, b_pad):
    """Two-kernel path for multi-TensorCore chips (v7x): the 'parallel'
    column axis shards the W1 stream across both cores."""
    w1_p, b1r, w2, b2r, w3, b3r, w4, b4r = prepped
    n_j = H1 // TN
    n_k = IN_PAD // TK_SPLIT

    l1_cost = pl.CostEstimate(
        flops=2 * b_pad * IN_PAD * H1,
        transcendentals=0,
        bytes_accessed=(IN_PAD * H1 * 2 + b_pad * IN_PAD * 2
                        + H1 * 4 + b_pad * H1 * 4))

    h1 = pl.pallas_call(
        layer1_kernel,
        out_shape=jax.ShapeDtypeStruct((b_pad, H1), jnp.float32),
        grid_spec=pltpu.PrefetchScalarGridSpec(
            num_scalar_prefetch=0,
            grid=(n_j, n_k),
            in_specs=[
                pl.BlockSpec((n_k, b_pad, TK_SPLIT), lambda j, k: (0, 0, 0)),
                pl.BlockSpec((TK_SPLIT, TN), lambda j, k: (k, j)),   # W1 tile
                pl.BlockSpec((1, TN),        lambda j, k: (0, j)),   # b1 tile
            ],
            out_specs=pl.BlockSpec((b_pad, TN), lambda j, k: (0, j)),
            scratch_shapes=[pltpu.VMEM((b_pad, TN), jnp.float32)],
        ),
        compiler_params=pltpu.CompilerParams(
            dimension_semantics=("parallel", "arbitrary")),
        cost_estimate=l1_cost,
    )(x_blk, w1_p, b1r)

    out = pl.pallas_call(
        tail_kernel,
        out_shape=jax.ShapeDtypeStruct((b_pad, OUT), jnp.float32),
        grid_spec=pltpu.PrefetchScalarGridSpec(
            num_scalar_prefetch=0,
            grid=(1,),
            in_specs=[
                pl.BlockSpec((b_pad, H1), lambda i: (0, 0)),   # h1 (f32)
                pl.BlockSpec((H1, H2),    lambda i: (0, 0)),   # W2
                pl.BlockSpec((1, H2),     lambda i: (0, 0)),   # b2
                pl.BlockSpec((H2, H3),    lambda i: (0, 0)),   # W3
                pl.BlockSpec((1, H3),     lambda i: (0, 0)),   # b3
                pl.BlockSpec((H3, OUT),   lambda i: (0, 0)),   # W4
                pl.BlockSpec((1, OUT),    lambda i: (0, 0)),   # b4
            ],
            out_specs=pl.BlockSpec((b_pad, OUT), lambda i: (0, 0)),
        ),
        compiler_params=pltpu.CompilerParams(
            dimension_semantics=("arbitrary",)),
    )(h1, w2, b2r, w3, b3r, w4, b4r)
    return out


@jax.jit
def dnn_forward(x, prepped):
    """x: (B, 7618) float32.  Returns softmax probabilities (B, 2) float32."""
    B = x.shape[0]
    b_pad = max(8, ((B + 7) // 8) * 8)   # pad batch to a sublane multiple
    # TODO(synk): for batches >= 128, add an M ("parallel") grid axis instead
    # of padding everything into a single M tile.

    tk = TK_SPLIT if _SPLIT_PATH else TK_FUSED
    n_k = IN_PAD // tk

    x_p = jnp.zeros((b_pad, IN_PAD), jnp.bfloat16)
    x_p = x_p.at[:B, :IN_DIM].set(x.astype(jnp.bfloat16))
    # Pre-chunk x into contiguous (b_pad, tk) K-slices so the kernel keeps the
    # whole thing VMEM-resident and indexes it with x_ref[k] (no per-step DMA).
    x_blk = x_p.reshape(b_pad, n_k, tk).transpose(1, 0, 2)

    if _SPLIT_PATH:
        out = _forward_split(x_blk, prepped, b_pad)
    else:
        out = _forward_fused(x_blk, prepped, b_pad)
    return out[:B]


# -------------------------------------------------------------- test utils --
def init_params(key):
    """Deterministic PyTorch-style Linear init: U(-1/sqrt(fan_in), 1/sqrt(fan_in))."""
    dims = [(IN_DIM, H1), (H1, H2), (H2, H3), (H3, OUT)]
    params = []
    for (fan_in, fan_out) in dims:
        key, kw, kb = jax.random.split(key, 3)
        bound = 1.0 / np.sqrt(fan_in)
        w = jax.random.uniform(kw, (fan_in, fan_out), jnp.float32, -bound, bound)
        b = jax.random.uniform(kb, (fan_out,), jnp.float32, -bound, bound)
        params += [w, b]
    return tuple(params)


def dnn_reference(x, params):
    w1, b1, w2, b2, w3, b3, w4, b4 = params
    h = jnp.maximum(x @ w1 + b1, 0.0)
    h = jnp.maximum(h @ w2 + b2, 0.0)
    h = jnp.maximum(h @ w3 + b3, 0.0)
    logits = h @ w4 + b4
    return jax.nn.softmax(logits, axis=1)


if __name__ == "__main__":
    key = jax.random.PRNGKey(0)
    k_in, k_par = jax.random.split(key)

    batch = 2
    x = jax.random.normal(k_in, (batch, IN_DIM), jnp.float32)
    params = init_params(k_par)
    prepped = prepare_params(params)        # one-time pad + bf16 cast (hoisted)

    out = dnn_forward(x, prepped)
    out = jax.block_until_ready(out)

    ref = dnn_reference(x, params)          # fp32 reference
    # bf16 x / W1 storage -> loosened tolerance vs the fp32 reference.
    np.testing.assert_allclose(np.asarray(out), np.asarray(ref),
                               rtol=2e-2, atol=2e-2)
    np.testing.assert_allclose(np.asarray(out).sum(axis=1), 1.0,
                               rtol=1e-5, atol=1e-5)
    assert out.shape == (batch, 2)
    print("KERNEL_OK")
</pallas_src>

<mosaic_0001>
module attributes {stable_mosaic.version = 11 : i64} {
  func.func @fused_kernel(%arg0: i32, %arg1: i32, %arg2: memref<6x8x1280xbf16, #tpu.memory_space<vmem>>, %arg3: memref<1280x512xbf16, #tpu.memory_space<vmem>>, %arg4: memref<1x512xf32, #tpu.memory_space<vmem>>, %arg5: memref<512x256xf32, #tpu.memory_space<vmem>>, %arg6: memref<1x256xf32, #tpu.memory_space<vmem>>, %arg7: memref<256x32xf32, #tpu.memory_space<vmem>>, %arg8: memref<1x32xf32, #tpu.memory_space<vmem>>, %arg9: memref<32x2xf32, #tpu.memory_space<vmem>>, %arg10: memref<1x2xf32, #tpu.memory_space<vmem>>, %arg11: memref<8x2xf32, #tpu.memory_space<vmem>>, %arg12: memref<8x512xf32, #tpu.memory_space<vmem>>, %arg13: memref<8x256xf32, #tpu.memory_space<vmem>>) attributes {dimension_semantics = [#tpu.dimension_semantics<arbitrary>, #tpu.dimension_semantics<arbitrary>], iteration_bounds = array<i64: 2, 6>, scalar_prefetch = 0 : i64, scratch_operands = 2 : i64, tpu.core_type = #tpu.core_type<tc>, window_params = [{pipeline_mode = #tpu.pipeline_mode<synchronous>, transform_indices = @transform_0, window_bounds = array<i64: 6, 8, 1280>}, {transform_indices = @transform_1, window_bounds = array<i64: 1280, 512>}, {transform_indices = @transform_2, window_bounds = array<i64: 1, 512>}, {transform_indices = @transform_3, window_bounds = array<i64: 512, 256>}, {pipeline_mode = #tpu.pipeline_mode<synchronous>, transform_indices = @transform_4, window_bounds = array<i64: 1, 256>}, {pipeline_mode = #tpu.pipeline_mode<synchronous>, transform_indices = @transform_5, window_bounds = array<i64: 256, 32>}, {pipeline_mode = #tpu.pipeline_mode<synchronous>, transform_indices = @transform_6, window_bounds = array<i64: 1, 32>}, {pipeline_mode = #tpu.pipeline_mode<synchronous>, transform_indices = @transform_7, window_bounds = array<i64: 32, 2>}, {pipeline_mode = #tpu.pipeline_mode<synchronous>, transform_indices = @transform_8, window_bounds = array<i64: 1, 2>}, {pipeline_mode = #tpu.pipeline_mode<synchronous>, transform_indices = @transform_9, window_bounds = array<i64: 8, 2>}]} {
    %c0_i32 = arith.constant 0 : i32
    %0 = arith.cmpi eq, %arg1, %c0_i32 : i32
    %1 = arith.extui %0 : i1 to i32
    %c0_i32_0 = arith.constant 0 : i32
    %2 = arith.cmpi ne, %1, %c0_i32_0 : i32
    scf.if %2 {
      %c0_14 = arith.constant 0 : index
      %c0_15 = arith.constant 0 : index
      %24 = vector.load %arg4[%c0_14, %c0_15] : memref<1x512xf32, #tpu.memory_space<vmem>>, vector<1x512xf32>
      %25 = vector.shape_cast %24 : vector<1x512xf32> to vector<1x512xf32>
      %26 = vector.broadcast %25 : vector<1x512xf32> to vector<8x512xf32>
      %c0_16 = arith.constant 0 : index
      %c0_17 = arith.constant 0 : index
      %27 = vector.load %arg12[%c0_16, %c0_17] : memref<8x512xf32, #tpu.memory_space<vmem>>, vector<8x512xf32>
      tpu.vector_store %arg12[%c0_16, %c0_17], %26 {strides = array<i32>} : memref<8x512xf32, #tpu.memory_space<vmem>>, vector<8x512xf32>,
    } else {
    }
    %c0_i32_1 = arith.constant 0 : i32
    %3 = arith.cmpi eq, %arg0, %c0_i32_1 : i32
    %c0_i32_2 = arith.constant 0 : i32
    %4 = arith.cmpi eq, %arg1, %c0_i32_2 : i32
    %5 = arith.andi %3, %4 : i1
    %6 = arith.extui %5 : i1 to i32
    %c0_i32_3 = arith.constant 0 : i32
    %7 = arith.cmpi ne, %6, %c0_i32_3 : i32
    scf.if %7 {
      %c0_14 = arith.constant 0 : index
      %c0_15 = arith.constant 0 : index
      %24 = vector.load %arg6[%c0_14, %c0_15] : memref<1x256xf32, #tpu.memory_space<vmem>>, vector<1x256xf32>
      %25 = vector.shape_cast %24 : vector<1x256xf32> to vector<1x256xf32>
      %26 = vector.broadcast %25 : vector<1x256xf32> to vector<8x256xf32>
      %c0_16 = arith.constant 0 : index
      %c0_17 = arith.constant 0 : index
      %27 = vector.load %arg13[%c0_16, %c0_17] : memref<8x256xf32, #tpu.memory_space<vmem>>, vector<8x256xf32>
      tpu.vector_store %arg13[%c0_16, %c0_17], %26 {strides = array<i32>} : memref<8x256xf32, #tpu.memory_space<vmem>>, vector<8x256xf32>,
    } else {
    }
    %c0 = arith.constant 0 : index
    %c0_4 = arith.constant 0 : index
    %8 = vector.load %arg12[%c0, %c0_4] : memref<8x512xf32, #tpu.memory_space<vmem>>, vector<8x512xf32>
    %9 = arith.index_cast %arg1 : i32 to index
    %c0_5 = arith.constant 0 : index
    %c0_6 = arith.constant 0 : index
    %10 = vector.load %arg2[%9, %c0_5, %c0_6] : memref<6x8x1280xbf16, #tpu.memory_space<vmem>>, vector<1x8x1280xbf16>
    %11 = vector.shape_cast %10 : vector<1x8x1280xbf16> to vector<8x1280xbf16>
    %c0_7 = arith.constant 0 : index
    %c0_8 = arith.constant 0 : index
    %12 = vector.load %arg3[%c0_7, %c0_8] : memref<1280x512xbf16, #tpu.memory_space<vmem>>, vector<1280x512xbf16>
    %cst = arith.constant dense<0.000000e+00> : vector<8x512xf32>
    %13 = tpu.matmul %11, %12, %cst {dimension_numbers = #tpu.dot_dimension_numbers<[1], [0], [0], [1], [0, 0, 1, 1], [], []>} : vector<8x1280xbf16>, vector<1280x512xbf16>, vector<8x512xf32> -> vector<8x512xf32>
    %14 = arith.addf %8, %13 : vector<8x512xf32>
    %c0_9 = arith.constant 0 : index
    %c0_10 = arith.constant 0 : index
    %15 = vector.load %arg12[%c0_9, %c0_10] : memref<8x512xf32, #tpu.memory_space<vmem>>, vector<8x512xf32>
    tpu.vector_store %arg12[%c0_9, %c0_10], %14 {strides = array<i32>} : memref<8x512xf32, #tpu.memory_space<vmem>>, vector<8x512xf32>,
    %c5_i32 = arith.constant 5 : i32
    %16 = arith.cmpi eq, %arg1, %c5_i32 : i32
    %17 = arith.extui %16 : i1 to i32
    %c0_i32_11 = arith.constant 0 : i32
    %18 = arith.cmpi ne, %17, %c0_i32_11 : i32
    scf.if %18 {
      %c0_14 = arith.constant 0 : index
      %c0_15 = arith.constant 0 : index
      %24 = vector.load %arg12[%c0_14, %c0_15] : memref<8x512xf32, #tpu.memory_space<vmem>>, vector<8x512xf32>
      %cst_16 = arith.constant 0.000000e+00 : f32
      %25 = vector.broadcast %cst_16 : f32 to vector<8x512xf32>
      %26 = arith.maximumf %24, %25 : vector<8x512xf32>
      %c0_17 = arith.constant 0 : index
      %c0_18 = arith.constant 0 : index
      %27 = vector.load %arg13[%c0_17, %c0_18] : memref<8x256xf32, #tpu.memory_space<vmem>>, vector<8x256xf32>
      %c0_19 = arith.constant 0 : index
      %c0_20 = arith.constant 0 : index
      %28 = vector.load %arg5[%c0_19, %c0_20] : memref<512x256xf32, #tpu.memory_space<vmem>>, vector<512x256xf32>
      %cst_21 = arith.constant dense<0.000000e+00> : vector<8x256xf32>
      %29 = tpu.matmul %26, %28, %cst_21 {dimension_numbers = #tpu.dot_dimension_numbers<[1], [0], [0], [1], [0, 0, 1, 1], [], []>} : vector<8x512xf32>, vector<512x256xf32>, vector<8x256xf32> -> vector<8x256xf32>
      %30 = arith.addf %27, %29 : vector<8x256xf32>
      %c0_22 = arith.constant 0 : index
      %c0_23 = arith.constant 0 : index
      %31 = vector.load %arg13[%c0_22, %c0_23] : memref<8x256xf32, #tpu.memory_space<vmem>>, vector<8x256xf32>
      tpu.vector_store %arg13[%c0_22, %c0_23], %30 {strides = array<i32>} : memref<8x256xf32, #tpu.memory_space<vmem>>, vector<8x256xf32>,
    } else {
    }
    %c5_i32_12 = arith.constant 5 : i32
    %19 = arith.cmpi eq, %arg1, %c5_i32_12 : i32
    %c1_i32 = arith.constant 1 : i32
    %20 = arith.cmpi eq, %arg0, %c1_i32 : i32
    %21 = arith.andi %19, %20 : i1
    %22 = arith.extui %21 : i1 to i32
    %c0_i32_13 = arith.constant 0 : i32
    %23 = arith.cmpi ne, %22, %c0_i32_13 : i32
    scf.if %23 {
      %c0_14 = arith.constant 0 : index
      %c0_15 = arith.constant 0 : index
      %24 = vector.load %arg13[%c0_14, %c0_15] : memref<8x256xf32, #tpu.memory_space<vmem>>, vector<8x256xf32>
      %cst_16 = arith.constant 0.000000e+00 : f32
      %25 = vector.broadcast %cst_16 : f32 to vector<8x256xf32>
      %26 = arith.maximumf %24, %25 : vector<8x256xf32>
      %c0_17 = arith.constant 0 : index
      %c0_18 = arith.constant 0 : index
      %27 = vector.load %arg7[%c0_17, %c0_18] : memref<256x32xf32, #tpu.memory_space<vmem>>, vector<256x32xf32>
      %cst_19 = arith.constant dense<0.000000e+00> : vector<8x32xf32>
      %28 = tpu.matmul %26, %27, %cst_19 {dimension_numbers = #tpu.dot_dimension_numbers<[1], [0], [0], [1], [0, 0, 1, 1], [], []>} : vector<8x256xf32>, vector<256x32xf32>, vector<8x32xf32> -> vector<8x32xf32>
      %c0_20 = arith.constant 0 : index
      %c0_21 = arith.constant 0 : index
      %29 = vector.load %arg8[%c0_20, %c0_21] : memref<1x32xf32, #tpu.memory_space<vmem>>, vector<1x32xf32>
      %30 = vector.broadcast %29 : vector<1x32xf32> to vector<8x32xf32>
      %31 = arith.addf %28, %30 : vector<8x32xf32>
      %cst_22 = arith.constant 0.000000e+00 : f32
      %32 = vector.broadcast %cst_22 : f32 to vector<8x32xf32>
      %33 = arith.maximumf %31, %32 : vector<8x32xf32>
      %c0_23 = arith.constant 0 : index
      %c0_24 = arith.constant 0 : index
      %34 = vector.load %arg9[%c0_23, %c0_24] : memref<32x2xf32, #tpu.memory_space<vmem>>, vector<32x2xf32>
      %cst_25 = arith.constant dense<0.000000e+00> : vector<8x2xf32>
      %35 = tpu.matmul %33, %34, %cst_25 {dimension_numbers = #tpu.dot_dimension_numbers<[1], [0], [0], [1], [0, 0, 1, 1], [], []>} : vector<8x32xf32>, vector<32x2xf32>, vector<8x2xf32> -> vector<8x2xf32>
      %c0_26 = arith.constant 0 : index
      %c0_27 = arith.constant 0 : index
      %36 = vector.load %arg10[%c0_26, %c0_27] : memref<1x2xf32, #tpu.memory_space<vmem>>, vector<1x2xf32>
      %37 = vector.broadcast %36 : vector<1x2xf32> to vector<8x2xf32>
      %38 = arith.addf %35, %37 : vector<8x2xf32>
      %cst_28 = arith.constant dense<0xFF800000> : vector<8xf32>
      %39 = vector.multi_reduction <maximumf>, %38, %cst_28 [1] : vector<8x2xf32> to vector<8xf32>
      %40 = vector.shape_cast %39 : vector<8xf32> to vector<8x1xf32>
      %41 = vector.broadcast %40 : vector<8x1xf32> to vector<8x2xf32>
      %42 = arith.subf %38, %41 : vector<8x2xf32>
      %43 = math.exp %42 : vector<8x2xf32>
      %cst_29 = arith.constant dense<0.000000e+00> : vector<8xf32>
      %44 = vector.multi_reduction <add>, %43, %cst_29 [1] : vector<8x2xf32> to vector<8xf32>
      %45 = vector.shape_cast %44 : vector<8xf32> to vector<8x1xf32>
      %46 = vector.broadcast %45 : vector<8x1xf32> to vector<8x2xf32>
      %47 = arith.divf %43, %46 : vector<8x2xf32>
      %c0_30 = arith.constant 0 : index
      %c0_31 = arith.constant 0 : index
      %48 = vector.load %arg11[%c0_30, %c0_31] : memref<8x2xf32, #tpu.memory_space<vmem>>, vector<8x2xf32>
      tpu.vector_store %arg11[%c0_30, %c0_31], %47 {strides = array<i32>} : memref<8x2xf32, #tpu.memory_space<vmem>>, vector<8x2xf32>,
    } else {
    }
    return
  }
  func.func @transform_0(%arg0: i32, %arg1: i32) -> (i32, i32, i32) {
    %c0_i32 = arith.constant 0 : i32
    %c0_i32_0 = arith.constant 0 : i32
    %c0_i32_1 = arith.constant 0 : i32
    %c0_i32_2 = arith.constant 0 : i32
    return %c0_i32, %c0_i32_0, %c0_i32_1 : i32, i32, i32
  }
  func.func @transform_1(%arg0: i32, %arg1: i32) -> (i32, i32) {
    %c0_i32 = arith.constant 0 : i32
    return %arg1, %arg0 : i32, i32
  }
  func.func @transform_2(%arg0: i32, %arg1: i32) -> (i32, i32) {
    %c0_i32 = arith.constant 0 : i32
    %c0_i32_0 = arith.constant 0 : i32
    return %c0_i32, %arg0 : i32, i32
  }
  func.func @transform_3(%arg0: i32, %arg1: i32) -> (i32, i32) {
    %c0_i32 = arith.constant 0 : i32
    %c0_i32_0 = arith.constant 0 : i32
    return %arg0, %c0_i32 : i32, i32
  }
  func.func @transform_4(%arg0: i32, %arg1: i32) -> (i32, i32) {
    %c0_i32 = arith.constant 0 : i32
    %c0_i32_0 = arith.constant 0 : i32
    %c0_i32_1 = arith.constant 0 : i32
    return %c0_i32, %c0_i32_0 : i32, i32
  }
  func.func @transform_5(%arg0: i32, %arg1: i32) -> (i32, i32) {
    %c0_i32 = arith.constant 0 : i32
    %c0_i32_0 = arith.constant 0 : i32
    %c0_i32_1 = arith.constant 0 : i32
    return %c0_i32, %c0_i32_0 : i32, i32
  }
  func.func @transform_6(%arg0: i32, %arg1: i32) -> (i32, i32) {
    %c0_i32 = arith.constant 0 : i32
    %c0_i32_0 = arith.constant 0 : i32
    %c0_i32_1 = arith.constant 0 : i32
    return %c0_i32, %c0_i32_0 : i32, i32
  }
  func.func @transform_7(%arg0: i32, %arg1: i32) -> (i32, i32) {
    %c0_i32 = arith.constant 0 : i32
    %c0_i32_0 = arith.constant 0 : i32
    %c0_i32_1 = arith.constant 0 : i32
    return %c0_i32, %c0_i32_0 : i32, i32
  }
  func.func @transform_8(%arg0: i32, %arg1: i32) -> (i32, i32) {
    %c0_i32 = arith.constant 0 : i32
    %c0_i32_0 = arith.constant 0 : i32
    %c0_i32_1 = arith.constant 0 : i32
    return %c0_i32, %c0_i32_0 : i32, i32
  }
  func.func @transform_9(%arg0: i32, %arg1: i32) -> (i32, i32) {
    %c0_i32 = arith.constant 0 : i32
    %c0_i32_0 = arith.constant 0 : i32
    %c0_i32_1 = arith.constant 0 : i32
    return %c0_i32, %c0_i32_0 : i32, i32
  }
}

</mosaic_0001>

<bundles_post_ra>
// kernel: dnn_forward.1
= control target key start
LH: loop header
LB: loop body
LE: loop exit
PB: predicated region body
PF: predicated region fallthrough
CT: control target
= control target key end

     0   :  { %s6958_s0 = inlined_call_operand.vmem [shape: bf16[6,8,1280], index: 0, kind: input, shape index: {}]   ;;  %s6959_s1 = inlined_call_operand.hbm [shape: bf16[7680,1024], index: 1, kind: input, shape index: {}]   ;;  %s6960_s2 = inlined_call_operand.hbm [shape: f32[1,1024], index: 2, kind: input, shape index: {}]   ;;  %s6961_s3 = inlined_call_operand.hbm [shape: f32[1024,256], index: 3, kind: input, shape index: {}]   ;;  %s6962_s4 = inlined_call_operand.hbm [shape: f32[1,256], index: 4, kind: input, shape index: {}]   ;;  %s6963_s5 = inlined_call_operand.vmem [shape: f32[256,32], index: 5, kind: input, shape index: {}]   ;;  %s6964_s6 = inlined_call_operand.hbm [shape: f32[1,32], index: 6, kind: input, shape index: {}]   ;;  %s6965_s7 = inlined_call_operand.vmem [shape: f32[32,2], index: 7, kind: input, shape index: {}]   ;;  %s6966_s8 = inlined_call_operand.hbm [shape: f32[1,2], index: 8, kind: input, shape index: {}]   ;;  %s6967_s9 = inlined_call_operand.vmem [shape: f32[8,2], index: 9, kind: output, shape index: {}]  }
   0x1   :  { %6983 = sst [smem:[#allocation29_spill]] %s6958_s0 }
   0x2   :  { %6984 = sst [smem:[#allocation30_spill]] %s6959_s1 }
   0x3   :  { %6985 = sst [smem:[#allocation31_spill]] %s6962_s4 }
   0x4   :  { %6986 = sst [smem:[#allocation32_spill]] %s6963_s5 }
   0x5   :  { %6987 = sst [smem:[#allocation33_spill]] %s6965_s7 }
   0x6   :  { %6988 = sst [smem:[#allocation34_spill]] %s6967_s9 }
   0x7   :  { %14 = vsyncpa [#allocation5], 0 }
   0x8   :  { %16 = vsyncpa [#allocation5 + $0x1], 0 }
   0x9   :  { %17 = vsyncpa [#allocation7], 0 }
   0xa   :  { %19 = vsyncpa [#allocation7 + $0x1], 0 }
   0xb   :  { %20 = vsyncpa [#allocation10], 0 }
   0xc   :  { %21 = vsyncpa [#allocation13], 0  ;;  %s5706_s30 = smov 0   ;;  %s5708_s10 = smov 0  }
   0xd   :  { %s5710_s11 = smov 0   ;;  %s5712_s12 = smov 0  }
   0xe   :  { %s5714_s13 = smov 0   ;;  %s5716_s14 = smov 0  }
   0xf   :  { %s5718_s15 = smov 0   ;;  %s5720_s16 = smov 0  }
  0x10   :  { %s5722_s17 = smov 0   ;;  %s5724_s18 = smov 0  }
  0x11   :  { %s5726_s19 = smov 0  }
  0x12 LB: > { %6989 = sst [smem:[#allocation18_spill]] %s5612_s10  ;;  %s6968_s20 = sadd.s32 4294967295, %s5648_s19   ;;  %s5648_s19 = sphi %s5726_s19, %s27_s19   ;;  %s5644_s18 = sphi %s5724_s18, %s7038_s18   ;;  %s5640_s17 = sphi %s5722_s17, %s7030_s17   ;;  %s5636_s16 = sphi %s5720_s16, %s7037_s16   ;;  %s5632_s15 = sphi %s5718_s15, %s7029_s15   ;;  %s5628_s14 = sphi %s5716_s14, %s7036_s14   ;;  %s5624_s13 = sphi %s5714_s13, %s7035_s13   ;;  %s5620_s12 = sphi %s5712_s12, %s7034_s12   ;;  %s5616_s11 = sphi %s5710_s11, %s7033_s11   ;;  %s5612_s10 = sphi %s5708_s10, %s7032_s10   ;;  %s5608_s30 = sphi %s5706_s30, %s7026_s30  }
  0x13   : > { %6990 = sst [smem:[#allocation19_spill]] %s5632_s15  ;;  %p82_p0 = scmp.ne.s32.totalorder %s5624_s13, %s5620_s12 }
  0x14   : > { %6991 = sst [smem:[#allocation20_spill]] %s5636_s16  ;;  %p5763_p1 = scmp.eq.s32.totalorder %s6968_s20, 0 }
  0x15   : > { %6992 = sst [smem:[#allocation21_spill]] %s5640_s17  ;;  %p3589_p2 = scmp.ge.s32.totalorder %s5648_s19, 1 }
  0x16   : > { %s6993_s21 = scalar_select %p5763_p1, 1, 0 }
  0x17   : > { %p271_p3 = scmp.lt.s32.totalorder %s5648_s19, 13  ;;  %p5771_p4 = por %p5763_p1, %p82_p0 }
  0x18   : > { %6994 = sst [smem:[#allocation22_spill]] %s6993_s21  ;;  %s5650_s27 = smov [#allocation9]  }
  0x19   : > { %s6995_s22 = scalar_select %p5771_p4, 1, 0 }
  0x1a   : > { %p5775_p5 = pnand %p3589_p2, %p271_p3  ;;  %s6998_s4 = sld [smem:[#allocation31_spill]] }
  0x1b   : > { %6996 = sst [smem:[#allocation23_spill]] %s6995_s22  ;;  %s288_s28 = sshll.u32 %s5650_s27, 4  ;;  %s289_s28 = int_to_ptr.vmem [resolvable:$true] %s288_s28 }
  0x1c   : > { %p5239_p6 = pneg %p5775_p5  ;;  %s36_s12 = sadd.s32 1, %s5640_s17 }
  0x1d   : > { %p37_p8 = scmp.ge.s32.totalorder %s36_s12, 6  ;;  %s39_s24 = sadd.s32 1, %s5644_s18 }
  0x1e   : > { %p5786_p7 = pnand %p5239_p6, %p5763_p1  ;;  %p76_p9 = scmp.ne.s32.totalorder %s5628_s14, %s5624_s13 }
  0x1f   : > { %s7040_s12 = smov (%p37_p8, %s36_s12), 0  ;;  %s7042_s24 = smov (!%p37_p8, %s39_s24), %s5644_s18 }
  0x20   : > { %s286_s26 = sshll.u32 %s6998_s4, 4  ;;  %7000 = sst [smem:[#allocation24_spill]] %s7040_s12  ;;  %s287_s26 = int_to_ptr.hbm [resolvable:$true] %s286_s26 }
  0x21   : > { %5242 = dma.hbm_to_vmem [thread:$0]  (!%p5786_p7), %s287_s26, 32, %s289_s28, [#allocation10]  }
  0x22   : > { %s69_s25 = sadd.s32 1, %s5628_s14  ;;  %p77_p10 = scmp.eq.s32.totalorder %s5648_s19, 0 }
  0x23   : > { %p41_p11 = scmp.ge.s32.totalorder %s7042_s24, 2  ;;  %s64_s27 = ssub.s32 %s5640_s17, %s7040_s12 }
  0x24   : > { %p5805_p12 = por %p77_p10, %p76_p9  ;;  %s95_s28 = sadd.s32 1, %s5616_s11 }
  0x25   : > { %s7044_s24 = smov (%p41_p11, %s7042_s24), 0  ;;  %p102_p13 = scmp.ne.s32.totalorder %s5616_s11, %s5612_s10 }
  0x26   : > { %7002 = sst [smem:[#allocation25_spill]] %s7044_s24  ;;  %p108_p0 = scmp.ne.s32.totalorder %s5612_s10, %s5608_s30 }
  0x27   : > { %s65_s20 = ssub.s32 %s5644_s18, %s7044_s24  ;;  %p5262_p2 = scmp.lt.s32.totalorder %s5648_s19, 12 }
  0x28   : > { %s66_s4 = sor.u32 %s65_s20, %s64_s27  ;;  %p93_p3 = scmp.eq.s32.totalorder %s65_s20, 0 }
  0x29   : > { %p67_p6 = scmp.eq.s32.totalorder %s66_s4, 0  ;;  %p5821_p8 = por %p108_p0, %p5763_p1 }
  0x2a   : > { %s5826_s9 = scalar_select %p93_p3, %s5616_s11, %s95_s28  }
  0x2b   : > { %s7003_s12 = scalar_select %p5821_p8, 1, 0 }
  0x2c   : > { %7005 = sst [smem:[#allocation27_spill]] %s5826_s9  ;;  %s3594_s5 = sshll.u32 %s5644_s18, 2 }
  0x2d   : > { %7004 = sst [smem:[#allocation26_spill]] %s7003_s12  ;;  %s4895_s0 = smul.u32 1280, %s5640_s17 }
  0x2e   : > { %s5829_s7 = scalar_select %p67_p6, %s5628_s14, %s69_s25  }
  0x2f   : > { %p5835_p9 = por %p102_p13, %p77_p10  ;;  %p5843_p11 = pnand %p5262_p2, %p5805_p12 }
  0x30   : > { %7006 = sst [smem:[#allocation28_spill]] %s5829_s7  ;;  %s339_s20 = sadd.s32 %s4895_s0, %s3594_s5 }
  0x31   : > { %s354_s27 = sand.u32 1, %s5648_s19   ;;  %s3596_s28 = sshll.u32 %s339_s20, 2 }
  0x32   : > { %s7009_s1 = sld [smem:[#allocation30_spill]]  ;;  %s356_s7 = sand.u32 1, %s5616_s11  }
  0x33   : > { %s3597_s9 = sshll.u32 %s356_s7, 2  ;;  %s362_s26 = scalar_lea.hbm %s6960_s2, %s3594_s5 }
  0x34   : > { %s358_s12 = scalar_lea.vmem [#allocation6], %s3597_s9  ;;  %s364_s22 = sshll.u32 %s362_s26, 4  ;;  %s365_s22 = int_to_ptr.hbm [resolvable:$true] %s364_s22 }
  0x35   : > { %s366_s10 = sshll.u32 %s358_s12, 4  ;;  %p5859_p10 = pnand %p5262_p2, %p5835_p9  ;;  %s367_s10 = int_to_ptr.vmem [resolvable:$true] %s366_s10 }
  0x36   : > { %s3599_s24 = sshll.u32 %s356_s7, 10  ;;  %s301_s15 = sshll.u32 %s6964_s6, 4  ;;  %s302_s15 = int_to_ptr.hbm [resolvable:$true] %s301_s15 }
  0x37   : > { %s5866_s5 = scalar_lea.sflag [#allocation7], %s354_s27  ;;  %s377_s9 = scalar_lea.vmem [#allocation8], %s3599_s24 }
  0x38   : > { %s341_s17 = scalar_lea.hbm %s7009_s1, %s3596_s28  ;;  %s5871_s21 = sshll.u32 %s377_s9, 4  ;;  %s387_s21 = int_to_ptr.vmem [resolvable:$true] %s5871_s21 }
  0x39   : > { %s342_s16 = sshll.u32 %s341_s17, 4  ;;  %s5651_s12 = smov [#allocation11]   ;;  %s343_s16 = int_to_ptr.hbm [resolvable:$true] %s342_s16 }
  0x3a   : > { %5255 = dma.hbm_to_vmem [thread:$0]  (!%p5859_p10), %s365_s22, 64, %s367_s10, %s5866_s5  }
  0x3b   : > { %s303_s30 = sshll.u32 %s5651_s12, 4  ;;  %s316_s7 = sshll.u32 %s6966_s8, 4  ;;  %s304_s30 = int_to_ptr.vmem [resolvable:$true] %s303_s30  ;;  %s317_s7 = int_to_ptr.hbm [resolvable:$true] %s316_s7 }
  0x3c   : > { %5245 = dma.hbm_to_vmem [thread:$0]  (!%p5786_p7), %s302_s15, 16, %s304_s30, [#allocation10]  }
  0x3d   : > { %s329_s10 = sand.u32 1, %s5628_s14   ;;  %s5652_s22 = smov [#allocation12]  }
  0x3e   : > { %s318_s27 = sshll.u32 %s5652_s22, 4  ;;  %s5219_s26 = smul.u32 2560, %s329_s10  ;;  %s319_s27 = int_to_ptr.vmem [resolvable:$true] %s318_s27 }
  0x3f   : > { %5248 = dma.hbm_to_vmem [thread:$0]  (!%p5786_p7), %s317_s7, 16, %s319_s27, [#allocation13]  }
  0x40   : > { %s333_s24 = scalar_lea.vmem [#allocation4], %s5219_s26  ;;  %s330_s20 = scalar_lea.sflag [#allocation5], %s329_s10 }
  0x41   : > { %s344_s17 = sshll.u32 %s333_s24, 4  ;;  %s5653_s9 = smov 512   ;;  %s345_s17 = int_to_ptr.vmem [resolvable:$true] %s344_s17 }
  0x42   : > { %s5654_s12 = smov 256   ;;  %s5655_s28 = smov 16  }
  0x43   : > { %5252 = dma.hbm_to_vmem [thread:$0]  (!%p5843_p11), %s343_s16, 40960, %s345_s17, %s330_s20, %s5653_s9, %s5654_s12, %s5655_s28  }
  0x44   : > { %s4897_s15 = sshll.u32 %s5644_s18, 10  ;;  %398 = sbr.rel (%p5775_p5) target bundleno = 1378 (0x562), region = 56 }
  0x45   : > { %s383_s22 = scalar_lea.hbm %s6961_s3, %s4897_s15  ;;  %s400_s7 = sand.u32 (!%p5775_p5), 1, %s5624_s13  }
  0x46   : > { %s384_s1 = sshll.u32 %s383_s22, 4  ;;  %s5220_s10 = smul.u32 (!%p5775_p5), 2560, %s400_s7  ;;  %s385_s1 = int_to_ptr.hbm [resolvable:$true] %s384_s1 }
  0x47   : > { %5258 = dma.hbm_to_vmem [thread:$0]  (!%p5859_p10), %s385_s1, 16384, %s387_s21, %s5866_s5, %s5654_s12, %s5654_s12, %s5655_s28  }
  0x48   : > { %s401_s27 = scalar_lea.sflag (!%p5775_p5), [#allocation5], %s400_s7  ;;  %s5894_s4 = scalar_lea.vmem (!%p5775_p5), [#allocation4], %s5220_s10 }
  0x49   : > { %5591 = dma.done.wait (%p5771_p4), %s401_s27, 40960  }
  0x4a   : > { %5593 = vsyncadd (%p5771_p4), %s401_s27, 4294926336  ;;  %s7012_s16 = sadd.s32 4294967295, %s5648_s19   ;;  %s7013_s26 = sld [smem:[#allocation18_spill]] }
  0x4b   : > { %s410_s1 = sand.u32 1, %s7012_s16  }
  0x4c   : > { %s411_s21 = scalar_lea.sflag [#allocation7], %s410_s1 }
  0x50   : > { %s412_s5 = sand.u32 1, %s7013_s26  }
  0x51   : > { %s3604_s23 = sshll.u32 %s412_s5, 2 }
  0x52   : > { %s414_s24 = scalar_lea.vmem [#allocation6], %s3604_s23 }
  0x53   : > { %5595 = dma.done.wait (%p5821_p8), %s411_s21, 16448  }
  0x54   : > { %5597 = vsyncadd (%p5821_p8), %s411_s21, 4294950848  ;;  %s3605_s20 = sshll.u32 %s412_s5, 10 }
  0x55   : > { %s5907_s9 = scalar_lea.vmem [#allocation8], %s3605_s20 }
  0x56   : > { %5599 = dma.done.wait (%p5763_p1), [#allocation10], 48  }
  0x57   : > { %5601 = vsyncadd (%p5763_p1), [#allocation10], 4294967248 }
  0x58   : > { %5603 = dma.done.wait (%p5763_p1), [#allocation13], 16  }
  0x59   : > { %5605 = vsyncadd (%p5763_p1), [#allocation13], 4294967280  ;;  %s7016_s12 = sld [smem:[#allocation19_spill]] }
  0x5f   : > { %p484_p4 = scmp.eq.s32.totalorder %s7016_s12, 0  ;;  %p3609_p5 = scmp.ne.s32.totalorder %s7016_s12, 0 }
  0x61   : > { %487 = sbr.rel (%p3609_p5) target bundleno = 109 (0x6d), region = 84 }
  0x66   : > { %v488_v0 = vld [vmem:[%s414_s24] sm:$0xf] }
  0x67   : > { %v490_v1 = vperm.slane %v488_v0, 0  ;;  %v491_v2 = vperm.slane %v488_v0, 1  ;;  %v492_v3 = vperm.slane %v488_v0, 2  ;;  %v493_v4 = vperm.slane %v488_v0, 3 }
  0x69   : > { %498 = vst [vmem:[#allocation2 + $0x10] sm:$0xff] %v490_v1 }
  0x6a   : > { %499 = vst [vmem:[#allocation2] sm:$0xff] %v491_v2 }
  0x6b   : > { %500 = vst [vmem:[#allocation2 + $0x18] sm:$0xff] %v492_v3 }
  0x6c   : > { %501 = vst [vmem:[#allocation2 + $0x8] sm:$0xff] %v493_v4 }
  0x6d PF: > { %s7017_s28 = sld [smem:[#allocation20_spill]] }
  0x73   : > { %p502_p7 = scmp.eq.s32.totalorder %s7017_s28, 0 }
  0x75   : > { %p503_p1 = pnand %p502_p7, %p484_p4 }
  0x77   : > { %506 = sbr.rel (%p503_p1) target bundleno = 129 (0x81), region = 88 }
  0x7c   : > { %v507_v5 = vld [vmem:[#allocation9] sm:$0x3] }
  0x7d   : > { %v509_v6 = vperm.slane %v507_v5, 0  ;;  %v510_v7 = vperm.slane %v507_v5, 1 }
  0x7f   : > { %513 = vst [vmem:[#allocation3] sm:$0xff] %v509_v6 }
  0x80   : > { %514 = vst [vmem:[#allocation3 + $0x8] sm:$0xff] %v510_v7 }
  0x81 PF: > { %v3725_v8 = vld [vmem:[%s5894_s4 + $0xe0] sm:$0xf]  ;;  %v4929_v9 = vld [vmem:[%s5894_s4 + $0xec] sm:$0xf0]  ;;  %s7019_s30 = sld [smem:[#allocation19_spill]] }
  0x82   : > { %v3853_v10 = vld [vmem:[%s5894_s4 + $0x1e0] sm:$0xf]  ;;  %v3726_v11 = vor.u32 %v4929_v9, %v3725_v8  ;;  %v4961_v12 = vld [vmem:[%s5894_s4 + $0x1ec] sm:$0xf0]  ;;  %s7020_s7 = sld [smem:[#allocation29_spill]] }
  0x83   : > { %v3981_v13 = vld [vmem:[%s5894_s4 + $0x2e0] sm:$0xf]  ;;  %v4993_v14 = vld [vmem:[%s5894_s4 + $0x2ec] sm:$0xf0]  ;;  %v3854_v15 = vor.u32 %v4961_v12, %v3853_v10 }
  0x84   : > { %v3982_v16 = vor.u32 %v4993_v14, %v3981_v13  ;;  %v4109_v17 = vld [vmem:[%s5894_s4 + $0x3e0] sm:$0xf]  ;;  %v5025_v18 = vld [vmem:[%s5894_s4 + $0x3ec] sm:$0xf0]  ;;  %2482 = vmatpush.bf16.msra.mxu0 %v3726_v11 }
  0x85   : > { %v3709_v19 = vld [vmem:[%s5894_s4 + $0xc0] sm:$0xf]  ;;  %v4110_v20 = vor.u32 %v5025_v18, %v4109_v17  ;;  %v4925_v21 = vld [vmem:[%s5894_s4 + $0xcc] sm:$0xf0]  ;;  %2495 = vmatpush.bf16.msra.mxu1 %v3854_v15 }
  0x86   : > { %v3837_v22 = vld [vmem:[%s5894_s4 + $0x1c0] sm:$0xf]  ;;  %v4957_v23 = vld [vmem:[%s5894_s4 + $0x1cc] sm:$0xf0]  ;;  %2508 = vmatpush.bf16.msra.mxu2 %v3982_v16  ;;  %v3710_v24 = vor.u32 %v4925_v21, %v3709_v19 }
  0x87   : > { %v3838_v25 = vor.u32 %v4957_v23, %v3837_v22  ;;  %v3965_v26 = vld [vmem:[%s5894_s4 + $0x2c0] sm:$0xf]  ;;  %v4989_v27 = vld [vmem:[%s5894_s4 + $0x2cc] sm:$0xf0]  ;;  %2521 = vmatpush.bf16.msra.mxu3 %v4110_v20  ;;  %s4898_s25 = smul.u32 40, %s7019_s30  ;;  %p3010_p12 = scmp.eq.s32.totalorder %s7019_s30, 5 }
  0x88   : > { %v4093_v28 = vld [vmem:[%s5894_s4 + $0x3c0] sm:$0xf]  ;;  %v3966_v29 = vor.u32 %v4989_v27, %v3965_v26  ;;  %v5021_v30 = vld [vmem:[%s5894_s4 + $0x3cc] sm:$0xf0]  ;;  %2483 = vmatpush.bf16.msra.mxu0 %v3710_v24  ;;  %p4891_p13 = scmp.ne.s32.totalorder %s7019_s30, 5 }
  0x89   : > { %v3693_v31 = vld [vmem:[%s5894_s4 + $0xa0] sm:$0xf]  ;;  %v4921_v32 = vld [vmem:[%s5894_s4 + $0xac] sm:$0xf0]  ;;  %v4094_v33 = vor.u32 %v5021_v30, %v4093_v28  ;;  %2496 = vmatpush.bf16.msra.mxu1 %v3838_v25  ;;  %s6014_s10 = scalar_lea.vmem %s7020_s7, %s4898_s25 }
  0x8a   : > { %v3821_v34 = vld [vmem:[%s5894_s4 + $0x1a0] sm:$0xf]  ;;  %v4953_v35 = vld [vmem:[%s5894_s4 + $0x1ac] sm:$0xf0]  ;;  %v3694_v37 = vor.u32 %v4921_v32, %v3693_v31  ;;  %2509 = vmatpush.bf16.msra.mxu2 %v3966_v29 }
  0x8b   : > { %v3949_v36 = vld [vmem:[%s5894_s4 + $0x2a0] sm:$0xf]  ;;  %v4985_v38 = vld [vmem:[%s5894_s4 + $0x2ac] sm:$0xf0]  ;;  %v3822_v41 = vor.u32 %v4953_v35, %v3821_v34  ;;  %2522 = vmatpush.bf16.msra.mxu3 %v4094_v33 }
  0x8c   : > { %v4077_v39 = vld [vmem:[%s5894_s4 + $0x3a0] sm:$0xf]  ;;  %v5017_v40 = vld [vmem:[%s5894_s4 + $0x3ac] sm:$0xf0]  ;;  %v3950_v42 = vor.u32 %v4985_v38, %v3949_v36  ;;  %2484 = vmatpush.bf16.msra.mxu0 %v3694_v37 }
  0x8d   : > { %v3677_v43 = vld [vmem:[%s5894_s4 + $0x80] sm:$0xf]  ;;  %v4917_v44 = vld [vmem:[%s5894_s4 + $0x8c] sm:$0xf0]  ;;  %v4078_v46 = vor.u32 %v5017_v40, %v4077_v39  ;;  %2497 = vmatpush.bf16.msra.mxu1 %v3822_v41 }
  0x8e   : > { %v3805_v45 = vld [vmem:[%s5894_s4 + $0x180] sm:$0xf]  ;;  %v4949_v47 = vld [vmem:[%s5894_s4 + $0x18c] sm:$0xf0]  ;;  %v3678_v52 = vor.u32 %v4917_v44, %v3677_v43  ;;  %2510 = vmatpush.bf16.msra.mxu2 %v3950_v42 }
  0x8f   : > { %v3933_v48 = vld [vmem:[%s5894_s4 + $0x280] sm:$0xf]  ;;  %v4981_v49 = vld [vmem:[%s5894_s4 + $0x28c] sm:$0xf0]  ;;  %v3806_v53 = vor.u32 %v4949_v47, %v3805_v45  ;;  %2523 = vmatpush.bf16.msra.mxu3 %v4078_v46 }
  0x90   : > { %v4061_v50 = vld [vmem:[%s5894_s4 + $0x380] sm:$0xf]  ;;  %v5013_v51 = vld [vmem:[%s5894_s4 + $0x38c] sm:$0xf0]  ;;  %v3934_v54 = vor.u32 %v4981_v49, %v3933_v48  ;;  %2485 = vmatpush.bf16.msra.mxu0 %v3678_v52 }
  0x91   : > { %v3661_v55 = vld [vmem:[%s5894_s4 + $0x60] sm:$0xf]  ;;  %v4913_v56 = vld [vmem:[%s5894_s4 + $0x6c] sm:$0xf0]  ;;  %v4062_v58 = vor.u32 %v5013_v51, %v4061_v50  ;;  %2498 = vmatpush.bf16.msra.mxu1 %v3806_v53 }
  0x92   : > { %v3789_v57 = vld [vmem:[%s5894_s4 + $0x160] sm:$0xf]  ;;  %v4945_v59 = vld [vmem:[%s5894_s4 + $0x16c] sm:$0xf0]  ;;  %v3662_v0 = vor.u32 %v4913_v56, %v3661_v55  ;;  %2511 = vmatpush.bf16.msra.mxu2 %v3934_v54 }
  0x93   : > { %v3917_v60 = vld [vmem:[%s5894_s4 + $0x260] sm:$0xf]  ;;  %v4977_v61 = vld [vmem:[%s5894_s4 + $0x26c] sm:$0xf0]  ;;  %v3790_v1 = vor.u32 %v4945_v59, %v3789_v57  ;;  %2524 = vmatpush.bf16.msra.mxu3 %v4062_v58 }
  0x94   : > { %v4045_v62 = vld [vmem:[%s5894_s4 + $0x360] sm:$0xf]  ;;  %v5009_v63 = vld [vmem:[%s5894_s4 + $0x36c] sm:$0xf0]  ;;  %v3918_v2 = vor.u32 %v4977_v61, %v3917_v60  ;;  %2486 = vmatpush.bf16.msra.mxu0 %v3662_v0 }
  0x95   : > { %v3645_v3 = vld [vmem:[%s5894_s4 + $0x40] sm:$0xf]  ;;  %v4909_v4 = vld [vmem:[%s5894_s4 + $0x4c] sm:$0xf0]  ;;  %v4046_v6 = vor.u32 %v5009_v63, %v4045_v62  ;;  %2499 = vmatpush.bf16.msra.mxu1 %v3790_v1 }
  0x96   : > { %v3773_v5 = vld [vmem:[%s5894_s4 + $0x140] sm:$0xf]  ;;  %v4941_v7 = vld [vmem:[%s5894_s4 + $0x14c] sm:$0xf0]  ;;  %v3646_v12 = vor.u32 %v4909_v4, %v3645_v3  ;;  %2512 = vmatpush.bf16.msra.mxu2 %v3918_v2 }
  0x97   : > { %v3901_v8 = vld [vmem:[%s5894_s4 + $0x240] sm:$0xf]  ;;  %v4973_v9 = vld [vmem:[%s5894_s4 + $0x24c] sm:$0xf0]  ;;  %v3774_v13 = vor.u32 %v4941_v7, %v3773_v5  ;;  %2525 = vmatpush.bf16.msra.mxu3 %v4046_v6 }
  0x98   : > { %v4029_v10 = vld [vmem:[%s5894_s4 + $0x340] sm:$0xf]  ;;  %v5005_v11 = vld [vmem:[%s5894_s4 + $0x34c] sm:$0xf0]  ;;  %v3902_v14 = vor.u32 %v4973_v9, %v3901_v8  ;;  %2487 = vmatpush.bf16.msra.mxu0 %v3646_v12 }
  0x99   : > { %v3629_v15 = vld [vmem:[%s5894_s4 + $0x20] sm:$0xf]  ;;  %v4905_v16 = vld [vmem:[%s5894_s4 + $0x2c] sm:$0xf0]  ;;  %v4030_v18 = vor.u32 %v5005_v11, %v4029_v10  ;;  %2500 = vmatpush.bf16.msra.mxu1 %v3774_v13  ;;  %v523_v10 = vld [vmem:[%s6014_s10 + $0x8] sm:$0xff] }
  0x9a   : > { %v3757_v17 = vld [vmem:[%s5894_s4 + $0x120] sm:$0xf]  ;;  %v4937_v19 = vld [vmem:[%s5894_s4 + $0x12c] sm:$0xf0]  ;;  %v3630_v24 = vor.u32 %v4905_v16, %v3629_v15  ;;  %2513 = vmatpush.bf16.msra.mxu2 %v3902_v14  ;;  %v854_v15 = vunpack.c.l.b16 %v523_v10 }
  0x9b   : > { %v3885_v20 = vld [vmem:[%s5894_s4 + $0x220] sm:$0xf]  ;;  %v4969_v21 = vld [vmem:[%s5894_s4 + $0x22c] sm:$0xf0]  ;;  %v3758_v27 = vor.u32 %v4937_v19, %v3757_v17  ;;  %2526 = vmatpush.bf16.msra.mxu3 %v4030_v18  ;;  %v855_v17 = vunpack.c.h.b16 %v523_v10 }
  0x9c   : > { %v4013_v22 = vld [vmem:[%s5894_s4 + $0x320] sm:$0xf]  ;;  %v5001_v23 = vld [vmem:[%s5894_s4 + $0x32c] sm:$0xf0]  ;;  %v3886_v28 = vor.u32 %v4969_v21, %v3885_v20  ;;  %2488 = vmatpush.bf16.msra.mxu0 %v3630_v24 }
  0x9d   : > { %v3613_v25 = vld [vmem:[%s5894_s4] sm:$0xf]  ;;  %v4901_v26 = vld [vmem:[%s5894_s4 + $0xc] sm:$0xf0]  ;;  %v4014_v32 = vor.u32 %v5001_v23, %v4013_v22  ;;  %2501 = vmatpush.bf16.msra.mxu1 %v3758_v27  ;;  %v6028_v27 = vpack.c.b16 %v855_v17, %v855_v17 }
  0x9e   : > { %v3741_v29 = vld [vmem:[%s5894_s4 + $0x100] sm:$0xf]  ;;  %v4933_v30 = vld [vmem:[%s5894_s4 + $0x10c] sm:$0xf0]  ;;  %v3614_v39 = vor.u32 %v4901_v26, %v3613_v25  ;;  %2514 = vmatpush.bf16.msra.mxu2 %v3886_v28  ;;  %v6026_v26 = vpack.c.b16 %v854_v15, %v854_v15 }
  0x9f   : > { %v3869_v31 = vld [vmem:[%s5894_s4 + $0x200] sm:$0xf]  ;;  %v4965_v33 = vld [vmem:[%s5894_s4 + $0x20c] sm:$0xf0]  ;;  %v3742_v43 = vor.u32 %v4933_v30, %v3741_v29  ;;  %2527 = vmatpush.bf16.msra.mxu3 %v4014_v32 }
  0xa0   : > { %v3997_v34 = vld [vmem:[%s5894_s4 + $0x300] sm:$0xf]  ;;  %v4997_v35 = vld [vmem:[%s5894_s4 + $0x30c] sm:$0xf0]  ;;  %v3870_v44 = vor.u32 %v4965_v33, %v3869_v31  ;;  %2489 = vmatpush.bf16.msra.mxu0 %v3614_v39 }
  0xa1   : > { %v4237_v36 = vld [vmem:[%s5894_s4 + $0x4e0] sm:$0xf]  ;;  %v5057_v37 = vld [vmem:[%s5894_s4 + $0x4ec] sm:$0xf0]  ;;  %v3998_v47 = vor.u32 %v4997_v35, %v3997_v34  ;;  %2502 = vmatpush.bf16.msra.mxu1 %v3742_v43 }
  0xa2   : > { %v4365_v38 = vld [vmem:[%s5894_s4 + $0x5e0] sm:$0xf]  ;;  %v5089_v40 = vld [vmem:[%s5894_s4 + $0x5ec] sm:$0xf0]  ;;  %v4238_v48 = vor.u32 %v5057_v37, %v4237_v36  ;;  %2515 = vmatpush.bf16.msra.mxu2 %v3870_v44 }
  0xa3   : > { %v4493_v41 = vld [vmem:[%s5894_s4 + $0x6e0] sm:$0xf]  ;;  %v5121_v42 = vld [vmem:[%s5894_s4 + $0x6ec] sm:$0xf0]  ;;  %v4366_v49 = vor.u32 %v5089_v40, %v4365_v38  ;;  %2528 = vmatpush.bf16.msra.mxu3 %v3998_v47 }
  0xa4   : > { %v4621_v45 = vld [vmem:[%s5894_s4 + $0x7e0] sm:$0xf]  ;;  %v5153_v46 = vld [vmem:[%s5894_s4 + $0x7ec] sm:$0xf0]  ;;  %v4494_v50 = vor.u32 %v5121_v42, %v4493_v41  ;;  %2534 = vmatpush.bf16.msrb.mxu0 %v4238_v48 }
  0xa5   : > { %v4221_v51 = vld [vmem:[%s5894_s4 + $0x4c0] sm:$0xf]  ;;  %v5053_v52 = vld [vmem:[%s5894_s4 + $0x4cc] sm:$0xf0]  ;;  %v4622_v54 = vor.u32 %v5153_v46, %v4621_v45  ;;  %2547 = vmatpush.bf16.msrb.mxu1 %v4366_v49  ;;  %2516 = vmatmul.bf16.vlgmr.msra.gmra.mxu2 %v6026_v26 }
  0xa6   : > { %v4349_v53 = vld [vmem:[%s5894_s4 + $0x5c0] sm:$0xf]  ;;  %v5085_v55 = vld [vmem:[%s5894_s4 + $0x5cc] sm:$0xf0]  ;;  %v4222_v60 = vor.u32 %v5053_v52, %v4221_v51  ;;  %2560 = vmatpush.bf16.msrb.mxu2 %v4494_v50  ;;  %2529 = vmatmul.bf16.vlgmr.msra.gmra.mxu3 %v6028_v27 }
  0xa7   : > { %v4477_v56 = vld [vmem:[%s5894_s4 + $0x6c0] sm:$0xf]  ;;  %v5117_v57 = vld [vmem:[%s5894_s4 + $0x6cc] sm:$0xf0]  ;;  %v4350_v62 = vor.u32 %v5085_v55, %v4349_v53  ;;  %2573 = vmatpush.bf16.msrb.mxu3 %v4622_v54 }
  0xa8   : > { %v4605_v58 = vld [vmem:[%s5894_s4 + $0x7c0] sm:$0xf]  ;;  %v5149_v59 = vld [vmem:[%s5894_s4 + $0x7cc] sm:$0xf0]  ;;  %v4478_v63 = vor.u32 %v5117_v57, %v4477_v56  ;;  %2535 = vmatpush.bf16.msrb.mxu0 %v4222_v60 }
  0xa9   : > { %v4205_v61 = vld [vmem:[%s5894_s4 + $0x4a0] sm:$0xf]  ;;  %v5049_v0 = vld [vmem:[%s5894_s4 + $0x4ac] sm:$0xf0]  ;;  %v4606_v2 = vor.u32 %v5149_v59, %v4605_v58  ;;  %2548 = vmatpush.bf16.msrb.mxu1 %v4350_v62 }
  0xaa   : > { %v4333_v1 = vld [vmem:[%s5894_s4 + $0x5a0] sm:$0xf]  ;;  %v5081_v3 = vld [vmem:[%s5894_s4 + $0x5ac] sm:$0xf0]  ;;  %v4206_v8 = vor.u32 %v5049_v0, %v4205_v61  ;;  %2561 = vmatpush.bf16.msrb.mxu2 %v4478_v63 }
  0xab   : > { %v4461_v4 = vld [vmem:[%s5894_s4 + $0x6a0] sm:$0xf]  ;;  %v5113_v5 = vld [vmem:[%s5894_s4 + $0x6ac] sm:$0xf0]  ;;  %v4334_v11 = vor.u32 %v5081_v3, %v4333_v1  ;;  %2574 = vmatpush.bf16.msrb.mxu3 %v4606_v2 }
  0xac   : > { %v4589_v6 = vld [vmem:[%s5894_s4 + $0x7a0] sm:$0xf]  ;;  %v5145_v7 = vld [vmem:[%s5894_s4 + $0x7ac] sm:$0xf0]  ;;  %v4462_v12 = vor.u32 %v5113_v5, %v4461_v4  ;;  %2536 = vmatpush.bf16.msrb.mxu0 %v4206_v8 }
  0xad   : > { %v4189_v9 = vld [vmem:[%s5894_s4 + $0x480] sm:$0xf]  ;;  %v5045_v13 = vld [vmem:[%s5894_s4 + $0x48c] sm:$0xf0]  ;;  %v4590_v18 = vor.u32 %v5145_v7, %v4589_v6  ;;  %2549 = vmatpush.bf16.msrb.mxu1 %v4334_v11  ;;  %v525_v11 = vld [vmem:[%s6014_s10 + $0x18] sm:$0xff] }
  0xae   : > { %v4317_v14 = vld [vmem:[%s5894_s4 + $0x580] sm:$0xf]  ;;  %v522_v16 = vld [vmem:[%s6014_s10] sm:$0xff]  ;;  %v4190_v28 = vor.u32 %v5045_v13, %v4189_v9  ;;  %2562 = vmatpush.bf16.msrb.mxu2 %v4462_v12 }
  0xaf   : > { %v5077_v19 = vld [vmem:[%s5894_s4 + $0x58c] sm:$0xf0]  ;;  %v4445_v20 = vld [vmem:[%s5894_s4 + $0x680] sm:$0xf]  ;;  %v852_v22 = vunpack.c.l.b16 %v522_v16  ;;  %v853_v23 = vunpack.c.h.b16 %v522_v16  ;;  %2575 = vmatpush.bf16.msrb.mxu3 %v4590_v18 }
  0xb0   : > { %v5109_v21 = vld [vmem:[%s5894_s4 + $0x68c] sm:$0xf0]  ;;  %v4573_v24 = vld [vmem:[%s5894_s4 + $0x780] sm:$0xf]  ;;  %v4318_v31 = vor.u32 %v5077_v19, %v4317_v14  ;;  %2537 = vmatpush.bf16.msrb.mxu0 %v4190_v28  ;;  %v4959_v28 = vld [vmem:[%s5894_s4 + $0x1e4] sm:$0xf] }
  0xb1   : > { %v5141_v25 = vld [vmem:[%s5894_s4 + $0x78c] sm:$0xf0]  ;;  %v6030_v29 = vpack.c.b16 %v852_v22, %v852_v22  ;;  %v6032_v30 = vpack.c.b16 %v853_v23, %v853_v23  ;;  %v4446_v32 = vor.u32 %v5109_v21, %v4445_v20  ;;  %v4173_v33 = vld [vmem:[%s5894_s4 + $0x460] sm:$0xf]  ;;  %v4927_v21 = vld [vmem:[%s5894_s4 + $0xe4] sm:$0xf]  ;;  %v858_v23 = vunpack.c.l.b16 %v525_v11 }
  0xb2   : > { %v5041_v34 = vld [vmem:[%s5894_s4 + $0x46c] sm:$0xf0]  ;;  %v4301_v35 = vld [vmem:[%s5894_s4 + $0x560] sm:$0xf]  ;;  %v4574_v36 = vor.u32 %v5141_v25, %v4573_v24  ;;  %2550 = vmatpush.bf16.msrb.mxu1 %v4318_v31  ;;  %v3727_v22 = vld [vmem:[%s5894_s4 + $0xf0] sm:$0xf0] }
  0xb3   : > { %v5073_v37 = vld [vmem:[%s5894_s4 + $0x56c] sm:$0xf0]  ;;  %v4429_v38 = vld [vmem:[%s5894_s4 + $0x660] sm:$0xf]  ;;  %2490 = vmatmul.bf16.vlgmr.msra.gmra.mxu0 %v6030_v29  ;;  %v4174_v42 = vor.u32 %v5041_v34, %v4173_v33  ;;  %2503 = vmatmul.bf16.vlgmr.msra.gmra.mxu1 %v6032_v30  ;;  %v3855_v31 = vld [vmem:[%s5894_s4 + $0x1f0] sm:$0xf0]  ;;  %v859_v33 = vunpack.c.h.b16 %v525_v11 }
  0xb4   : > { %v5105_v39 = vld [vmem:[%s5894_s4 + $0x66c] sm:$0xf0]  ;;  %v4557_v40 = vld [vmem:[%s5894_s4 + $0x760] sm:$0xf]  ;;  %2563 = vmatpush.bf16.msrb.mxu2 %v4446_v32  ;;  %v4302_v43 = vor.u32 %v5073_v37, %v4301_v35  ;;  %2576 = vmatpush.bf16.msrb.mxu3 %v4574_v36  ;;  %v3807_v11 = vld [vmem:[%s5894_s4 + $0x190] sm:$0xf0] }
  0xb5   : > { %v5137_v41 = vld [vmem:[%s5894_s4 + $0x76c] sm:$0xf0]  ;;  %v4430_v44 = vor.u32 %v5105_v39, %v4429_v38  ;;  %v4157_v45 = vld [vmem:[%s5894_s4 + $0x440] sm:$0xf]  ;;  %2538 = vmatpush.bf16.msrb.mxu0 %v4174_v42  ;;  %v3730_v38 = vor.u32 %v4927_v21, %v3727_v22  ;;  %v3858_v42 = vor.u32 %v4959_v28, %v3855_v31  ;;  %v3663_v21 = vld [vmem:[%s5894_s4 + $0x70] sm:$0xf0] }
  0xb6   : > { %v5037_v46 = vld [vmem:[%s5894_s4 + $0x44c] sm:$0xf0]  ;;  %v4285_v47 = vld [vmem:[%s5894_s4 + $0x540] sm:$0xf]  ;;  %v4558_v48 = vor.u32 %v5137_v41, %v4557_v40  ;;  %2551 = vmatpush.bf16.msrb.mxu1 %v4302_v43  ;;  %v4943_v22 = vld [vmem:[%s5894_s4 + $0x164] sm:$0xf] }
  0xb7   : > { %v5069_v49 = vld [vmem:[%s5894_s4 + $0x54c] sm:$0xf0]  ;;  %v4413_v50 = vld [vmem:[%s5894_s4 + $0x640] sm:$0xf]  ;;  %v4158_v54 = vor.u32 %v5037_v46, %v4157_v45  ;;  %v3711_v45 = vld [vmem:[%s5894_s4 + $0xd0] sm:$0xf0]  ;;  %v6086_v46 = vpack.c.b16 %v858_v23, %v858_v23 }
  0xb8   : > { %v5101_v51 = vld [vmem:[%s5894_s4 + $0x64c] sm:$0xf0]  ;;  %v4541_v52 = vld [vmem:[%s5894_s4 + $0x740] sm:$0xf]  ;;  %2564 = vmatpush.bf16.msrb.mxu2 %v4430_v44  ;;  %v4286_v55 = vor.u32 %v5069_v49, %v4285_v47  ;;  %2577 = vmatpush.bf16.msrb.mxu3 %v4558_v48  ;;  %v4923_v44 = vld [vmem:[%s5894_s4 + $0xc4] sm:$0xf] }
  0xb9   : > { %v5133_v53 = vld [vmem:[%s5894_s4 + $0x74c] sm:$0xf0]  ;;  %v4414_v56 = vor.u32 %v5101_v51, %v4413_v50  ;;  %v4141_v57 = vld [vmem:[%s5894_s4 + $0x420] sm:$0xf]  ;;  %2539 = vmatpush.bf16.msrb.mxu0 %v4158_v54  ;;  %v4955_v47 = vld [vmem:[%s5894_s4 + $0x1c4] sm:$0xf]  ;;  %v6092_v50 = vpack.c.b16 %v859_v33, %v859_v33  ;;  %v3714_v54 = vor.u32 %v4923_v44, %v3711_v45 }
  0xba   : > { %v5033_v58 = vld [vmem:[%s5894_s4 + $0x42c] sm:$0xf0]  ;;  %v4269_v59 = vld [vmem:[%s5894_s4 + $0x520] sm:$0xf]  ;;  %v4542_v60 = vor.u32 %v5133_v53, %v4541_v52  ;;  %2552 = vmatpush.bf16.msrb.mxu1 %v4286_v55  ;;  %v3839_v48 = vld [vmem:[%s5894_s4 + $0x1d0] sm:$0xf0] }
  0xbb   : > { %v5065_v61 = vld [vmem:[%s5894_s4 + $0x52c] sm:$0xf0]  ;;  %v4397_v62 = vld [vmem:[%s5894_s4 + $0x620] sm:$0xf]  ;;  %v4142_v3 = vor.u32 %v5033_v58, %v4141_v57  ;;  %v3842_v58 = vor.u32 %v4955_v47, %v3839_v48  ;;  %v3791_v23 = vld [vmem:[%s5894_s4 + $0x170] sm:$0xf0] }
  0xbc   : > { %v5097_v63 = vld [vmem:[%s5894_s4 + $0x62c] sm:$0xf0]  ;;  %v4525_v0 = vld [vmem:[%s5894_s4 + $0x720] sm:$0xf]  ;;  %2565 = vmatpush.bf16.msrb.mxu2 %v4414_v56  ;;  %v4270_v7 = vor.u32 %v5065_v61, %v4269_v59  ;;  %2578 = vmatpush.bf16.msrb.mxu3 %v4542_v60  ;;  %v4919_v60 = vld [vmem:[%s5894_s4 + $0xa4] sm:$0xf] }
  0xbd   : > { %v5129_v1 = vld [vmem:[%s5894_s4 + $0x72c] sm:$0xf0]  ;;  %v4125_v2 = vld [vmem:[%s5894_s4 + $0x400] sm:$0xf]  ;;  %v4398_v8 = vor.u32 %v5097_v63, %v4397_v62  ;;  %2540 = vmatpush.bf16.msrb.mxu0 %v4142_v3  ;;  %v3695_v61 = vld [vmem:[%s5894_s4 + $0xb0] sm:$0xf0] }
  0xbe   : > { %v5029_v4 = vld [vmem:[%s5894_s4 + $0x40c] sm:$0xf0]  ;;  %v4253_v5 = vld [vmem:[%s5894_s4 + $0x500] sm:$0xf]  ;;  %v4526_v12 = vor.u32 %v5129_v1, %v4525_v0  ;;  %2553 = vmatpush.bf16.msrb.mxu1 %v4270_v7  ;;  %v4951_v62 = vld [vmem:[%s5894_s4 + $0x1a4] sm:$0xf] }
  0xbf   : > { %v5061_v6 = vld [vmem:[%s5894_s4 + $0x50c] sm:$0xf0]  ;;  %v4381_v9 = vld [vmem:[%s5894_s4 + $0x600] sm:$0xf]  ;;  %v4126_v19 = vor.u32 %v5029_v4, %v4125_v2  ;;  %v3823_v63 = vld [vmem:[%s5894_s4 + $0x1b0] sm:$0xf0]  ;;  %v3698_v2 = vor.u32 %v4919_v60, %v3695_v61 }
  0xc0   : > { %v5093_v10 = vld [vmem:[%s5894_s4 + $0x60c] sm:$0xf0]  ;;  %v4509_v13 = vld [vmem:[%s5894_s4 + $0x700] sm:$0xf]  ;;  %2566 = vmatpush.bf16.msrb.mxu2 %v4398_v8  ;;  %v4254_v24 = vor.u32 %v5061_v6, %v4253_v5  ;;  %2579 = vmatpush.bf16.msrb.mxu3 %v4526_v12  ;;  %v3826_v6 = vor.u32 %v4951_v62, %v3823_v63  ;;  %v4915_v8 = vld [vmem:[%s5894_s4 + $0x84] sm:$0xf] }
  0xc1   : > { %v5125_v14 = vld [vmem:[%s5894_s4 + $0x70c] sm:$0xf0]  ;;  %v524_v15 = vld [vmem:[%s6014_s10 + $0x10] sm:$0xff]  ;;  %v4382_v25 = vor.u32 %v5093_v10, %v4381_v9  ;;  %2541 = vmatpush.bf16.msrb.mxu0 %v4126_v19  ;;  %v3679_v9 = vld [vmem:[%s5894_s4 + $0x90] sm:$0xf0] }
  0xc2   : > { %v4749_v16 = vld [vmem:[%s5894_s4 + $0x8e0] sm:$0xf]  ;;  %v5185_v17 = vld [vmem:[%s5894_s4 + $0x8ec] sm:$0xf0]  ;;  %v856_v32 = vunpack.c.l.b16 %v524_v15  ;;  %v4510_v34 = vor.u32 %v5125_v14, %v4509_v13  ;;  %v857_v36 = vunpack.c.h.b16 %v524_v15  ;;  %2554 = vmatpush.bf16.msrb.mxu1 %v4254_v24  ;;  %v4947_v10 = vld [vmem:[%s5894_s4 + $0x184] sm:$0xf]  ;;  %v3682_v14 = vor.u32 %v4915_v8, %v3679_v9 }
  0xc3   : > { %v4877_v18 = vld [vmem:[%s5894_s4 + $0x9e0] sm:$0xf]  ;;  %v5217_v20 = vld [vmem:[%s5894_s4 + $0x9ec] sm:$0xf0]  ;;  %v4750_v35 = vor.u32 %v5185_v17, %v4749_v16  ;;  %v4899_v63 = vld [vmem:[%s5894_s4 + $0x4] sm:$0xf] }
  0xc4   : > { %v4878_v37 = vor.u32 %v5217_v20, %v4877_v18  ;;  %v4733_v39 = vld [vmem:[%s5894_s4 + $0x8c0] sm:$0xf]  ;;  %v5181_v40 = vld [vmem:[%s5894_s4 + $0x8cc] sm:$0xf0]  ;;  %2567 = vmatpush.bf16.msrb.mxu2 %v4382_v25  ;;  %v6090_v49 = vpack.c.b16 %v856_v32, %v856_v32  ;;  %2580 = vmatpush.bf16.msrb.mxu3 %v4510_v34  ;;  %v6094_v52 = vpack.c.b16 %v857_v36, %v857_v36  ;;  %v4911_v20 = vld [vmem:[%s5894_s4 + $0x64] sm:$0xf] }
  0xc5   : > { %v4861_v41 = vld [vmem:[%s5894_s4 + $0x9c0] sm:$0xf]  ;;  %v5213_v43 = vld [vmem:[%s5894_s4 + $0x9cc] sm:$0xf0]  ;;  %2586 = vmatpush.bf16.msra.mxu0 %v4750_v35  ;;  %v4734_v51 = vor.u32 %v5181_v40, %v4733_v39  ;;  %v3810_v18 = vor.u32 %v4947_v10, %v3807_v11  ;;  %v3666_v28 = vor.u32 %v4911_v20, %v3663_v21  ;;  %v3794_v34 = vor.u32 %v4943_v22, %v3791_v23  ;;  %v4907_v36 = vld [vmem:[%s5894_s4 + $0x44] sm:$0xf] }
  0xc6   : > { %2599 = vmatpush.bf16.msra.mxu1 %v4878_v37  ;;  %v4862_v53 = vor.u32 %v5213_v43, %v4861_v41  ;;  %v4717_v55 = vld [vmem:[%s5894_s4 + $0x8a0] sm:$0xf]  ;;  %v5177_v56 = vld [vmem:[%s5894_s4 + $0x8ac] sm:$0xf0]  ;;  %2542 = vmatmul.bf16.vlgmr.msrb.gmra.mxu0 %v6090_v49  ;;  %v3647_v37 = vld [vmem:[%s5894_s4 + $0x50] sm:$0xf0] }
  0xc7   : > { %v4845_v57 = vld [vmem:[%s5894_s4 + $0x9a0] sm:$0xf]  ;;  %2568 = vmatmul.bf16.vlgmr.msrb.gmra.mxu2 %v6086_v46  ;;  %v5209_v59 = vld [vmem:[%s5894_s4 + $0x9ac] sm:$0xf0]  ;;  %2581 = vmatmul.bf16.vlgmr.msrb.gmra.mxu3 %v6092_v50  ;;  %v4718_v0 = vor.u32 %v5177_v56, %v4717_v55  ;;  %v3775_v39 = vld [vmem:[%s5894_s4 + $0x150] sm:$0xf0] }
  0xc8   : > { %2612 = vmatpush.bf16.msra.mxu2 %v3730_v38  ;;  %2625 = vmatpush.bf16.msra.mxu3 %v3858_v42  ;;  %v4846_v1 = vor.u32 %v5209_v59, %v4845_v57  ;;  %v4701_v3 = vld [vmem:[%s5894_s4 + $0x880] sm:$0xf]  ;;  %v5173_v4 = vld [vmem:[%s5894_s4 + $0x88c] sm:$0xf0]  ;;  %v4939_v38 = vld [vmem:[%s5894_s4 + $0x144] sm:$0xf]  ;;  %v3650_v42 = vor.u32 %v4907_v36, %v3647_v37 }
  0xc9   : > { %2587 = vmatpush.bf16.msra.mxu0 %v4734_v51  ;;  %2555 = vmatmul.bf16.vlgmr.msrb.gmra.mxu1 %v6094_v52  ;;  %v4829_v5 = vld [vmem:[%s5894_s4 + $0x980] sm:$0xf]  ;;  %v5205_v7 = vld [vmem:[%s5894_s4 + $0x98c] sm:$0xf0]  ;;  %v4702_v12 = vor.u32 %v5173_v4, %v4701_v3  ;;  %v3778_v47 = vor.u32 %v4939_v38, %v3775_v39  ;;  %v4903_v51 = vld [vmem:[%s5894_s4 + $0x24] sm:$0xf] }
  0xca   : > { %2600 = vmatpush.bf16.msra.mxu1 %v4862_v53  ;;  %v4830_v13 = vor.u32 %v5205_v7, %v4829_v5  ;;  %v4685_v15 = vld [vmem:[%s5894_s4 + $0x860] sm:$0xf]  ;;  %v5169_v16 = vld [vmem:[%s5894_s4 + $0x86c] sm:$0xf0]  ;;  %v3631_v53 = vld [vmem:[%s5894_s4 + $0x30] sm:$0xf0] }
  0xcb   : > { %v4813_v17 = vld [vmem:[%s5894_s4 + $0x960] sm:$0xf]  ;;  %v5201_v19 = vld [vmem:[%s5894_s4 + $0x96c] sm:$0xf0]  ;;  %v4686_v24 = vor.u32 %v5169_v16, %v4685_v15  ;;  %v3759_v55 = vld [vmem:[%s5894_s4 + $0x130] sm:$0xf0]  ;;  %v3634_v61 = vor.u32 %v4903_v51, %v3631_v53 }
  0xcc   : > { %2613 = vmatpush.bf16.msra.mxu2 %v3714_v54  ;;  %2626 = vmatpush.bf16.msra.mxu3 %v3842_v58  ;;  %v4814_v25 = vor.u32 %v5201_v19, %v4813_v17  ;;  %v4669_v31 = vld [vmem:[%s5894_s4 + $0x840] sm:$0xf]  ;;  %v5165_v32 = vld [vmem:[%s5894_s4 + $0x84c] sm:$0xf0]  ;;  %v4935_v54 = vld [vmem:[%s5894_s4 + $0x124] sm:$0xf] }
  0xcd   : > { %2588 = vmatpush.bf16.msra.mxu0 %v4718_v0  ;;  %v4797_v33 = vld [vmem:[%s5894_s4 + $0x940] sm:$0xf]  ;;  %v5197_v35 = vld [vmem:[%s5894_s4 + $0x94c] sm:$0xf0]  ;;  %v4670_v40 = vor.u32 %v5165_v32, %v4669_v31  ;;  %v4931_v3 = vld [vmem:[%s5894_s4 + $0x104] sm:$0xf] }
  0xce   : > { %2601 = vmatpush.bf16.msra.mxu1 %v4846_v1  ;;  %v4798_v41 = vor.u32 %v5197_v35, %v4797_v33  ;;  %v4653_v43 = vld [vmem:[%s5894_s4 + $0x820] sm:$0xf]  ;;  %v5161_v44 = vld [vmem:[%s5894_s4 + $0x82c] sm:$0xf0]  ;;  %v3762_v1 = vor.u32 %v4935_v54, %v3759_v55  ;;  %v3743_v4 = vld [vmem:[%s5894_s4 + $0x110] sm:$0xf0] }
  0xcf   : > { %v4781_v45 = vld [vmem:[%s5894_s4 + $0x920] sm:$0xf]  ;;  %v5193_v48 = vld [vmem:[%s5894_s4 + $0x92c] sm:$0xf0]  ;;  %v4654_v56 = vor.u32 %v5161_v44, %v4653_v43  ;;  %v4991_v5 = vld [vmem:[%s5894_s4 + $0x2e4] sm:$0xf] }
  0xd0   : > { %2614 = vmatpush.bf16.msra.mxu2 %v3698_v2  ;;  %2627 = vmatpush.bf16.msra.mxu3 %v3826_v6  ;;  %v4637_v57 = vld [vmem:[%s5894_s4 + $0x800] sm:$0xf]  ;;  %v5157_v58 = vld [vmem:[%s5894_s4 + $0x80c] sm:$0xf0]  ;;  %v4782_v60 = vor.u32 %v5193_v48, %v4781_v45  ;;  %v3615_v2 = vld [vmem:[%s5894_s4 + $0x10] sm:$0xf0] }
  0xd1   : > { %2589 = vmatpush.bf16.msra.mxu0 %v4702_v12  ;;  %v4765_v59 = vld [vmem:[%s5894_s4 + $0x900] sm:$0xf]  ;;  %v5189_v62 = vld [vmem:[%s5894_s4 + $0x90c] sm:$0xf0]  ;;  %v3983_v6 = vld [vmem:[%s5894_s4 + $0x2f0] sm:$0xf0]  ;;  %v4638_v8 = vor.u32 %v5157_v58, %v4637_v57 }
  0xd2   : > { %2602 = vmatpush.bf16.msra.mxu1 %v4830_v13  ;;  %v526_v0 = vld [vmem:[%s6014_s10 + $0x20] sm:$0xff]  ;;  %v5023_v7 = vld [vmem:[%s5894_s4 + $0x3e4] sm:$0xf]  ;;  %v4766_v13 = vor.u32 %v5189_v62, %v4765_v59  ;;  %v3986_v19 = vor.u32 %v4991_v5, %v3983_v6 }
  0xd3   : > { %v4111_v9 = vld [vmem:[%s5894_s4 + $0x3f0] sm:$0xf0]  ;;  %v5055_v10 = vld [vmem:[%s5894_s4 + $0x4e4] sm:$0xf]  ;;  %v860_v12 = vunpack.c.l.b16 %v526_v0  ;;  %v861_v17 = vunpack.c.h.b16 %v526_v0 }
  0xd4   : > { %2615 = vmatpush.bf16.msra.mxu2 %v3682_v14  ;;  %2628 = vmatpush.bf16.msra.mxu3 %v3810_v18  ;;  %v4239_v11 = vld [vmem:[%s5894_s4 + $0x4f0] sm:$0xf0]  ;;  %v3618_v14 = vor.u32 %v4899_v63, %v3615_v2  ;;  %v5087_v15 = vld [vmem:[%s5894_s4 + $0x5e4] sm:$0xf]  ;;  %v3746_v18 = vor.u32 %v4931_v3, %v3743_v4  ;;  %v4114_v20 = vor.u32 %v5023_v7, %v4111_v9 }
  0xd5   : > { %2590 = vmatpush.bf16.msra.mxu0 %v4686_v24  ;;  %v4367_v16 = vld [vmem:[%s5894_s4 + $0x5f0] sm:$0xf0]  ;;  %v4242_v21 = vor.u32 %v5055_v10, %v4239_v11  ;;  %v4987_v22 = vld [vmem:[%s5894_s4 + $0x2c4] sm:$0xf] }
  0xd6   : > { %2603 = vmatpush.bf16.msra.mxu1 %v4814_v25  ;;  %v3967_v23 = vld [vmem:[%s5894_s4 + $0x2d0] sm:$0xf0]  ;;  %v5019_v24 = vld [vmem:[%s5894_s4 + $0x3c4] sm:$0xf]  ;;  %v4370_v25 = vor.u32 %v5087_v15, %v4367_v16 }
  0xd7   : > { %v4095_v31 = vld [vmem:[%s5894_s4 + $0x3d0] sm:$0xf0]  ;;  %v5051_v32 = vld [vmem:[%s5894_s4 + $0x4c4] sm:$0xf]  ;;  %v3970_v37 = vor.u32 %v4987_v22, %v3967_v23 }
  0xd8   : > { %2616 = vmatpush.bf16.msra.mxu2 %v3666_v28  ;;  %2629 = vmatpush.bf16.msra.mxu3 %v3794_v34  ;;  %v6160_v28 = vpack.c.b16 %v860_v12, %v860_v12  ;;  %v4223_v33 = vld [vmem:[%s5894_s4 + $0x4d0] sm:$0xf0]  ;;  %v6165_v34 = vpack.c.b16 %v861_v17, %v861_v17  ;;  %v5083_v35 = vld [vmem:[%s5894_s4 + $0x5c4] sm:$0xf]  ;;  %v4098_v38 = vor.u32 %v5019_v24, %v4095_v31 }
  0xd9   : > { %2591 = vmatpush.bf16.msra.mxu0 %v4670_v40  ;;  %v4351_v36 = vld [vmem:[%s5894_s4 + $0x5d0] sm:$0xf0]  ;;  %v4226_v39 = vor.u32 %v5051_v32, %v4223_v33  ;;  %v4983_v40 = vld [vmem:[%s5894_s4 + $0x2a4] sm:$0xf] }
  0xda   : > { %2604 = vmatpush.bf16.msra.mxu1 %v4798_v41  ;;  %v3951_v41 = vld [vmem:[%s5894_s4 + $0x2b0] sm:$0xf0]  ;;  %v4354_v43 = vor.u32 %v5083_v35, %v4351_v36  ;;  %v5047_v45 = vld [vmem:[%s5894_s4 + $0x4a4] sm:$0xf] }
  0xdb   : > { %v4079_v44 = vld [vmem:[%s5894_s4 + $0x3b0] sm:$0xf0]  ;;  %v5079_v48 = vld [vmem:[%s5894_s4 + $0x5a4] sm:$0xf]  ;;  %v3954_v53 = vor.u32 %v4983_v40, %v3951_v41 }
  0xdc   : > { %2617 = vmatpush.bf16.msra.mxu2 %v3650_v42  ;;  %2630 = vmatpush.bf16.msra.mxu3 %v3778_v47  ;;  %v5015_v42 = vld [vmem:[%s5894_s4 + $0x3a4] sm:$0xf]  ;;  %v4207_v47 = vld [vmem:[%s5894_s4 + $0x4b0] sm:$0xf0] }
  0xdd   : > { %2592 = vmatpush.bf16.msra.mxu0 %v4654_v56  ;;  %v4335_v51 = vld [vmem:[%s5894_s4 + $0x5b0] sm:$0xf0]  ;;  %v4082_v54 = vor.u32 %v5015_v42, %v4079_v44  ;;  %v4210_v55 = vor.u32 %v5047_v45, %v4207_v47  ;;  %v4979_v56 = vld [vmem:[%s5894_s4 + $0x284] sm:$0xf] }
  0xde   : > { %2605 = vmatpush.bf16.msra.mxu1 %v4782_v60  ;;  %v3935_v57 = vld [vmem:[%s5894_s4 + $0x290] sm:$0xf0]  ;;  %v5011_v58 = vld [vmem:[%s5894_s4 + $0x384] sm:$0xf]  ;;  %v4338_v59 = vor.u32 %v5079_v48, %v4335_v51 }
  0xdf   : > { %v4063_v60 = vld [vmem:[%s5894_s4 + $0x390] sm:$0xf0]  ;;  %v5075_v63 = vld [vmem:[%s5894_s4 + $0x584] sm:$0xf] }
  0xe0   : > { %2618 = vmatpush.bf16.msra.mxu2 %v3634_v61  ;;  %2631 = vmatpush.bf16.msra.mxu3 %v3762_v1  ;;  %v5043_v61 = vld [vmem:[%s5894_s4 + $0x484] sm:$0xf]  ;;  %v4191_v62 = vld [vmem:[%s5894_s4 + $0x490] sm:$0xf0]  ;;  %v3938_v1 = vor.u32 %v4979_v56, %v3935_v57  ;;  %v4066_v2 = vor.u32 %v5011_v58, %v4063_v60 }
  0xe1   : > { %2593 = vmatpush.bf16.msra.mxu0 %v4638_v8  ;;  %v4319_v0 = vld [vmem:[%s5894_s4 + $0x590] sm:$0xf0]  ;;  %v4194_v3 = vor.u32 %v5043_v61, %v4191_v62  ;;  %v4975_v4 = vld [vmem:[%s5894_s4 + $0x264] sm:$0xf] }
  0xe2   : > { %2606 = vmatpush.bf16.msra.mxu1 %v4766_v13  ;;  %v3919_v5 = vld [vmem:[%s5894_s4 + $0x270] sm:$0xf0]  ;;  %v5007_v6 = vld [vmem:[%s5894_s4 + $0x364] sm:$0xf]  ;;  %v4322_v7 = vor.u32 %v5075_v63, %v4319_v0 }
  0xe3   : > { %v4047_v8 = vld [vmem:[%s5894_s4 + $0x370] sm:$0xf0]  ;;  %v5039_v9 = vld [vmem:[%s5894_s4 + $0x464] sm:$0xf]  ;;  %v3922_v13 = vor.u32 %v4975_v4, %v3919_v5 }
  0xe4   : > { %2619 = vmatpush.bf16.msra.mxu2 %v3618_v14  ;;  %2632 = vmatpush.bf16.msra.mxu3 %v3746_v18  ;;  %v4175_v10 = vld [vmem:[%s5894_s4 + $0x470] sm:$0xf0]  ;;  %v5071_v11 = vld [vmem:[%s5894_s4 + $0x564] sm:$0xf]  ;;  %v4050_v14 = vor.u32 %v5007_v6, %v4047_v8 }
  0xe5   : > { %2638 = vmatpush.bf16.msrb.mxu0 %v3986_v19  ;;  %2607 = vmatmul.bf16.vlgmr.msra.gmra.mxu1 %v6165_v34  ;;  %v4303_v12 = vld [vmem:[%s5894_s4 + $0x570] sm:$0xf0]  ;;  %v4178_v15 = vor.u32 %v5039_v9, %v4175_v10  ;;  %v4971_v16 = vld [vmem:[%s5894_s4 + $0x244] sm:$0xf] }
  0xe6   : > { %2651 = vmatpush.bf16.msrb.mxu1 %v4114_v20  ;;  %2594 = vmatmul.bf16.vlgmr.msra.gmra.mxu0 %v6160_v28  ;;  %v3903_v17 = vld [vmem:[%s5894_s4 + $0x250] sm:$0xf0]  ;;  %v5003_v18 = vld [vmem:[%s5894_s4 + $0x344] sm:$0xf]  ;;  %v4306_v19 = vor.u32 %v5071_v11, %v4303_v12 }
  0xe7   : > { %2620 = vmatmul.bf16.vlgmr.msra.gmra.mxu2 %v6030_v29  ;;  %2633 = vmatmul.bf16.vlgmr.msra.gmra.mxu3 %v6032_v30  ;;  %v4031_v20 = vld [vmem:[%s5894_s4 + $0x350] sm:$0xf0]  ;;  %v5067_v23 = vld [vmem:[%s5894_s4 + $0x544] sm:$0xf] }
  0xe8   : > { %2664 = vmatpush.bf16.msrb.mxu2 %v4242_v21  ;;  %2677 = vmatpush.bf16.msrb.mxu3 %v4370_v25  ;;  %v5035_v21 = vld [vmem:[%s5894_s4 + $0x444] sm:$0xf]  ;;  %v4159_v22 = vld [vmem:[%s5894_s4 + $0x450] sm:$0xf0]  ;;  %v3906_v25 = vor.u32 %v4971_v16, %v3903_v17  ;;  %v4034_v31 = vor.u32 %v5003_v18, %v4031_v20 }
  0xe9   : > { %2639 = vmatpush.bf16.msrb.mxu0 %v3970_v37  ;;  %v4287_v24 = vld [vmem:[%s5894_s4 + $0x550] sm:$0xf0]  ;;  %v4162_v32 = vor.u32 %v5035_v21, %v4159_v22  ;;  %v4967_v33 = vld [vmem:[%s5894_s4 + $0x224] sm:$0xf] }
  0xea   : > { %2652 = vmatpush.bf16.msrb.mxu1 %v4098_v38  ;;  %v3887_v35 = vld [vmem:[%s5894_s4 + $0x230] sm:$0xf0]  ;;  %v4999_v36 = vld [vmem:[%s5894_s4 + $0x324] sm:$0xf]  ;;  %v4290_v37 = vor.u32 %v5067_v23, %v4287_v24 }
  0xeb   : > { %v4015_v38 = vld [vmem:[%s5894_s4 + $0x330] sm:$0xf0]  ;;  %v5063_v41 = vld [vmem:[%s5894_s4 + $0x524] sm:$0xf] }
  0xec   : > { %2665 = vmatpush.bf16.msrb.mxu2 %v4226_v39  ;;  %2678 = vmatpush.bf16.msrb.mxu3 %v4354_v43  ;;  %v5031_v39 = vld [vmem:[%s5894_s4 + $0x424] sm:$0xf]  ;;  %v4143_v40 = vld [vmem:[%s5894_s4 + $0x430] sm:$0xf0]  ;;  %v3890_v43 = vor.u32 %v4967_v33, %v3887_v35  ;;  %v4018_v47 = vor.u32 %v4999_v36, %v4015_v38 }
  0xed   : > { %2640 = vmatpush.bf16.msrb.mxu0 %v3954_v53  ;;  %v4271_v42 = vld [vmem:[%s5894_s4 + $0x530] sm:$0xf0]  ;;  %v4963_v44 = vld [vmem:[%s5894_s4 + $0x204] sm:$0xf]  ;;  %v4146_v48 = vor.u32 %v5031_v39, %v4143_v40 }
  0xee   : > { %2653 = vmatpush.bf16.msrb.mxu1 %v4082_v54  ;;  %v3871_v45 = vld [vmem:[%s5894_s4 + $0x210] sm:$0xf0]  ;;  %v4995_v51 = vld [vmem:[%s5894_s4 + $0x304] sm:$0xf] }
  0xef   : > { %v3999_v53 = vld [vmem:[%s5894_s4 + $0x310] sm:$0xf0]  ;;  %v5027_v54 = vld [vmem:[%s5894_s4 + $0x404] sm:$0xf]  ;;  %v3874_v62 = vor.u32 %v4963_v44, %v3871_v45 }
  0xf0   : > { %2666 = vmatpush.bf16.msrb.mxu2 %v4210_v55  ;;  %2679 = vmatpush.bf16.msrb.mxu3 %v4338_v59  ;;  %v4274_v55 = vor.u32 %v5063_v41, %v4271_v42  ;;  %v4127_v56 = vld [vmem:[%s5894_s4 + $0x410] sm:$0xf0]  ;;  %v5059_v57 = vld [vmem:[%s5894_s4 + $0x504] sm:$0xf] }
  0xf1   : > { %2641 = vmatpush.bf16.msrb.mxu0 %v3938_v1  ;;  %v4255_v58 = vld [vmem:[%s5894_s4 + $0x510] sm:$0xf0]  ;;  %v5119_v59 = vld [vmem:[%s5894_s4 + $0x6e4] sm:$0xf] }
  0xf2   : > { %2654 = vmatpush.bf16.msrb.mxu1 %v4066_v2  ;;  %v4495_v60 = vld [vmem:[%s5894_s4 + $0x6f0] sm:$0xf0]  ;;  %v5151_v61 = vld [vmem:[%s5894_s4 + $0x7e4] sm:$0xf]  ;;  %v4002_v2 = vor.u32 %v4995_v51, %v3999_v53  ;;  %v4258_v6 = vor.u32 %v5059_v57, %v4255_v58 }
  0xf3   : > { %v4623_v63 = vld [vmem:[%s5894_s4 + $0x7f0] sm:$0xf0]  ;;  %v5183_v0 = vld [vmem:[%s5894_s4 + $0x8e4] sm:$0xf] }
  0xf4   : > { %2667 = vmatpush.bf16.msrb.mxu2 %v4194_v3  ;;  %2680 = vmatpush.bf16.msrb.mxu3 %v4322_v7  ;;  %v4751_v1 = vld [vmem:[%s5894_s4 + $0x8f0] sm:$0xf0]  ;;  %v4130_v3 = vor.u32 %v5027_v54, %v4127_v56  ;;  %v5215_v4 = vld [vmem:[%s5894_s4 + $0x9e4] sm:$0xf]  ;;  %v4498_v7 = vor.u32 %v5119_v59, %v4495_v60  ;;  %v4626_v8 = vor.u32 %v5151_v61, %v4623_v63 }
  0xf5   : > { %2642 = vmatpush.bf16.msrb.mxu0 %v3922_v13  ;;  %v4879_v5 = vld [vmem:[%s5894_s4 + $0x9f0] sm:$0xf0]  ;;  %v4754_v9 = vor.u32 %v5183_v0, %v4751_v1  ;;  %v5115_v10 = vld [vmem:[%s5894_s4 + $0x6c4] sm:$0xf] }
  0xf6   : > { %2655 = vmatpush.bf16.msrb.mxu1 %v4050_v14  ;;  %v4479_v11 = vld [vmem:[%s5894_s4 + $0x6d0] sm:$0xf0]  ;;  %v5147_v12 = vld [vmem:[%s5894_s4 + $0x7c4] sm:$0xf]  ;;  %v4882_v13 = vor.u32 %v5215_v4, %v4879_v5 }
  0xf7   : > { %v4607_v14 = vld [vmem:[%s5894_s4 + $0x7d0] sm:$0xf0]  ;;  %v5211_v17 = vld [vmem:[%s5894_s4 + $0x9c4] sm:$0xf] }
  0xf8   : > { %2668 = vmatpush.bf16.msrb.mxu2 %v4178_v15  ;;  %2681 = vmatpush.bf16.msrb.mxu3 %v4306_v19  ;;  %v5179_v15 = vld [vmem:[%s5894_s4 + $0x8c4] sm:$0xf]  ;;  %v4735_v16 = vld [vmem:[%s5894_s4 + $0x8d0] sm:$0xf0]  ;;  %v4482_v19 = vor.u32 %v5115_v10, %v4479_v11  ;;  %v4610_v20 = vor.u32 %v5147_v12, %v4607_v14 }
  0xf9   : > { %2643 = vmatpush.bf16.msrb.mxu0 %v3906_v25  ;;  %v4863_v18 = vld [vmem:[%s5894_s4 + $0x9d0] sm:$0xf0]  ;;  %v4738_v21 = vor.u32 %v5179_v15, %v4735_v16  ;;  %v5111_v22 = vld [vmem:[%s5894_s4 + $0x6a4] sm:$0xf] }
  0xfa   : > { %2656 = vmatpush.bf16.msrb.mxu1 %v4034_v31  ;;  %v4463_v23 = vld [vmem:[%s5894_s4 + $0x6b0] sm:$0xf0]  ;;  %v5143_v24 = vld [vmem:[%s5894_s4 + $0x7a4] sm:$0xf]  ;;  %v4866_v25 = vor.u32 %v5211_v17, %v4863_v18 }
  0xfb   : > { %v4591_v31 = vld [vmem:[%s5894_s4 + $0x7b0] sm:$0xf0]  ;;  %v5207_v35 = vld [vmem:[%s5894_s4 + $0x9a4] sm:$0xf] }
  0xfc   : > { %2669 = vmatpush.bf16.msrb.mxu2 %v4162_v32  ;;  %2682 = vmatpush.bf16.msrb.mxu3 %v4290_v37  ;;  %v5175_v32 = vld [vmem:[%s5894_s4 + $0x8a4] sm:$0xf]  ;;  %v4719_v33 = vld [vmem:[%s5894_s4 + $0x8b0] sm:$0xf0]  ;;  %v4466_v37 = vor.u32 %v5111_v22, %v4463_v23  ;;  %v4594_v38 = vor.u32 %v5143_v24, %v4591_v31 }
  0xfd   : > { %2644 = vmatpush.bf16.msrb.mxu0 %v3890_v43  ;;  %v4847_v36 = vld [vmem:[%s5894_s4 + $0x9b0] sm:$0xf0]  ;;  %v4722_v39 = vor.u32 %v5175_v32, %v4719_v33  ;;  %v5107_v40 = vld [vmem:[%s5894_s4 + $0x684] sm:$0xf] }
  0xfe   : > { %2657 = vmatpush.bf16.msrb.mxu1 %v4018_v47  ;;  %v4447_v41 = vld [vmem:[%s5894_s4 + $0x690] sm:$0xf0]  ;;  %v5139_v42 = vld [vmem:[%s5894_s4 + $0x784] sm:$0xf]  ;;  %v4850_v43 = vor.u32 %v5207_v35, %v4847_v36 }
  0xff   : > { %v4575_v44 = vld [vmem:[%s5894_s4 + $0x790] sm:$0xf0]  ;;  %v5171_v45 = vld [vmem:[%s5894_s4 + $0x884] sm:$0xf]  ;;  %v4450_v53 = vor.u32 %v5107_v40, %v4447_v41 }
 0x100   : > { %2670 = vmatpush.bf16.msrb.mxu2 %v4146_v48  ;;  %2683 = vmatpush.bf16.msrb.mxu3 %v4274_v55  ;;  %v4703_v47 = vld [vmem:[%s5894_s4 + $0x890] sm:$0xf0]  ;;  %v5203_v48 = vld [vmem:[%s5894_s4 + $0x984] sm:$0xf]  ;;  %v4578_v54 = vor.u32 %v5139_v42, %v4575_v44  ;;  %v4930_v44 = vld [vmem:[%s5894_s4 + $0xf4] sm:$0xf0] }
 0x101   : > { %2645 = vmatpush.bf16.msrb.mxu0 %v3874_v62  ;;  %v4831_v51 = vld [vmem:[%s5894_s4 + $0x990] sm:$0xf0]  ;;  %v4706_v55 = vor.u32 %v5171_v45, %v4703_v47  ;;  %v5103_v56 = vld [vmem:[%s5894_s4 + $0x664] sm:$0xf]  ;;  %v3861_v45 = vld [vmem:[%s5894_s4 + $0x1e8] sm:$0xf] }
 0x102   : > { %2658 = vmatpush.bf16.msrb.mxu1 %v4002_v2  ;;  %v4431_v57 = vld [vmem:[%s5894_s4 + $0x670] sm:$0xf0]  ;;  %v5135_v58 = vld [vmem:[%s5894_s4 + $0x764] sm:$0xf]  ;;  %v4834_v59 = vor.u32 %v5203_v48, %v4831_v51  ;;  %v4962_v48 = vld [vmem:[%s5894_s4 + $0x1f4] sm:$0xf0] }
 0x103   : > { %v4559_v60 = vld [vmem:[%s5894_s4 + $0x770] sm:$0xf0]  ;;  %v5167_v61 = vld [vmem:[%s5894_s4 + $0x864] sm:$0xf]  ;;  %v4434_v1 = vor.u32 %v5103_v56, %v4431_v57  ;;  %v3989_v51 = vld [vmem:[%s5894_s4 + $0x2e8] sm:$0xf] }
 0x104   : > { %2671 = vmatpush.bf16.msrb.mxu2 %v4130_v3  ;;  %2684 = vmatpush.bf16.msrb.mxu3 %v4258_v6  ;;  %v4687_v62 = vld [vmem:[%s5894_s4 + $0x870] sm:$0xf0]  ;;  %v5199_v63 = vld [vmem:[%s5894_s4 + $0x964] sm:$0xf]  ;;  %v4562_v2 = vor.u32 %v5135_v58, %v4559_v60  ;;  %v4117_v56 = vld [vmem:[%s5894_s4 + $0x3e8] sm:$0xf]  ;;  %v3862_v60 = vor.u32 %v4962_v48, %v3861_v45 }
 0x105   : > { %2690 = vmatpush.bf16.msra.mxu0 %v4498_v7  ;;  %2659 = vmatmul.bf16.vlgmr.msrb.gmra.mxu1 %v6028_v27  ;;  %v4815_v0 = vld [vmem:[%s5894_s4 + $0x970] sm:$0xf0]  ;;  %v4690_v3 = vor.u32 %v5167_v61, %v4687_v62  ;;  %v5099_v4 = vld [vmem:[%s5894_s4 + $0x644] sm:$0xf]  ;;  %v5026_v57 = vld [vmem:[%s5894_s4 + $0x3f4] sm:$0xf0] }
 0x106   : > { %2703 = vmatpush.bf16.msra.mxu1 %v4626_v8  ;;  %2646 = vmatmul.bf16.vlgmr.msrb.gmra.mxu0 %v6026_v26  ;;  %v4415_v5 = vld [vmem:[%s5894_s4 + $0x650] sm:$0xf0]  ;;  %v5131_v6 = vld [vmem:[%s5894_s4 + $0x744] sm:$0xf]  ;;  %v4818_v7 = vor.u32 %v5199_v63, %v4815_v0  ;;  %v3717_v62 = vld [vmem:[%s5894_s4 + $0xc8] sm:$0xf] }
 0x107   : > { %2672 = vmatmul.bf16.vlgmr.msrb.gmra.mxu2 %v6090_v49  ;;  %2685 = vmatmul.bf16.vlgmr.msrb.gmra.mxu3 %v6094_v52  ;;  %v4543_v8 = vld [vmem:[%s5894_s4 + $0x750] sm:$0xf0]  ;;  %v5195_v11 = vld [vmem:[%s5894_s4 + $0x944] sm:$0xf]  ;;  %v4926_v63 = vld [vmem:[%s5894_s4 + $0xd4] sm:$0xf0] }
 0x108   : > { %2716 = vmatpush.bf16.msra.mxu2 %v4754_v9  ;;  %2729 = vmatpush.bf16.msra.mxu3 %v4882_v13  ;;  %v5163_v9 = vld [vmem:[%s5894_s4 + $0x844] sm:$0xf]  ;;  %v4671_v10 = vld [vmem:[%s5894_s4 + $0x850] sm:$0xf0]  ;;  %v4418_v13 = vor.u32 %v5099_v4, %v4415_v5  ;;  %v4546_v14 = vor.u32 %v5131_v6, %v4543_v8  ;;  %v3845_v0 = vld [vmem:[%s5894_s4 + $0x1c8] sm:$0xf] }
 0x109   : > { %2691 = vmatpush.bf16.msra.mxu0 %v4482_v19  ;;  %v4799_v12 = vld [vmem:[%s5894_s4 + $0x950] sm:$0xf0]  ;;  %v4674_v15 = vor.u32 %v5163_v9, %v4671_v10  ;;  %v5095_v16 = vld [vmem:[%s5894_s4 + $0x624] sm:$0xf]  ;;  %v4990_v4 = vld [vmem:[%s5894_s4 + $0x2d4] sm:$0xf0] }
 0x10a   : > { %2704 = vmatpush.bf16.msra.mxu1 %v4610_v20  ;;  %v4399_v17 = vld [vmem:[%s5894_s4 + $0x630] sm:$0xf0]  ;;  %v5127_v18 = vld [vmem:[%s5894_s4 + $0x724] sm:$0xf]  ;;  %v4802_v19 = vor.u32 %v5195_v11, %v4799_v12  ;;  %v4101_v5 = vld [vmem:[%s5894_s4 + $0x3c8] sm:$0xf] }
 0x10b   : > { %v4527_v20 = vld [vmem:[%s5894_s4 + $0x730] sm:$0xf0]  ;;  %v5191_v23 = vld [vmem:[%s5894_s4 + $0x924] sm:$0xf]  ;;  %v5022_v6 = vld [vmem:[%s5894_s4 + $0x3d4] sm:$0xf0] }
 0x10c   : > { %2717 = vmatpush.bf16.msra.mxu2 %v4738_v21  ;;  %2730 = vmatpush.bf16.msra.mxu3 %v4866_v25  ;;  %v5159_v21 = vld [vmem:[%s5894_s4 + $0x824] sm:$0xf]  ;;  %v4655_v22 = vld [vmem:[%s5894_s4 + $0x830] sm:$0xf0]  ;;  %v4402_v25 = vor.u32 %v5095_v16, %v4399_v17  ;;  %v4530_v33 = vor.u32 %v5127_v18, %v4527_v20  ;;  %v3701_v10 = vld [vmem:[%s5894_s4 + $0xa8] sm:$0xf] }
 0x10d   : > { %2692 = vmatpush.bf16.msra.mxu0 %v4466_v37  ;;  %v4783_v24 = vld [vmem:[%s5894_s4 + $0x930] sm:$0xf0]  ;;  %v5091_v31 = vld [vmem:[%s5894_s4 + $0x604] sm:$0xf]  ;;  %v4658_v35 = vor.u32 %v5159_v21, %v4655_v22  ;;  %v4922_v11 = vld [vmem:[%s5894_s4 + $0xb4] sm:$0xf0] }
 0x10e   : > { %2705 = vmatpush.bf16.msra.mxu1 %v4594_v38  ;;  %v4383_v32 = vld [vmem:[%s5894_s4 + $0x610] sm:$0xf0]  ;;  %v5123_v36 = vld [vmem:[%s5894_s4 + $0x704] sm:$0xf]  ;;  %v3829_v12 = vld [vmem:[%s5894_s4 + $0x1a8] sm:$0xf] }
 0x10f   : > { %v4511_v37 = vld [vmem:[%s5894_s4 + $0x710] sm:$0xf0]  ;;  %v5155_v38 = vld [vmem:[%s5894_s4 + $0x804] sm:$0xf]  ;;  %v4386_v47 = vor.u32 %v5091_v31, %v4383_v32  ;;  %v4986_v16 = vld [vmem:[%s5894_s4 + $0x2b4] sm:$0xf0] }
 0x110   : > { %2718 = vmatpush.bf16.msra.mxu2 %v4722_v39  ;;  %2731 = vmatpush.bf16.msra.mxu3 %v4850_v43  ;;  %v4786_v39 = vor.u32 %v5191_v23, %v4783_v24  ;;  %v4639_v40 = vld [vmem:[%s5894_s4 + $0x810] sm:$0xf0]  ;;  %v5187_v41 = vld [vmem:[%s5894_s4 + $0x904] sm:$0xf]  ;;  %v3733_v43 = vld [vmem:[%s5894_s4 + $0xe8] sm:$0xf] }
 0x111   : > { %2693 = vmatpush.bf16.msra.mxu0 %v4450_v53  ;;  %v4767_v42 = vld [vmem:[%s5894_s4 + $0x910] sm:$0xf0]  ;;  %v4994_v53 = vld [vmem:[%s5894_s4 + $0x2f4] sm:$0xf0]  ;;  %v4085_v17 = vld [vmem:[%s5894_s4 + $0x3a8] sm:$0xf] }
 0x112   : > { %2706 = vmatpush.bf16.msra.mxu1 %v4578_v54  ;;  %v4514_v54 = vor.u32 %v5123_v36, %v4511_v37  ;;  %v4770_v58 = vor.u32 %v5187_v41, %v4767_v42  ;;  %v3990_v61 = vor.u32 %v4994_v53, %v3989_v51  ;;  %v5018_v18 = vld [vmem:[%s5894_s4 + $0x3b4] sm:$0xf0]  ;;  %v3685_v22 = vld [vmem:[%s5894_s4 + $0x88] sm:$0xf] }
 0x113   : > { %v4918_v23 = vld [vmem:[%s5894_s4 + $0x94] sm:$0xf0]  ;;  %v3813_v24 = vld [vmem:[%s5894_s4 + $0x188] sm:$0xf] }
 0x114   : > { %2719 = vmatpush.bf16.msra.mxu2 %v4706_v55  ;;  %2732 = vmatpush.bf16.msra.mxu3 %v4834_v59  ;;  %v4642_v55 = vor.u32 %v5155_v38, %v4639_v40  ;;  %v3734_v59 = vor.u32 %v4930_v44, %v3733_v43  ;;  %v4950_v31 = vld [vmem:[%s5894_s4 + $0x194] sm:$0xf0]  ;;  %v3941_v32 = vld [vmem:[%s5894_s4 + $0x288] sm:$0xf]  ;;  %v3686_v37 = vor.u32 %v4918_v23, %v3685_v22 }
 0x115   : > { %2694 = vmatpush.bf16.msra.mxu0 %v4434_v1  ;;  %v4118_v1 = vor.u32 %v5026_v57, %v4117_v56  ;;  %v5014_v36 = vld [vmem:[%s5894_s4 + $0x394] sm:$0xf0]  ;;  %v3814_v38 = vor.u32 %v4950_v31, %v3813_v24  ;;  %v3669_v40 = vld [vmem:[%s5894_s4 + $0x68] sm:$0xf] }
 0x116   : > { %2707 = vmatpush.bf16.msra.mxu1 %v4562_v2  ;;  %v4958_v2 = vld [vmem:[%s5894_s4 + $0x1d4] sm:$0xf0]  ;;  %v3797_v42 = vld [vmem:[%s5894_s4 + $0x168] sm:$0xf] }
 0x117   : > { %v3846_v8 = vor.u32 %v4958_v2, %v3845_v0  ;;  %v4914_v41 = vld [vmem:[%s5894_s4 + $0x74] sm:$0xf0]  ;;  %v3925_v45 = vld [vmem:[%s5894_s4 + $0x268] sm:$0xf] }
 0x118   : > { %2720 = vmatpush.bf16.msra.mxu2 %v4690_v3  ;;  %2733 = vmatpush.bf16.msra.mxu3 %v4818_v7  ;;  %v3973_v3 = vld [vmem:[%s5894_s4 + $0x2c8] sm:$0xf]  ;;  %v3718_v7 = vor.u32 %v4926_v63, %v3717_v62  ;;  %v4946_v44 = vld [vmem:[%s5894_s4 + $0x174] sm:$0xf0]  ;;  %v3670_v53 = vor.u32 %v4914_v41, %v3669_v40 }
 0x119   : > { %2695 = vmatpush.bf16.msra.mxu0 %v4418_v13  ;;  %v3974_v9 = vor.u32 %v4990_v4, %v3973_v3  ;;  %v4102_v13 = vor.u32 %v5022_v6, %v4101_v5  ;;  %v4053_v48 = vld [vmem:[%s5894_s4 + $0x368] sm:$0xf]  ;;  %v5010_v51 = vld [vmem:[%s5894_s4 + $0x374] sm:$0xf0] }
 0x11a   : > { %2708 = vmatpush.bf16.msra.mxu1 %v4546_v14  ;;  %v4954_v14 = vld [vmem:[%s5894_s4 + $0x1b4] sm:$0xf0]  ;;  %v3653_v56 = vld [vmem:[%s5894_s4 + $0x48] sm:$0xf] }
 0x11b   : > { %v3830_v20 = vor.u32 %v4954_v14, %v3829_v12  ;;  %v4910_v57 = vld [vmem:[%s5894_s4 + $0x54] sm:$0xf0]  ;;  %v4037_v63 = vld [vmem:[%s5894_s4 + $0x348] sm:$0xf] }
 0x11c   : > { %2721 = vmatpush.bf16.msra.mxu2 %v4674_v15  ;;  %2734 = vmatpush.bf16.msra.mxu3 %v4802_v19  ;;  %v3957_v15 = vld [vmem:[%s5894_s4 + $0x2a8] sm:$0xf]  ;;  %v3702_v19 = vor.u32 %v4922_v11, %v3701_v10  ;;  %v4974_v62 = vld [vmem:[%s5894_s4 + $0x254] sm:$0xf0] }
 0x11d   : > { %2696 = vmatpush.bf16.msra.mxu0 %v4402_v25  ;;  %v3958_v21 = vor.u32 %v4986_v16, %v3957_v15  ;;  %v4086_v25 = vor.u32 %v5018_v18, %v4085_v17  ;;  %v5006_v0 = vld [vmem:[%s5894_s4 + $0x354] sm:$0xf0]  ;;  %v3637_v5 = vld [vmem:[%s5894_s4 + $0x28] sm:$0xf] }
 0x11e   : > { %2709 = vmatpush.bf16.msra.mxu1 %v4530_v33  ;;  %v4982_v33 = vld [vmem:[%s5894_s4 + $0x294] sm:$0xf0]  ;;  %v3893_v11 = vld [vmem:[%s5894_s4 + $0x228] sm:$0xf] }
 0x11f   : > { %v4906_v6 = vld [vmem:[%s5894_s4 + $0x34] sm:$0xf0]  ;;  %v3621_v16 = vld [vmem:[%s5894_s4 + $0x8] sm:$0xf] }
 0x120   : > { %2722 = vmatpush.bf16.msra.mxu2 %v4658_v35  ;;  %2735 = vmatpush.bf16.msra.mxu3 %v4786_v39  ;;  %v4069_v35 = vld [vmem:[%s5894_s4 + $0x388] sm:$0xf]  ;;  %v3942_v39 = vor.u32 %v4982_v33, %v3941_v32  ;;  %v4938_v10 = vld [vmem:[%s5894_s4 + $0x134] sm:$0xf0]  ;;  %v3638_v15 = vor.u32 %v4906_v6, %v3637_v5 }
 0x121   : > { %2697 = vmatpush.bf16.msra.mxu0 %v4386_v47  ;;  %v4070_v43 = vor.u32 %v5014_v36, %v4069_v35  ;;  %v4978_v47 = vld [vmem:[%s5894_s4 + $0x274] sm:$0xf0]  ;;  %v3877_v22 = vld [vmem:[%s5894_s4 + $0x208] sm:$0xf] }
 0x122   : > { %2710 = vmatpush.bf16.msra.mxu1 %v4514_v54  ;;  %v3798_v54 = vor.u32 %v4946_v44, %v3797_v42  ;;  %v4970_v12 = vld [vmem:[%s5894_s4 + $0x234] sm:$0xf0]  ;;  %v4005_v31 = vld [vmem:[%s5894_s4 + $0x308] sm:$0xf] }
 0x123   : > { %v5002_v14 = vld [vmem:[%s5894_s4 + $0x334] sm:$0xf0]  ;;  %v4245_v35 = vld [vmem:[%s5894_s4 + $0x4e8] sm:$0xf] }
 0x124   : > { %2723 = vmatpush.bf16.msra.mxu2 %v4642_v55  ;;  %2736 = vmatpush.bf16.msra.mxu3 %v4770_v58  ;;  %v3926_v55 = vor.u32 %v4978_v47, %v3925_v45  ;;  %v3781_v58 = vld [vmem:[%s5894_s4 + $0x148] sm:$0xf]  ;;  %v4902_v17 = vld [vmem:[%s5894_s4 + $0x14] sm:$0xf0] }
 0x125   : > { %2742 = vmatpush.bf16.msrb.mxu0 %v3734_v59  ;;  %2711 = vmatmul.bf16.vlgmr.msra.gmra.mxu1 %v6092_v50  ;;  %v4054_v59 = vor.u32 %v5010_v51, %v4053_v48  ;;  %v4998_v32 = vld [vmem:[%s5894_s4 + $0x314] sm:$0xf0]  ;;  %v4501_v40 = vld [vmem:[%s5894_s4 + $0x6e8] sm:$0xf] }
 0x126   : > { %2755 = vmatpush.bf16.msrb.mxu1 %v3862_v60  ;;  %2698 = vmatmul.bf16.vlgmr.msra.gmra.mxu0 %v6086_v46  ;;  %v4942_v60 = vld [vmem:[%s5894_s4 + $0x154] sm:$0xf0]  ;;  %v4629_v45 = vld [vmem:[%s5894_s4 + $0x7e8] sm:$0xf]  ;;  %v4006_v51 = vor.u32 %v4998_v32, %v4005_v31 }
 0x127   : > { %2724 = vmatmul.bf16.vlgmr.msra.gmra.mxu2 %v6160_v28  ;;  %2737 = vmatmul.bf16.vlgmr.msra.gmra.mxu3 %v6165_v34  ;;  %v3782_v3 = vor.u32 %v4942_v60, %v3781_v58  ;;  %v5058_v36 = vld [vmem:[%s5894_s4 + $0x4f4] sm:$0xf0]  ;;  %v4357_v58 = vld [vmem:[%s5894_s4 + $0x5c8] sm:$0xf] }
 0x128   : > { %2768 = vmatpush.bf16.msrb.mxu2 %v3990_v61  ;;  %2781 = vmatpush.bf16.msrb.mxu3 %v4118_v1  ;;  %v3909_v61 = vld [vmem:[%s5894_s4 + $0x248] sm:$0xf]  ;;  %v3654_v1 = vor.u32 %v4910_v57, %v3653_v56  ;;  %v6358_v23 = vpop.f32.mrf.mxu2  ;;  %v5122_v41 = vld [vmem:[%s5894_s4 + $0x6f4] sm:$0xf0] }
 0x129   : > { %2743 = vmatpush.bf16.msrb.mxu0 %v3718_v7  ;;  %v3910_v4 = vor.u32 %v4974_v62, %v3909_v61  ;;  %v3765_v7 = vld [vmem:[%s5894_s4 + $0x128] sm:$0xf]  ;;  %v6363_v33 = vpop.f32.mrf.mxu3  ;;  %v5154_v47 = vld [vmem:[%s5894_s4 + $0x7f4] sm:$0xf0] }
 0x12a   : > { %2756 = vmatpush.bf16.msrb.mxu1 %v3846_v8  ;;  %v3766_v18 = vor.u32 %v4938_v10, %v3765_v7  ;;  %v4229_v56 = vld [vmem:[%s5894_s4 + $0x4c8] sm:$0xf]  ;;  %v5054_v57 = vld [vmem:[%s5894_s4 + $0x4d4] sm:$0xf0] }
 0x12b   : > { %v5086_v60 = vld [vmem:[%s5894_s4 + $0x5d4] sm:$0xf0]  ;;  %v4485_v61 = vld [vmem:[%s5894_s4 + $0x6c8] sm:$0xf] }
 0x12c   : > { %2769 = vmatpush.bf16.msrb.mxu2 %v3974_v9  ;;  %2782 = vmatpush.bf16.msrb.mxu3 %v4102_v13  ;;  %v4038_v9 = vor.u32 %v5006_v0, %v4037_v63  ;;  %v4021_v13 = vld [vmem:[%s5894_s4 + $0x328] sm:$0xf]  ;;  %v5118_v62 = vld [vmem:[%s5894_s4 + $0x6d4] sm:$0xf0]  ;;  %v4358_v5 = vor.u32 %v5086_v60, %v4357_v58 }
 0x12d   : > { %2744 = vmatpush.bf16.msrb.mxu0 %v3702_v19  ;;  %v3894_v19 = vor.u32 %v4970_v12, %v3893_v11  ;;  %v4022_v24 = vor.u32 %v5002_v14, %v4021_v13  ;;  %v4613_v63 = vld [vmem:[%s5894_s4 + $0x7c8] sm:$0xf]  ;;  %v5150_v0 = vld [vmem:[%s5894_s4 + $0x7d4] sm:$0xf0]  ;;  %v4486_v6 = vor.u32 %v5118_v62, %v4485_v61 }
 0x12e   : > { %2757 = vmatpush.bf16.msrb.mxu1 %v3830_v20  ;;  %v3749_v20 = vld [vmem:[%s5894_s4 + $0x108] sm:$0xf]  ;;  %v4614_v11 = vor.u32 %v5150_v0, %v4613_v63  ;;  %v5082_v12 = vld [vmem:[%s5894_s4 + $0x5b4] sm:$0xf0] }
 0x12f   : > { %v4213_v7 = vld [vmem:[%s5894_s4 + $0x4a8] sm:$0xf]  ;;  %v5114_v14 = vld [vmem:[%s5894_s4 + $0x6b4] sm:$0xf0] }
 0x130   : > { %2770 = vmatpush.bf16.msrb.mxu2 %v3958_v21  ;;  %2783 = vmatpush.bf16.msrb.mxu3 %v4086_v25  ;;  %v6341_v2 = vpop.f32.mrf.mxu0  ;;  %v6346_v8 = vpop.f32.mrf.mxu1  ;;  %v4934_v21 = vld [vmem:[%s5894_s4 + $0x114] sm:$0xf0]  ;;  %v4341_v10 = vld [vmem:[%s5894_s4 + $0x5a8] sm:$0xf] }
 0x131   : > { %2745 = vmatpush.bf16.msrb.mxu0 %v3686_v37  ;;  %v4966_v25 = vld [vmem:[%s5894_s4 + $0x214] sm:$0xf0]  ;;  %v4373_v37 = vld [vmem:[%s5894_s4 + $0x5e8] sm:$0xf] }
 0x132   : > { %2758 = vmatpush.bf16.msrb.mxu1 %v3814_v38  ;;  %v3622_v38 = vor.u32 %v4902_v17, %v3621_v16  ;;  %v3878_v44 = vor.u32 %v4966_v25, %v3877_v22  ;;  %v4469_v13 = vld [vmem:[%s5894_s4 + $0x6a8] sm:$0xf]  ;;  %v5146_v16 = vld [vmem:[%s5894_s4 + $0x7b4] sm:$0xf0] }
 0x133   : > { %v4325_v22 = vld [vmem:[%s5894_s4 + $0x588] sm:$0xf]  ;;  %v5078_v25 = vld [vmem:[%s5894_s4 + $0x594] sm:$0xf0] }
 0x134   : > { %2771 = vmatpush.bf16.msrb.mxu2 %v3942_v39  ;;  %2784 = vmatpush.bf16.msrb.mxu3 %v4070_v43  ;;  %v5090_v39 = vld [vmem:[%s5894_s4 + $0x5f4] sm:$0xf0]  ;;  %v3750_v43 = vor.u32 %v4934_v21, %v3749_v20  ;;  %v4197_v20 = vld [vmem:[%s5894_s4 + $0x488] sm:$0xf] }
 0x135   : > { %2746 = vmatpush.bf16.msrb.mxu0 %v3670_v53  ;;  %v4246_v53 = vor.u32 %v5058_v36, %v4245_v35  ;;  %v5046_v21 = vld [vmem:[%s5894_s4 + $0x494] sm:$0xf0]  ;;  %v4453_v31 = vld [vmem:[%s5894_s4 + $0x688] sm:$0xf] }
 0x136   : > { %2759 = vmatpush.bf16.msrb.mxu1 %v3798_v54  ;;  %v4374_v54 = vor.u32 %v5090_v39, %v4373_v37  ;;  %v5110_v32 = vld [vmem:[%s5894_s4 + $0x694] sm:$0xf0]  ;;  %v4581_v35 = vld [vmem:[%s5894_s4 + $0x788] sm:$0xf]  ;;  %v4198_v37 = vor.u32 %v5046_v21, %v4197_v20  ;;  %v4326_v39 = vor.u32 %v5078_v25, %v4325_v22 }
 0x137   : > { %v5142_v36 = vld [vmem:[%s5894_s4 + $0x794] sm:$0xf0]  ;;  %v4293_v61 = vld [vmem:[%s5894_s4 + $0x548] sm:$0xf] }
 0x138   : > { %2772 = vmatpush.bf16.msrb.mxu2 %v3926_v55  ;;  %2785 = vmatpush.bf16.msrb.mxu3 %v4054_v59  ;;  %v2493_v42 = vpop.f32.mrf.mxu0  ;;  %v2506_v48 = vpop.f32.mrf.mxu1  ;;  %v4502_v55 = vor.u32 %v5122_v41, %v4501_v40  ;;  %v4630_v59 = vor.u32 %v5154_v47, %v4629_v45  ;;  %v4454_v40 = vor.u32 %v5110_v32, %v4453_v31  ;;  %v4181_v41 = vld [vmem:[%s5894_s4 + $0x468] sm:$0xf]  ;;  %v5074_v47 = vld [vmem:[%s5894_s4 + $0x574] sm:$0xf0] }
 0x139   : > { %2747 = vmatpush.bf16.msrb.mxu0 %v3654_v1  ;;  %v2519_v1 = vpop.f32.mrf.mxu2  ;;  %v5042_v42 = vld [vmem:[%s5894_s4 + $0x474] sm:$0xf0]  ;;  %v4582_v45 = vor.u32 %v5142_v36, %v4581_v35  ;;  %v4437_v48 = vld [vmem:[%s5894_s4 + $0x668] sm:$0xf] }
 0x13a   : > { %2760 = vmatpush.bf16.msrb.mxu1 %v3782_v3  ;;  %v4230_v3 = vor.u32 %v5054_v57, %v4229_v56  ;;  %v4182_v56 = vor.u32 %v5042_v42, %v4181_v41  ;;  %v5038_v60 = vld [vmem:[%s5894_s4 + $0x454] sm:$0xf0]  ;;  %v4133_v22 = vld [vmem:[%s5894_s4 + $0x408] sm:$0xf] }
 0x13b   : > { %v5070_v0 = vld [vmem:[%s5894_s4 + $0x554] sm:$0xf0]  ;;  %v4261_v32 = vld [vmem:[%s5894_s4 + $0x508] sm:$0xf] }
 0x13c   : > { %2773 = vmatpush.bf16.msrb.mxu2 %v3910_v4  ;;  %2786 = vmatpush.bf16.msrb.mxu3 %v4038_v9  ;;  %v2532_v4 = vpop.f32.mrf.mxu3  ;;  %v5050_v9 = vld [vmem:[%s5894_s4 + $0x4b4] sm:$0xf0]  ;;  %v4389_v36 = vld [vmem:[%s5894_s4 + $0x608] sm:$0xf] }
 0x13d   : > { %2748 = vmatpush.bf16.msrb.mxu0 %v3638_v15  ;;  %v4597_v15 = vld [vmem:[%s5894_s4 + $0x7a8] sm:$0xf]  ;;  %v4214_v17 = vor.u32 %v5050_v9, %v4213_v7  ;;  %v5134_v4 = vld [vmem:[%s5894_s4 + $0x754] sm:$0xf0]  ;;  %v4294_v9 = vor.u32 %v5070_v0, %v4293_v61 }
 0x13e   : > { %2761 = vmatpush.bf16.msrb.mxu1 %v3766_v18  ;;  %v4342_v18 = vor.u32 %v5082_v12, %v4341_v10  ;;  %v5034_v12 = vld [vmem:[%s5894_s4 + $0x434] sm:$0xf0]  ;;  %v4741_v0 = vld [vmem:[%s5894_s4 + $0x8c8] sm:$0xf] }
 0x13f   : > { %v5062_v35 = vld [vmem:[%s5894_s4 + $0x514] sm:$0xf0] }
 0x140   : > { %2774 = vmatpush.bf16.msrb.mxu2 %v3894_v19  ;;  %2787 = vmatpush.bf16.msrb.mxu3 %v4022_v24  ;;  %v4470_v19 = vor.u32 %v5114_v14, %v4469_v13  ;;  %v4598_v24 = vor.u32 %v5146_v16, %v4597_v15  ;;  %v4277_v13 = vld [vmem:[%s5894_s4 + $0x528] sm:$0xf]  ;;  %v5126_v41 = vld [vmem:[%s5894_s4 + $0x714] sm:$0xf0] }
 0x141   : > { %2749 = vmatpush.bf16.msrb.mxu0 %v3622_v38  ;;  %v4405_v16 = vld [vmem:[%s5894_s4 + $0x628] sm:$0xf] }
 0x142   : > { %2762 = vmatpush.bf16.msrb.mxu1 %v3750_v43  ;;  %v4309_v43 = vld [vmem:[%s5894_s4 + $0x568] sm:$0xf] }
 0x143   : > { %v6401_v38 = vpop.f32.mrf.mxu0  ;;  %v4310_v57 = vor.u32 %v5074_v47, %v4309_v43  ;;  %v4757_v43 = vld [vmem:[%s5894_s4 + $0x8e8] sm:$0xf] }
 0x144   : > { %2775 = vmatpush.bf16.msrb.mxu2 %v3878_v44  ;;  %2788 = vmatpush.bf16.msrb.mxu3 %v4006_v51  ;;  %v5106_v51 = vld [vmem:[%s5894_s4 + $0x674] sm:$0xf0]  ;;  %v4885_v47 = vld [vmem:[%s5894_s4 + $0x9e8] sm:$0xf] }
 0x145   : > { %2794 = vmatpush.bf16.msra.mxu0 %v4246_v53  ;;  %2763 = vmatmul.bf16.vlgmr.msrb.gmra.mxu1 %v6032_v30  ;;  %v4565_v53 = vld [vmem:[%s5894_s4 + $0x768] sm:$0xf]  ;;  %v4438_v58 = vor.u32 %v5106_v51, %v4437_v48 }
 0x146   : > { %2807 = vmatpush.bf16.msra.mxu1 %v4374_v54  ;;  %2750 = vmatmul.bf16.vlgmr.msrb.gmra.mxu0 %v6030_v29  ;;  %v6406_v44 = vpop.f32.mrf.mxu1  ;;  %v5138_v54 = vld [vmem:[%s5894_s4 + $0x774] sm:$0xf0] }
 0x147   : > { %2776 = vmatmul.bf16.vlgmr.msrb.gmra.mxu2 %v6026_v26  ;;  %2789 = vmatmul.bf16.vlgmr.msrb.gmra.mxu3 %v6028_v27  ;;  %v4566_v63 = vor.u32 %v5138_v54, %v4565_v53  ;;  %v5218_v53 = vld [vmem:[%s5894_s4 + $0x9f4] sm:$0xf0]  ;;  %v4928_v54 = vld [vmem:[%s5894_s4 + $0xec] sm:$0xf] }
 0x148   : > { %2820 = vmatpush.bf16.msra.mxu2 %v4502_v55  ;;  %2833 = vmatpush.bf16.msra.mxu3 %v4630_v59  ;;  %v2505_v55 = vadd.f32 %v6346_v8, %v6341_v2  ;;  %v4165_v59 = vld [vmem:[%s5894_s4 + $0x448] sm:$0xf]  ;;  %v5102_v8 = vld [vmem:[%s5894_s4 + $0x654] sm:$0xf0]  ;;  %v4886_v61 = vor.u32 %v5218_v53, %v4885_v47  ;;  %v515_v47 = vld [vmem:[#allocation2 + $0x10] sm:$0xff] }
 0x149   : > { %2795 = vmatpush.bf16.msra.mxu0 %v4230_v3  ;;  %v4421_v2 = vld [vmem:[%s5894_s4 + $0x648] sm:$0xf] }
 0x14a   : > { %2808 = vmatpush.bf16.msra.mxu1 %v4358_v5  ;;  %v6418_v62 = vpop.f32.mrf.mxu2  ;;  %v6423_v1 = vpop.f32.mrf.mxu3  ;;  %v4549_v3 = vld [vmem:[%s5894_s4 + $0x748] sm:$0xf]  ;;  %v2518_v5 = vadd.f32 %v6358_v23, %v2505_v55  ;;  %v4422_v10 = vor.u32 %v5102_v8, %v4421_v2  ;;  %v5066_v23 = vld [vmem:[%s5894_s4 + $0x534] sm:$0xf0]  ;;  %v3735_v55 = vld [vmem:[%s5894_s4 + $0xf8] sm:$0xf0] }
 0x14b   : > { %v2545_v7 = vpop.f32.mrf.mxu0  ;;  %v4550_v15 = vor.u32 %v5134_v4, %v4549_v3  ;;  %v4278_v25 = vor.u32 %v5066_v23, %v4277_v13  ;;  %v5182_v2 = vld [vmem:[%s5894_s4 + $0x8d4] sm:$0xf0]  ;;  %v4869_v8 = vld [vmem:[%s5894_s4 + $0x9c8] sm:$0xf] }
 0x14c   : > { %2821 = vmatpush.bf16.msra.mxu2 %v4486_v6  ;;  %2834 = vmatpush.bf16.msra.mxu3 %v4614_v11  ;;  %v4166_v6 = vor.u32 %v5038_v60, %v4165_v59  ;;  %v4149_v11 = vld [vmem:[%s5894_s4 + $0x428] sm:$0xf]  ;;  %v2531_v20 = vadd.f32 %v6363_v33, %v2518_v5  ;;  %v3863_v59 = vld [vmem:[%s5894_s4 + $0x1f8] sm:$0xf0]  ;;  %v5214_v5 = vld [vmem:[%s5894_s4 + $0x9d4] sm:$0xf0] }
 0x14d   : > { %2796 = vmatpush.bf16.msra.mxu0 %v4214_v17  ;;  %v5098_v17 = vld [vmem:[%s5894_s4 + $0x634] sm:$0xf0]  ;;  %v4150_v21 = vor.u32 %v5034_v12, %v4149_v11  ;;  %v3719_v7 = vld [vmem:[%s5894_s4 + $0xd8] sm:$0xf0]  ;;  %v4742_v11 = vor.u32 %v5182_v2, %v4741_v0  ;;  %v4725_v13 = vld [vmem:[%s5894_s4 + $0x8a8] sm:$0xf] }
 0x14e   : > { %2809 = vmatpush.bf16.msra.mxu1 %v4342_v18  ;;  %v2558_v14 = vpop.f32.mrf.mxu1  ;;  %v4533_v18 = vld [vmem:[%s5894_s4 + $0x728] sm:$0xf]  ;;  %v4406_v31 = vor.u32 %v5098_v17, %v4405_v16  ;;  %v2544_v48 = vadd.f32 %v6401_v38, %v2531_v20  ;;  %v5210_v17 = vld [vmem:[%s5894_s4 + $0x9b4] sm:$0xf0]  ;;  %v4952_v20 = vld [vmem:[%s5894_s4 + $0x1ac] sm:$0xf] }
 0x14f   : > { %v5178_v14 = vld [vmem:[%s5894_s4 + $0x8b4] sm:$0xf0]  ;;  %v4693_v53 = vld [vmem:[%s5894_s4 + $0x868] sm:$0xf] }
 0x150   : > { %2822 = vmatpush.bf16.msra.mxu2 %v4470_v19  ;;  %2835 = vmatpush.bf16.msra.mxu3 %v4598_v24  ;;  %v5130_v19 = vld [vmem:[%s5894_s4 + $0x734] sm:$0xf0]  ;;  %v2557_v3 = vadd.f32 %v6406_v44, %v2544_v48  ;;  %v4870_v44 = vor.u32 %v5214_v5, %v4869_v8  ;;  %v4677_v2 = vld [vmem:[%s5894_s4 + $0x848] sm:$0xf] }
 0x151   : > { %2797 = vmatpush.bf16.msra.mxu0 %v4198_v37  ;;  %v5030_v24 = vld [vmem:[%s5894_s4 + $0x414] sm:$0xf0]  ;;  %v4534_v37 = vor.u32 %v5130_v19, %v4533_v18  ;;  %v4920_v18 = vld [vmem:[%s5894_s4 + $0xac] sm:$0xf]  ;;  %v3703_v19 = vld [vmem:[%s5894_s4 + $0xb8] sm:$0xf0] }
 0x152   : > { %2810 = vmatpush.bf16.msra.mxu1 %v4326_v39  ;;  %v2571_v33 = vpop.f32.mrf.mxu2  ;;  %v5094_v39 = vld [vmem:[%s5894_s4 + $0x614] sm:$0xf0]  ;;  %v2584_v42 = vpop.f32.mrf.mxu3  ;;  %v4134_v51 = vor.u32 %v5030_v24, %v4133_v22  ;;  %v2570_v23 = vadd.f32 %v6418_v62, %v2557_v3  ;;  %v4726_v62 = vor.u32 %v5178_v14, %v4725_v13  ;;  %v3706_v24 = vor.u32 %v4920_v18, %v3703_v19  ;;  %v4805_v5 = vld [vmem:[%s5894_s4 + $0x948] sm:$0xf] }
 0x153   : > { %v5206_v33 = vld [vmem:[%s5894_s4 + $0x994] sm:$0xf0]  ;;  %v3815_v42 = vld [vmem:[%s5894_s4 + $0x198] sm:$0xf0]  ;;  %v4661_v18 = vld [vmem:[%s5894_s4 + $0x828] sm:$0xf] }
 0x154   : > { %2823 = vmatpush.bf16.msra.mxu2 %v4454_v40  ;;  %2836 = vmatpush.bf16.msra.mxu3 %v4582_v45  ;;  %v4517_v40 = vld [vmem:[%s5894_s4 + $0x708] sm:$0xf]  ;;  %v5186_v45 = vld [vmem:[%s5894_s4 + $0x8f4] sm:$0xf0] }
 0x155   : > { %2798 = vmatpush.bf16.msra.mxu0 %v4182_v56  ;;  %v4262_v56 = vor.u32 %v5062_v35, %v4261_v32  ;;  %v4518_v38 = vor.u32 %v5126_v41, %v4517_v40  ;;  %v4758_v60 = vor.u32 %v5186_v45, %v4757_v43  ;;  %v4837_v32 = vld [vmem:[%s5894_s4 + $0x988] sm:$0xf]  ;;  %v2583_v35 = vadd.f32 %v6423_v1, %v2570_v23  ;;  %v4948_v41 = vld [vmem:[%s5894_s4 + $0x18c] sm:$0xf]  ;;  %v5162_v19 = vld [vmem:[%s5894_s4 + $0x834] sm:$0xf0] }
 0x156   : > { %2811 = vmatpush.bf16.msra.mxu1 %v4310_v57  ;;  %v4390_v57 = vor.u32 %v5094_v39, %v4389_v36  ;;  %v3687_v39 = vld [vmem:[%s5894_s4 + $0x98] sm:$0xf0]  ;;  %v4838_v48 = vor.u32 %v5206_v33, %v4837_v32  ;;  %v4662_v32 = vor.u32 %v5162_v19, %v4661_v18  ;;  %v5016_v18 = vld [vmem:[%s5894_s4 + $0x3ac] sm:$0xf] }
 0x158   : > { %2824 = vmatpush.bf16.msra.mxu2 %v4438_v58  ;;  %2837 = vmatpush.bf16.msra.mxu3 %v4566_v63  ;;  %v4960_v58 = vld [vmem:[%s5894_s4 + $0x1ec] sm:$0xf]  ;;  %v3738_v63 = vor.u32 %v4928_v54, %v3735_v55  ;;  %v5170_v54 = vld [vmem:[%s5894_s4 + $0x874] sm:$0xf0]  ;;  %v4821_v55 = vld [vmem:[%s5894_s4 + $0x968] sm:$0xf] }
 0x159   : > { %2799 = vmatpush.bf16.msra.mxu0 %v4166_v6  ;;  %v3866_v4 = vor.u32 %v4960_v58, %v3863_v59  ;;  %v4924_v6 = vld [vmem:[%s5894_s4 + $0xcc] sm:$0xf]  ;;  %v5202_v58 = vld [vmem:[%s5894_s4 + $0x974] sm:$0xf0]  ;;  %v4694_v0 = vor.u32 %v5170_v54, %v4693_v53 }
 0x15a   : > { %2812 = vmatpush.bf16.msra.mxu1 %v4294_v9  ;;  %v4956_v9 = vld [vmem:[%s5894_s4 + $0x1cc] sm:$0xf]  ;;  %v3722_v12 = vor.u32 %v4924_v6, %v3719_v7  ;;  %v4822_v8 = vor.u32 %v5202_v58, %v4821_v55  ;;  %v5198_v6 = vld [vmem:[%s5894_s4 + $0x954] sm:$0xf0]  ;;  %v4247_v58 = vld [vmem:[%s5894_s4 + $0x4f8] sm:$0xf0] }
 0x15b   : > { %v4912_v59 = vld [vmem:[%s5894_s4 + $0x6c] sm:$0xf] }
 0x15c   : > { %2825 = vmatpush.bf16.msra.mxu2 %v4422_v10  ;;  %2838 = vmatpush.bf16.msra.mxu3 %v4550_v15  ;;  %v3847_v10 = vld [vmem:[%s5894_s4 + $0x1d8] sm:$0xf0]  ;;  %v4853_v15 = vld [vmem:[%s5894_s4 + $0x9a8] sm:$0xf]  ;;  %v5024_v53 = vld [vmem:[%s5894_s4 + $0x3ec] sm:$0xf] }
 0x15d   : > { %2800 = vmatpush.bf16.msra.mxu0 %v4150_v21  ;;  %v3850_v16 = vor.u32 %v4956_v9, %v3847_v10  ;;  %v3831_v21 = vld [vmem:[%s5894_s4 + $0x1b8] sm:$0xf0]  ;;  %v4854_v22 = vor.u32 %v5210_v17, %v4853_v15  ;;  %v4908_v9 = vld [vmem:[%s5894_s4 + $0x4c] sm:$0xf] }
 0x15e   : > { %2813 = vmatpush.bf16.msra.mxu1 %v4278_v25  ;;  %v4709_v25 = vld [vmem:[%s5894_s4 + $0x888] sm:$0xf]  ;;  %v3834_v36 = vor.u32 %v4952_v20, %v3831_v21  ;;  %v3655_v10 = vld [vmem:[%s5894_s4 + $0x58] sm:$0xf0] }
 0x15f   : > { %v3658_v17 = vor.u32 %v4908_v9, %v3655_v10  ;;  %v4789_v20 = vld [vmem:[%s5894_s4 + $0x928] sm:$0xf]  ;;  %v5052_v9 = vld [vmem:[%s5894_s4 + $0x4cc] sm:$0xf]  ;;  %v4231_v10 = vld [vmem:[%s5894_s4 + $0x4d8] sm:$0xf0] }
 0x160   : > { %2826 = vmatpush.bf16.msra.mxu2 %v4406_v31  ;;  %2839 = vmatpush.bf16.msra.mxu3 %v4534_v37  ;;  %v5174_v31 = vld [vmem:[%s5894_s4 + $0x894] sm:$0xf0]  ;;  %v4916_v37 = vld [vmem:[%s5894_s4 + $0x8c] sm:$0xf] }
 0x161   : > { %2801 = vmatpush.bf16.msra.mxu0 %v4134_v51  ;;  %v4710_v45 = vor.u32 %v5174_v31, %v4709_v25  ;;  %v3690_v51 = vor.u32 %v4916_v37, %v3687_v39  ;;  %v4936_v25 = vld [vmem:[%s5894_s4 + $0x12c] sm:$0xf]  ;;  %v3767_v31 = vld [vmem:[%s5894_s4 + $0x138] sm:$0xf0]  ;;  %v4773_v39 = vld [vmem:[%s5894_s4 + $0x908] sm:$0xf] }
 0x162   : > { %2814 = vmatpush.bf16.msra.mxu1 %v4262_v56  ;;  %v2608_v1 = vpop.f32.mrf.mxu1  ;;  %v3818_v56 = vor.u32 %v4948_v41, %v3815_v42  ;;  %v4900_v41 = vld [vmem:[%s5894_s4 + $0xc] sm:$0xf]  ;;  %v3770_v42 = vor.u32 %v4936_v25, %v3767_v31 }
 0x163   : > { %v2595_v40 = vpop.f32.mrf.mxu0 }
 0x164   : > { %2827 = vmatpush.bf16.msra.mxu2 %v4390_v57  ;;  %2840 = vmatpush.bf16.msra.mxu3 %v4518_v38  ;;  %v2596_v43 = vadd.f32 %v2595_v40, %v2583_v35  ;;  %v3671_v38 = vld [vmem:[%s5894_s4 + $0x78] sm:$0xf0]  ;;  %v4645_v35 = vld [vmem:[%s5894_s4 + $0x808] sm:$0xf]  ;;  %v5190_v40 = vld [vmem:[%s5894_s4 + $0x914] sm:$0xf0] }
 0x165   : > { %2846 = vmatpush.bf16.msrb.mxu0 %v4758_v60  ;;  %2815 = vmatmul.bf16.vlgmr.msra.gmra.mxu1 %v6094_v52  ;;  %v4944_v60 = vld [vmem:[%s5894_s4 + $0x16c] sm:$0xf]  ;;  %v3674_v3 = vor.u32 %v4912_v59, %v3671_v38  ;;  %v4774_v59 = vor.u32 %v5190_v40, %v4773_v39  ;;  %v4071_v39 = vld [vmem:[%s5894_s4 + $0x398] sm:$0xf0] }
 0x166   : > { %2859 = vmatpush.bf16.msrb.mxu1 %v4886_v61  ;;  %2802 = vmatmul.bf16.vlgmr.msra.gmra.mxu0 %v6090_v49  ;;  %v2609_v57 = vadd.f32 %v2608_v1, %v2596_v43  ;;  %v3799_v61 = vld [vmem:[%s5894_s4 + $0x178] sm:$0xf0] }
 0x167   : > { %2828 = vmatmul.bf16.vlgmr.msra.gmra.mxu2 %v6086_v46  ;;  %2841 = vmatmul.bf16.vlgmr.msra.gmra.mxu3 %v6092_v50  ;;  %v3802_v7 = vor.u32 %v4944_v60, %v3799_v61  ;;  %v3623_v43 = vld [vmem:[%s5894_s4 + $0x18] sm:$0xf0]  ;;  %v5088_v60 = vld [vmem:[%s5894_s4 + $0x5ec] sm:$0xf] }
 0x168   : > { %2872 = vmatpush.bf16.msrb.mxu2 %v3738_v63  ;;  %2885 = vmatpush.bf16.msrb.mxu3 %v3866_v4  ;;  %v3002_v63 = vadd.f32 %v2609_v57, %v515_v47  ;;  %v5166_v4 = vld [vmem:[%s5894_s4 + $0x854] sm:$0xf0]  ;;  %v3751_v47 = vld [vmem:[%s5894_s4 + $0x118] sm:$0xf0]  ;;  %v5056_v57 = vld [vmem:[%s5894_s4 + $0x4ec] sm:$0xf]  ;;  %v3626_v38 = vor.u32 %v4900_v41, %v3623_v43 }
 0x169   : > { %2847 = vmatpush.bf16.msrb.mxu0 %v4742_v11  ;;  %v4678_v15 = vor.u32 %v5166_v4, %v4677_v2  ;;  %v4375_v61 = vld [vmem:[%s5894_s4 + $0x5f8] sm:$0xf0]  ;;  %v5076_v41 = vld [vmem:[%s5894_s4 + $0x58c] sm:$0xf] }
 0x16a   : > { %2860 = vmatpush.bf16.msrb.mxu1 %v4870_v44  ;;  %3006 = vst [vmem:[#allocation2 + $0x10] sm:$0xff] %v3002_v63  ;;  %v6499_v11 = vpop.f32.mrf.mxu2  ;;  %v4940_v44 = vld [vmem:[%s5894_s4 + $0x14c] sm:$0xf]  ;;  %v6503_v13 = vpop.f32.mrf.mxu3  ;;  %v3975_v4 = vld [vmem:[%s5894_s4 + $0x2d8] sm:$0xf0] }
 0x16b   : > { %v2597_v14 = vpop.f32.mrf.mxu0  ;;  %v2610_v23 = vpop.f32.mrf.mxu1  ;;  %v4199_v40 = vld [vmem:[%s5894_s4 + $0x498] sm:$0xf0] }
 0x16c   : > { %2873 = vmatpush.bf16.msrb.mxu2 %v3722_v12  ;;  %2886 = vmatpush.bf16.msrb.mxu3 %v3850_v16  ;;  %v3783_v12 = vld [vmem:[%s5894_s4 + $0x158] sm:$0xf0]  ;;  %v4806_v16 = vor.u32 %v5198_v6, %v4805_v5  ;;  %v5020_v5 = vld [vmem:[%s5894_s4 + $0x3cc] sm:$0xf]  ;;  %v4378_v6 = vor.u32 %v5088_v60, %v4375_v61  ;;  %v4234_v23 = vor.u32 %v5052_v9, %v4231_v10 }
 0x16d   : > { %2848 = vmatpush.bf16.msrb.mxu0 %v4726_v62  ;;  %v3786_v21 = vor.u32 %v4940_v44, %v3783_v12  ;;  %v5194_v62 = vld [vmem:[%s5894_s4 + $0x934] sm:$0xf0]  ;;  %v5084_v44 = vld [vmem:[%s5894_s4 + $0x5cc] sm:$0xf]  ;;  %v4359_v12 = vld [vmem:[%s5894_s4 + $0x5d8] sm:$0xf0] }
 0x16e   : > { %2861 = vmatpush.bf16.msrb.mxu1 %v4854_v22  ;;  %v4904_v22 = vld [vmem:[%s5894_s4 + $0x2c] sm:$0xf]  ;;  %v4790_v33 = vor.u32 %v5194_v62, %v4789_v20  ;;  %v4362_v19 = vor.u32 %v5084_v44, %v4359_v12  ;;  %v4087_v20 = vld [vmem:[%s5894_s4 + $0x3b8] sm:$0xf0] }
 0x16f   : > { %v4215_v62 = vld [vmem:[%s5894_s4 + $0x4b8] sm:$0xf0]  ;;  %v4090_v31 = vor.u32 %v5016_v18, %v4087_v20  ;;  %v5068_v9 = vld [vmem:[%s5894_s4 + $0x54c] sm:$0xf] }
 0x170   : > { %2874 = vmatpush.bf16.msrb.mxu2 %v3706_v24  ;;  %2887 = vmatpush.bf16.msrb.mxu3 %v3834_v36  ;;  %v3639_v24 = vld [vmem:[%s5894_s4 + $0x38] sm:$0xf0]  ;;  %v5158_v36 = vld [vmem:[%s5894_s4 + $0x814] sm:$0xf0] }
 0x171   : > { %2849 = vmatpush.bf16.msrb.mxu0 %v4710_v45  ;;  %v3642_v37 = vor.u32 %v4904_v22, %v3639_v24  ;;  %v4932_v45 = vld [vmem:[%s5894_s4 + $0x10c] sm:$0xf]  ;;  %v4646_v55 = vor.u32 %v5158_v36, %v4645_v35  ;;  %v4343_v24 = vld [vmem:[%s5894_s4 + $0x5b8] sm:$0xf0] }
 0x172   : > { %2862 = vmatpush.bf16.msrb.mxu1 %v4838_v48  ;;  %v2623_v1 = vpop.f32.mrf.mxu2  ;;  %v4992_v48 = vld [vmem:[%s5894_s4 + $0x2ec] sm:$0xf]  ;;  %v2636_v54 = vpop.f32.mrf.mxu3  ;;  %v3754_v63 = vor.u32 %v4932_v45, %v3751_v47  ;;  %v3943_v36 = vld [vmem:[%s5894_s4 + $0x298] sm:$0xf0] }
 0x173   : > { %v5080_v22 = vld [vmem:[%s5894_s4 + $0x5ac] sm:$0xf]  ;;  %v4295_v10 = vld [vmem:[%s5894_s4 + $0x558] sm:$0xf0] }
 0x174   : > { %2875 = vmatpush.bf16.msrb.mxu2 %v3690_v51  ;;  %2888 = vmatpush.bf16.msrb.mxu3 %v3818_v56  ;;  %v3991_v51 = vld [vmem:[%s5894_s4 + $0x2f8] sm:$0xf0]  ;;  %v4980_v35 = vld [vmem:[%s5894_s4 + $0x28c] sm:$0xf] }
 0x175   : > { %2850 = vmatpush.bf16.msrb.mxu0 %v4694_v0  ;;  %v4119_v56 = vld [vmem:[%s5894_s4 + $0x3f8] sm:$0xf0]  ;;  %v3994_v0 = vor.u32 %v4992_v48, %v3991_v51  ;;  %v4976_v1 = vld [vmem:[%s5894_s4 + $0x26c] sm:$0xf] }
 0x176   : > { %2863 = vmatpush.bf16.msrb.mxu1 %v4822_v8  ;;  %v4122_v2 = vor.u32 %v5024_v53, %v4119_v56  ;;  %v4250_v8 = vor.u32 %v5056_v57, %v4247_v58  ;;  %v3927_v48 = vld [vmem:[%s5894_s4 + $0x278] sm:$0xf0]  ;;  %v5008_v51 = vld [vmem:[%s5894_s4 + $0x36c] sm:$0xf] }
 0x177   : > { %v5040_v56 = vld [vmem:[%s5894_s4 + $0x46c] sm:$0xf]  ;;  %v4183_v57 = vld [vmem:[%s5894_s4 + $0x478] sm:$0xf0] }
 0x178   : > { %2876 = vmatpush.bf16.msrb.mxu2 %v3674_v3  ;;  %2889 = vmatpush.bf16.msrb.mxu3 %v3802_v7  ;;  %v4988_v3 = vld [vmem:[%s5894_s4 + $0x2cc] sm:$0xf]  ;;  %v4103_v7 = vld [vmem:[%s5894_s4 + $0x3d8] sm:$0xf0]  ;;  %v4186_v61 = vor.u32 %v5040_v56, %v4183_v57 }
 0x179   : > { %2851 = vmatpush.bf16.msrb.mxu0 %v4678_v15  ;;  %v3978_v14 = vor.u32 %v4988_v3, %v3975_v4  ;;  %v4106_v15 = vor.u32 %v5020_v5, %v4103_v7  ;;  %v5072_v58 = vld [vmem:[%s5894_s4 + $0x56c] sm:$0xf]  ;;  %v4039_v4 = vld [vmem:[%s5894_s4 + $0x358] sm:$0xf0] }
 0x17a   : > { %2864 = vmatpush.bf16.msrb.mxu1 %v4806_v16  ;;  %v4984_v16 = vld [vmem:[%s5894_s4 + $0x2ac] sm:$0xf]  ;;  %v4023_v20 = vld [vmem:[%s5894_s4 + $0x338] sm:$0xf0] }
 0x17b   : > { %v5036_v5 = vld [vmem:[%s5894_s4 + $0x44c] sm:$0xf] }
 0x17c   : > { %2877 = vmatpush.bf16.msrb.mxu2 %v3658_v17  ;;  %2890 = vmatpush.bf16.msrb.mxu3 %v3786_v21  ;;  %v3959_v17 = vld [vmem:[%s5894_s4 + $0x2b8] sm:$0xf0]  ;;  %v5048_v21 = vld [vmem:[%s5894_s4 + $0x4ac] sm:$0xf] }
 0x17d   : > { %2852 = vmatpush.bf16.msrb.mxu0 %v4662_v32  ;;  %v3962_v25 = vor.u32 %v4984_v16, %v3959_v17  ;;  %v4218_v32 = vor.u32 %v5048_v21, %v4215_v62  ;;  %v3895_v16 = vld [vmem:[%s5894_s4 + $0x238] sm:$0xf0]  ;;  %v5000_v17 = vld [vmem:[%s5894_s4 + $0x32c] sm:$0xf] }
 0x17e   : > { %2865 = vmatpush.bf16.msrb.mxu1 %v4790_v33  ;;  %v5012_v33 = vld [vmem:[%s5894_s4 + $0x38c] sm:$0xf]  ;;  %v4151_v62 = vld [vmem:[%s5894_s4 + $0x438] sm:$0xf0] }
 0x17f   : > { %v4074_v45 = vor.u32 %v5012_v33, %v4071_v39  ;;  %v5032_v21 = vld [vmem:[%s5894_s4 + $0x42c] sm:$0xf]  ;;  %v4007_v39 = vld [vmem:[%s5894_s4 + $0x318] sm:$0xf0] }
 0x180   : > { %2878 = vmatpush.bf16.msrb.mxu2 %v3642_v37  ;;  %2891 = vmatpush.bf16.msrb.mxu3 %v3770_v42  ;;  %v4346_v37 = vor.u32 %v5080_v22, %v4343_v24  ;;  %v4327_v42 = vld [vmem:[%s5894_s4 + $0x598] sm:$0xf0]  ;;  %v5064_v22 = vld [vmem:[%s5894_s4 + $0x52c] sm:$0xf]  ;;  %v4154_v33 = vor.u32 %v5032_v21, %v4151_v62 }
 0x181   : > { %2853 = vmatpush.bf16.msrb.mxu0 %v4646_v55  ;;  %v4330_v54 = vor.u32 %v5076_v41, %v4327_v42  ;;  %v4055_v55 = vld [vmem:[%s5894_s4 + $0x378] sm:$0xf0] }
 0x182   : > { %2866 = vmatpush.bf16.msrb.mxu1 %v4774_v59  ;;  %v6562_v53 = vpop.f32.mrf.mxu1  ;;  %v4311_v59 = vld [vmem:[%s5894_s4 + $0x578] sm:$0xf0]  ;;  %v4058_v60 = vor.u32 %v5008_v51, %v4055_v55 }
 0x183   : > { %v6557_v43 = vpop.f32.mrf.mxu0  ;;  %v4314_v3 = vor.u32 %v5072_v58, %v4311_v59  ;;  %v4279_v24 = vld [vmem:[%s5894_s4 + $0x538] sm:$0xf0]  ;;  %v5216_v59 = vld [vmem:[%s5894_s4 + $0x9ec] sm:$0xf] }
 0x184   : > { %2879 = vmatpush.bf16.msrb.mxu2 %v3626_v38  ;;  %2892 = vmatpush.bf16.msrb.mxu3 %v3754_v63  ;;  %v3930_v38 = vor.u32 %v4976_v1, %v3927_v48  ;;  %v4972_v63 = vld [vmem:[%s5894_s4 + $0x24c] sm:$0xf]  ;;  %v4282_v41 = vor.u32 %v5064_v22, %v4279_v24  ;;  %v4135_v42 = vld [vmem:[%s5894_s4 + $0x418] sm:$0xf0] }
 0x185   : > { %2898 = vmatpush.bf16.msra.mxu0 %v3994_v0  ;;  %2867 = vmatmul.bf16.vlgmr.msrb.gmra.mxu1 %v6165_v34  ;;  %v3911_v0 = vld [vmem:[%s5894_s4 + $0x258] sm:$0xf0]  ;;  %v5152_v1 = vld [vmem:[%s5894_s4 + $0x7ec] sm:$0xf] }
 0x186   : > { %2911 = vmatpush.bf16.msra.mxu1 %v4122_v2  ;;  %2854 = vmatmul.bf16.vlgmr.msrb.gmra.mxu0 %v6160_v28  ;;  %v5004_v2 = vld [vmem:[%s5894_s4 + $0x34c] sm:$0xf]  ;;  %v3914_v44 = vor.u32 %v4972_v63, %v3911_v0  ;;  %v4631_v51 = vld [vmem:[%s5894_s4 + $0x7f8] sm:$0xf0] }
 0x187   : > { %2880 = vmatmul.bf16.vlgmr.msrb.gmra.mxu2 %v6030_v29  ;;  %2893 = vmatmul.bf16.vlgmr.msrb.gmra.mxu3 %v6032_v30  ;;  %v5044_v29 = vld [vmem:[%s5894_s4 + $0x48c] sm:$0xf]  ;;  %v3946_v30 = vor.u32 %v4980_v35, %v3943_v36  ;;  %v2635_v35 = vadd.f32 %v6503_v13, %v6499_v11  ;;  %v4026_v36 = vor.u32 %v5000_v17, %v4023_v20  ;;  %v4759_v55 = vld [vmem:[%s5894_s4 + $0x8f8] sm:$0xf0] }
 0x188   : > { %2924 = vmatpush.bf16.msra.mxu2 %v4250_v8  ;;  %2937 = vmatpush.bf16.msra.mxu3 %v4378_v6  ;;  %v4202_v47 = vor.u32 %v5044_v29, %v4199_v40  ;;  %v4167_v6 = vld [vmem:[%s5894_s4 + $0x458] sm:$0xf0]  ;;  %v5028_v29 = vld [vmem:[%s5894_s4 + $0x40c] sm:$0xf]  ;;  %v4634_v63 = vor.u32 %v5152_v1, %v4631_v51 }
 0x189   : > { %2899 = vmatpush.bf16.msra.mxu0 %v3978_v14  ;;  %v4042_v14 = vor.u32 %v5004_v2, %v4039_v4  ;;  %v5120_v13 = vld [vmem:[%s5894_s4 + $0x6ec] sm:$0xf]  ;;  %v2648_v56 = vadd.f32 %v6557_v43, %v2635_v35  ;;  %v4138_v58 = vor.u32 %v5028_v29, %v4135_v42  ;;  %v4471_v17 = vld [vmem:[%s5894_s4 + $0x6b8] sm:$0xf0] }
 0x18a   : > { %2912 = vmatpush.bf16.msra.mxu1 %v4106_v15  ;;  %v6572_v8 = vpop.f32.mrf.mxu2  ;;  %v6577_v7 = vpop.f32.mrf.mxu3  ;;  %v4170_v15 = vor.u32 %v5036_v5, %v4167_v6  ;;  %v5116_v2 = vld [vmem:[%s5894_s4 + $0x6cc] sm:$0xf]  ;;  %v4615_v5 = vld [vmem:[%s5894_s4 + $0x7d8] sm:$0xf0] }
 0x18b   : > { %v2649_v12 = vpop.f32.mrf.mxu0  ;;  %v2662_v18 = vpop.f32.mrf.mxu1  ;;  %v5148_v4 = vld [vmem:[%s5894_s4 + $0x7cc] sm:$0xf]  ;;  %v4727_v21 = vld [vmem:[%s5894_s4 + $0x8b8] sm:$0xf0] }
 0x18c   : > { %2925 = vmatpush.bf16.msra.mxu2 %v4234_v23  ;;  %2938 = vmatpush.bf16.msra.mxu3 %v4362_v19  ;;  %v4968_v23 = vld [vmem:[%s5894_s4 + $0x22c] sm:$0xf]  ;;  %v4298_v19 = vor.u32 %v5068_v9, %v4295_v10  ;;  %v4743_v9 = vld [vmem:[%s5894_s4 + $0x8d8] sm:$0xf0]  ;;  %v2661_v10 = vadd.f32 %v6562_v53, %v2648_v56 }
 0x18d   : > { %2900 = vmatpush.bf16.msra.mxu0 %v3962_v25  ;;  %v3898_v25 = vor.u32 %v4968_v23, %v3895_v16  ;;  %v5180_v6 = vld [vmem:[%s5894_s4 + $0x8cc] sm:$0xf]  ;;  %v4871_v12 = vld [vmem:[%s5894_s4 + $0x9d8] sm:$0xf0] }
 0x18e   : > { %2913 = vmatpush.bf16.msra.mxu1 %v4090_v31  ;;  %v4964_v31 = vld [vmem:[%s5894_s4 + $0x20c] sm:$0xf]  ;;  %v4746_v23 = vor.u32 %v5180_v6, %v4743_v9  ;;  %v2674_v62 = vadd.f32 %v6572_v8, %v2661_v10  ;;  %v4855_v24 = vld [vmem:[%s5894_s4 + $0x9b8] sm:$0xf0] }
 0x18f   : > { %v5112_v16 = vld [vmem:[%s5894_s4 + $0x6ac] sm:$0xf]  ;;  %v4839_v29 = vld [vmem:[%s5894_s4 + $0x998] sm:$0xf0] }
 0x190   : > { %2926 = vmatpush.bf16.msra.mxu2 %v4218_v32  ;;  %2939 = vmatpush.bf16.msra.mxu3 %v4346_v37  ;;  %v3879_v32 = vld [vmem:[%s5894_s4 + $0x218] sm:$0xf0]  ;;  %v4996_v37 = vld [vmem:[%s5894_s4 + $0x30c] sm:$0xf] }
 0x191   : > { %2901 = vmatpush.bf16.msra.mxu0 %v3946_v30  ;;  %v5060_v30 = vld [vmem:[%s5894_s4 + $0x50c] sm:$0xf]  ;;  %v3882_v48 = vor.u32 %v4964_v31, %v3879_v32  ;;  %v4010_v57 = vor.u32 %v4996_v37, %v4007_v39  ;;  %v4455_v32 = vld [vmem:[%s5894_s4 + $0x698] sm:$0xf0]  ;;  %v2687_v37 = vadd.f32 %v6577_v7, %v2674_v62 }
 0x192   : > { %2914 = vmatpush.bf16.msra.mxu1 %v4074_v45  ;;  %v2675_v40 = vpop.f32.mrf.mxu2  ;;  %v4263_v45 = vld [vmem:[%s5894_s4 + $0x518] sm:$0xf0]  ;;  %v2688_v11 = vpop.f32.mrf.mxu3  ;;  %v5144_v18 = vld [vmem:[%s5894_s4 + $0x7ac] sm:$0xf] }
 0x193   : > { %v5176_v20 = vld [vmem:[%s5894_s4 + $0x8ac] sm:$0xf]  ;;  %v4567_v1 = vld [vmem:[%s5894_s4 + $0x778] sm:$0xf0] }
 0x194   : > { %2927 = vmatpush.bf16.msra.mxu2 %v4202_v47  ;;  %2940 = vmatpush.bf16.msra.mxu3 %v4330_v54  ;;  %v4503_v47 = vld [vmem:[%s5894_s4 + $0x6f8] sm:$0xf0]  ;;  %v5184_v54 = vld [vmem:[%s5894_s4 + $0x8ec] sm:$0xf]  ;;  %v4730_v31 = vor.u32 %v5176_v20, %v4727_v21 }
 0x195   : > { %2902 = vmatpush.bf16.msra.mxu0 %v3930_v38  ;;  %v4887_v38 = vld [vmem:[%s5894_s4 + $0x9f8] sm:$0xf0]  ;;  %v4762_v0 = vor.u32 %v5184_v54, %v4759_v55  ;;  %v5208_v22 = vld [vmem:[%s5894_s4 + $0x9ac] sm:$0xf] }
 0x196   : > { %2915 = vmatpush.bf16.msra.mxu1 %v4058_v60  ;;  %v4266_v60 = vor.u32 %v5060_v30, %v4263_v45  ;;  %v4890_v43 = vor.u32 %v5216_v59, %v4887_v38  ;;  %v5108_v8 = vld [vmem:[%s5894_s4 + $0x68c] sm:$0xf]  ;;  %v4858_v35 = vor.u32 %v5208_v22, %v4855_v24  ;;  %v4695_v51 = vld [vmem:[%s5894_s4 + $0x878] sm:$0xf0] }
 0x197   : > { %v4458_v40 = vor.u32 %v5108_v8, %v4455_v32  ;;  %v5104_v11 = vld [vmem:[%s5894_s4 + $0x66c] sm:$0xf]  ;;  %v4823_v55 = vld [vmem:[%s5894_s4 + $0x978] sm:$0xf0] }
 0x198   : > { %2928 = vmatpush.bf16.msra.mxu2 %v4186_v61  ;;  %2941 = vmatpush.bf16.msra.mxu3 %v4314_v3  ;;  %v4506_v61 = vor.u32 %v5120_v13, %v4503_v47  ;;  %v4487_v3 = vld [vmem:[%s5894_s4 + $0x6d8] sm:$0xf0]  ;;  %v5136_v7 = vld [vmem:[%s5894_s4 + $0x76c] sm:$0xf] }
 0x199   : > { %2903 = vmatpush.bf16.msra.mxu0 %v3914_v44  ;;  %v5212_v44 = vld [vmem:[%s5894_s4 + $0x9cc] sm:$0xf]  ;;  %v4439_v13 = vld [vmem:[%s5894_s4 + $0x678] sm:$0xf0] }
 0x19a   : > { %2916 = vmatpush.bf16.msra.mxu1 %v4042_v14  ;;  %v4490_v14 = vor.u32 %v5116_v2, %v4487_v3  ;;  %v4874_v53 = vor.u32 %v5212_v44, %v4871_v12  ;;  %v5200_v54 = vld [vmem:[%s5894_s4 + $0x96c] sm:$0xf]  ;;  %v4442_v56 = vor.u32 %v5104_v11, %v4439_v13  ;;  %v4551_v2 = vld [vmem:[%s5894_s4 + $0x758] sm:$0xf0]  ;;  %v516_v44 = vld [vmem:[#allocation2] sm:$0xff] }
 0x19b   : > { %v5100_v38 = vld [vmem:[%s5894_s4 + $0x64c] sm:$0xf]  ;;  %v4807_v9 = vld [vmem:[%s5894_s4 + $0x958] sm:$0xf0] }
 0x19c   : > { %2929 = vmatpush.bf16.msra.mxu2 %v4170_v15  ;;  %2942 = vmatpush.bf16.msra.mxu3 %v4298_v19  ;;  %v4618_v15 = vor.u32 %v5148_v4, %v4615_v5  ;;  %v4599_v19 = vld [vmem:[%s5894_s4 + $0x7b8] sm:$0xf0]  ;;  %v5164_v3 = vld [vmem:[%s5894_s4 + $0x84c] sm:$0xf] }
 0x19d   : > { %2904 = vmatpush.bf16.msra.mxu0 %v3898_v25  ;;  %v4474_v25 = vor.u32 %v5112_v16, %v4471_v17  ;;  %v4679_v4 = vld [vmem:[%s5894_s4 + $0x858] sm:$0xf0]  ;;  %v5196_v6 = vld [vmem:[%s5894_s4 + $0x94c] sm:$0xf] }
 0x19e   : > { %2917 = vmatpush.bf16.msra.mxu1 %v4026_v36  ;;  %v5172_v36 = vld [vmem:[%s5894_s4 + $0x88c] sm:$0xf]  ;;  %v4682_v16 = vor.u32 %v5164_v3, %v4679_v4  ;;  %v4535_v20 = vld [vmem:[%s5894_s4 + $0x738] sm:$0xf0] }
 0x19f   : > { %v5096_v17 = vld [vmem:[%s5894_s4 + $0x62c] sm:$0xf]  ;;  %v4663_v62 = vld [vmem:[%s5894_s4 + $0x838] sm:$0xf0] }
 0x1a0   : > { %2930 = vmatpush.bf16.msra.mxu2 %v4154_v33  ;;  %2943 = vmatpush.bf16.msra.mxu3 %v4282_v41  ;;  %v4711_v33 = vld [vmem:[%s5894_s4 + $0x898] sm:$0xf0]  ;;  %v5160_v21 = vld [vmem:[%s5894_s4 + $0x82c] sm:$0xf] }
 0x1a1   : > { %2905 = vmatpush.bf16.msra.mxu0 %v3882_v48  ;;  %v4714_v45 = vor.u32 %v5172_v36, %v4711_v33  ;;  %v5168_v48 = vld [vmem:[%s5894_s4 + $0x86c] sm:$0xf]  ;;  %v4666_v32 = vor.u32 %v5160_v21, %v4663_v62  ;;  %v4519_v36 = vld [vmem:[%s5894_s4 + $0x718] sm:$0xf0] }
 0x1a2   : > { %2918 = vmatpush.bf16.msra.mxu1 %v4010_v57  ;;  %v2712_v41 = vpop.f32.mrf.mxu1  ;;  %v4698_v59 = vor.u32 %v5168_v48, %v4695_v51  ;;  %v5192_v24 = vld [vmem:[%s5894_s4 + $0x92c] sm:$0xf] }
 0x1a3   : > { %v2699_v39 = vpop.f32.mrf.mxu0  ;;  %v5156_v33 = vld [vmem:[%s5894_s4 + $0x80c] sm:$0xf] }
 0x1a4   : > { %2931 = vmatpush.bf16.msra.mxu2 %v4138_v58  ;;  %2944 = vmatpush.bf16.msra.mxu3 %v4266_v60  ;;  %v2700_v42 = vadd.f32 %v2699_v39, %v2687_v37  ;;  %v4570_v58 = vor.u32 %v5136_v7, %v4567_v1  ;;  %v4423_v60 = vld [vmem:[%s5894_s4 + $0x658] sm:$0xf0] }
 0x1a5   : > { %2950 = vmatpush.bf16.msrb.mxu0 %v4506_v61  ;;  %2919 = vmatmul.bf16.vlgmr.msra.gmra.mxu1 %v6028_v27  ;;  %v5204_v27 = vld [vmem:[%s5894_s4 + $0x98c] sm:$0xf]  ;;  %v4426_v12 = vor.u32 %v5100_v38, %v4423_v60  ;;  %v4647_v37 = vld [vmem:[%s5894_s4 + $0x818] sm:$0xf0] }
 0x1a6   : > { %2963 = vmatpush.bf16.msrb.mxu1 %v4634_v63  ;;  %2906 = vmatmul.bf16.vlgmr.msra.gmra.mxu0 %v6026_v26  ;;  %v5140_v26 = vld [vmem:[%s5894_s4 + $0x78c] sm:$0xf]  ;;  %v4842_v47 = vor.u32 %v5204_v27, %v4839_v29  ;;  %v2713_v57 = vadd.f32 %v2712_v41, %v2700_v42  ;;  %v4826_v63 = vor.u32 %v5200_v54, %v4823_v55  ;;  %v4775_v29 = vld [vmem:[%s5894_s4 + $0x918] sm:$0xf0] }
 0x1a7   : > { %2932 = vmatmul.bf16.vlgmr.msra.gmra.mxu2 %v6090_v49  ;;  %2945 = vmatmul.bf16.vlgmr.msra.gmra.mxu3 %v6094_v52  ;;  %v4602_v49 = vor.u32 %v5144_v18, %v4599_v19  ;;  %v4583_v52 = vld [vmem:[%s5894_s4 + $0x798] sm:$0xf0]  ;;  %v5132_v61 = vld [vmem:[%s5894_s4 + $0x74c] sm:$0xf]  ;;  %v4810_v19 = vor.u32 %v5196_v6, %v4807_v9 }
 0x1a8   : > { %2976 = vmatpush.bf16.msrb.mxu2 %v4762_v0  ;;  %2989 = vmatpush.bf16.msrb.mxu3 %v4890_v43  ;;  %v4586_v30 = vor.u32 %v5140_v26, %v4583_v52  ;;  %v4407_v18 = vld [vmem:[%s5894_s4 + $0x638] sm:$0xf0]  ;;  %v5188_v27 = vld [vmem:[%s5894_s4 + $0x90c] sm:$0xf] }
 0x1a9   : > { %2951 = vmatpush.bf16.msrb.mxu0 %v4490_v14  ;;  %v4391_v26 = vld [vmem:[%s5894_s4 + $0x618] sm:$0xf0] }
 0x1aa   : > { %2964 = vmatpush.bf16.msrb.mxu1 %v4618_v15  ;;  %v2725_v0 = vpop.f32.mrf.mxu2  ;;  %v2738_v5 = vpop.f32.mrf.mxu3 }
 0x1ab   : > { %v2726_v43 = vadd.f32 %v2725_v0, %v2713_v57  ;;  %v2701_v10 = vpop.f32.mrf.mxu0  ;;  %v2714_v14 = vpop.f32.mrf.mxu1 }
 0x1ac   : > { %2977 = vmatpush.bf16.msrb.mxu2 %v4746_v23  ;;  %2990 = vmatpush.bf16.msrb.mxu3 %v4874_v53  ;;  %v4554_v23 = vor.u32 %v5132_v61, %v4551_v2  ;;  %v5128_v53 = vld [vmem:[%s5894_s4 + $0x72c] sm:$0xf] }
 0x1ad   : > { %2952 = vmatpush.bf16.msrb.mxu0 %v4474_v25  ;;  %v2739_v15 = vadd.f32 %v2738_v5, %v2726_v43  ;;  %v4791_v25 = vld [vmem:[%s5894_s4 + $0x938] sm:$0xf0]  ;;  %v4538_v8 = vor.u32 %v5128_v53, %v4535_v20  ;;  %v517_v5 = vld [vmem:[#allocation2 + $0x18] sm:$0xff] }
 0x1ae   : > { %2965 = vmatpush.bf16.msrb.mxu1 %v4602_v49  ;;  %v4410_v49 = vor.u32 %v5096_v17, %v4407_v18  ;;  %v4794_v52 = vor.u32 %v5192_v24, %v4791_v25 }
 0x1af   : > { %v3003_v22 = vadd.f32 %v2739_v15, %v516_v44 }
 0x1b0   : > { %2978 = vmatpush.bf16.msrb.mxu2 %v4730_v31  ;;  %2991 = vmatpush.bf16.msrb.mxu3 %v4858_v35  ;;  %v5092_v31 = vld [vmem:[%s5894_s4 + $0x60c] sm:$0xf] }
 0x1b1   : > { %2953 = vmatpush.bf16.msrb.mxu0 %v4458_v40  ;;  %3007 = vst [vmem:[#allocation2] sm:$0xff] %v3003_v22  ;;  %v5124_v35 = vld [vmem:[%s5894_s4 + $0x70c] sm:$0xf]  ;;  %v4394_v41 = vor.u32 %v5092_v31, %v4391_v26 }
 0x1b2   : > { %2966 = vmatpush.bf16.msrb.mxu1 %v4586_v30  ;;  %v2727_v39 = vpop.f32.mrf.mxu2  ;;  %v2740_v40 = vpop.f32.mrf.mxu3  ;;  %v4522_v42 = vor.u32 %v5124_v35, %v4519_v36  ;;  %v4650_v30 = vor.u32 %v5156_v33, %v4647_v37 }
 0x1b3   : > { %v518_v39 = vld [vmem:[#allocation2 + $0x8] sm:$0xff] }
 0x1b4   : > { %2979 = vmatpush.bf16.msrb.mxu2 %v4714_v45  ;;  %2992 = vmatpush.bf16.msrb.mxu3 %v4842_v47  ;;  %v4778_v45 = vor.u32 %v5188_v27, %v4775_v29 }
 0x1b5   : > { %2954 = vmatpush.bf16.msrb.mxu0 %v4442_v56 }
 0x1b6   : > { %2967 = vmatpush.bf16.msrb.mxu1 %v4570_v58 }
 0x1b8   : > { %2980 = vmatpush.bf16.msrb.mxu2 %v4698_v59  ;;  %2993 = vmatpush.bf16.msrb.mxu3 %v4826_v63 }
 0x1b9   : > { %2955 = vmatpush.bf16.msrb.mxu0 %v4426_v12 }
 0x1ba   : > { %2968 = vmatpush.bf16.msrb.mxu1 %v4554_v23 }
 0x1bc   : > { %2981 = vmatpush.bf16.msrb.mxu2 %v4682_v16  ;;  %2994 = vmatpush.bf16.msrb.mxu3 %v4810_v19 }
 0x1bd   : > { %2956 = vmatpush.bf16.msrb.mxu0 %v4410_v49 }
 0x1be   : > { %2969 = vmatpush.bf16.msrb.mxu1 %v4538_v8 }
 0x1c0   : > { %2982 = vmatpush.bf16.msrb.mxu2 %v4666_v32  ;;  %2995 = vmatpush.bf16.msrb.mxu3 %v4794_v52 }
 0x1c1   : > { %2957 = vmatpush.bf16.msrb.mxu0 %v4394_v41 }
 0x1c2   : > { %2970 = vmatpush.bf16.msrb.mxu1 %v4522_v42  ;;  %v2764_v13 = vpop.f32.mrf.mxu1 }
 0x1c3   : > { %v2751_v11 = vpop.f32.mrf.mxu0 }
 0x1c4   : > { %2983 = vmatpush.bf16.msrb.mxu2 %v4650_v30  ;;  %2996 = vmatpush.bf16.msrb.mxu3 %v4778_v45  ;;  %v2765_v57 = vadd.f32 %v2764_v13, %v2751_v11 }
 0x1c5   : > { %2958 = vmatmul.bf16.vlgmr.msrb.gmra.mxu0 %v6086_v46  ;;  %2971 = vmatmul.bf16.vlgmr.msrb.gmra.mxu1 %v6092_v50 }
 0x1c7   : > { %2984 = vmatmul.bf16.vlgmr.msrb.gmra.mxu2 %v6160_v28  ;;  %2997 = vmatmul.bf16.vlgmr.msrb.gmra.mxu3 %v6165_v34 }
 0x1ca   : > { %v2777_v7 = vpop.f32.mrf.mxu2  ;;  %v2790_v47 = vpop.f32.mrf.mxu3 }
 0x1cb   : > { %v2753_v1 = vpop.f32.mrf.mxu0  ;;  %v2766_v48 = vpop.f32.mrf.mxu1  ;;  %v2778_v59 = vadd.f32 %v2777_v7, %v2765_v57 }
 0x1cd   : > { %v2791_v28 = vadd.f32 %v2790_v47, %v2778_v59 }
 0x1d2   : > { %v2779_v51 = vpop.f32.mrf.mxu2  ;;  %v2792_v54 = vpop.f32.mrf.mxu3 }
 0x1e2   : > { %v2816_v56 = vpop.f32.mrf.mxu1 }
 0x1e3   : > { %v2803_v55 = vpop.f32.mrf.mxu0 }
 0x1e4   : > { %v2804_v61 = vadd.f32 %v2803_v55, %v2791_v28 }
 0x1e6   : > { %v2817_v63 = vadd.f32 %v2816_v56, %v2804_v61 }
 0x1ea   : > { %v2829_v58 = vpop.f32.mrf.mxu2  ;;  %v2842_v46 = vpop.f32.mrf.mxu3 }
 0x1eb   : > { %v2805_v50 = vpop.f32.mrf.mxu0  ;;  %v2818_v38 = vpop.f32.mrf.mxu1  ;;  %v2830_v0 = vadd.f32 %v2829_v58, %v2817_v63 }
 0x1ed   : > { %v2843_v2 = vadd.f32 %v2842_v46, %v2830_v0 }
 0x1f2   : > { %v2831_v60 = vpop.f32.mrf.mxu2  ;;  %v2844_v34 = vpop.f32.mrf.mxu3 }
 0x202   : > { %v2868_v43 = vpop.f32.mrf.mxu1 }
 0x203   : > { %v2855_v3 = vpop.f32.mrf.mxu0 }
 0x204   : > { %v2856_v4 = vadd.f32 %v2855_v3, %v2843_v2 }
 0x206   : > { %v2869_v6 = vadd.f32 %v2868_v43, %v2856_v4 }
 0x208   : > { %v3004_v9 = vadd.f32 %v2869_v6, %v517_v5 }
 0x20a   : > { %3008 = vst [vmem:[#allocation2 + $0x18] sm:$0xff] %v3004_v9  ;;  %v2881_v10 = vpop.f32.mrf.mxu2  ;;  %v2894_v44 = vpop.f32.mrf.mxu3 }
 0x20b   : > { %v2857_v12 = vpop.f32.mrf.mxu0  ;;  %v2870_v14 = vpop.f32.mrf.mxu1  ;;  %v2895_v21 = vadd.f32 %v2894_v44, %v2881_v10 }
 0x212   : > { %v2883_v15 = vpop.f32.mrf.mxu2  ;;  %v2896_v23 = vpop.f32.mrf.mxu3 }
 0x222   : > { %v2920_v17 = vpop.f32.mrf.mxu1 }
 0x223   : > { %v2907_v16 = vpop.f32.mrf.mxu0 }
 0x224   : > { %v2908_v24 = vadd.f32 %v2907_v16, %v2895_v21 }
 0x226   : > { %v2921_v25 = vadd.f32 %v2920_v17, %v2908_v24 }
 0x22a   : > { %v2933_v18 = vpop.f32.mrf.mxu2  ;;  %v2946_v53 = vpop.f32.mrf.mxu3 }
 0x22b   : > { %v2909_v19 = vpop.f32.mrf.mxu0  ;;  %v2922_v20 = vpop.f32.mrf.mxu1  ;;  %v2934_v49 = vadd.f32 %v2933_v18, %v2921_v25 }
 0x22d   : > { %v2947_v31 = vadd.f32 %v2946_v53, %v2934_v49 }
 0x232   : > { %v2935_v62 = vpop.f32.mrf.mxu2  ;;  %v2948_v22 = vpop.f32.mrf.mxu3 }
 0x242   : > { %v2959_v8 = vpop.f32.mrf.mxu0  ;;  %v2972_v32 = vpop.f32.mrf.mxu1 }
 0x243   : > { %v2960_v26 = vadd.f32 %v2959_v8, %v2947_v31 }
 0x245   : > { %v2973_v35 = vadd.f32 %v2972_v32, %v2960_v26 }
 0x24a   : > { %v2985_v52 = vpop.f32.mrf.mxu2  ;;  %v2998_v33 = vpop.f32.mrf.mxu3 }
 0x24b   : > { %v2986_v36 = vadd.f32 %v2985_v52, %v2973_v35  ;;  %v2961_v37 = vpop.f32.mrf.mxu0  ;;  %v2974_v27 = vpop.f32.mrf.mxu1 }
 0x24d   : > { %v2999_v29 = vadd.f32 %v2998_v33, %v2986_v36 }
 0x24e   : > { %3013 = sbr.rel (%p4891_p13) target bundleno = 800 (0x320), region = 92 }
 0x24f   : > { %v3005_v40 = vadd.f32 %v2999_v29, %v518_v39 }
 0x251   : > { %3009 = vst [vmem:[#allocation2 + $0x8] sm:$0xff] %v3005_v40 }
 0x252   : > { %v2987_v41 = vpop.f32.mrf.mxu2  ;;  %v3000_v42 = vpop.f32.mrf.mxu3 }
 0x253   : > { %v3118_v30 = vld [vmem:[%s5907_s9 + $0x2f0] sm:$0xff]  ;;  %v3116_v45 = vld [vmem:[%s5907_s9 + $0x2e0] sm:$0xff]  ;;  %v3119_v41 = vld [vmem:[%s5907_s9 + $0x2f8] sm:$0xff] }
 0x254   : > { %v3150_v11 = vld [vmem:[%s5907_s9 + $0x3f0] sm:$0xff]  ;;  %3192 = vmatpush.msra.mxu2 %v3118_v30  ;;  %v3148_v1 = vld [vmem:[%s5907_s9 + $0x3e0] sm:$0xff]  ;;  %v3151_v42 = vld [vmem:[%s5907_s9 + $0x3f8] sm:$0xff] }
 0x255   : > { %3212 = vmatpush.msra.mxu3 %v3150_v11  ;;  %v3054_v13 = vld [vmem:[%s5907_s9 + $0xf0] sm:$0xff]  ;;  %v3052_v48 = vld [vmem:[%s5907_s9 + $0xe0] sm:$0xff]  ;;  %v3117_v11 = vld [vmem:[%s5907_s9 + $0x2e8] sm:$0xff] }
 0x256   : > { %v3086_v7 = vld [vmem:[%s5907_s9 + $0x1f0] sm:$0xff]  ;;  %3152 = vmatpush.msra.mxu0 %v3054_v13  ;;  %v3084_v51 = vld [vmem:[%s5907_s9 + $0x1e0] sm:$0xff]  ;;  %3193 = vmatpush.msra.mxu2 %v3116_v45  ;;  %v3055_v13 = vld [vmem:[%s5907_s9 + $0xf8] sm:$0xff] }
 0x257   : > { %v3114_v47 = vld [vmem:[%s5907_s9 + $0x2d0] sm:$0xff]  ;;  %3172 = vmatpush.msra.mxu1 %v3086_v7  ;;  %3213 = vmatpush.msra.mxu3 %v3148_v1  ;;  %v3112_v56 = vld [vmem:[%s5907_s9 + $0x2c0] sm:$0xff]  ;;  %v3087_v7 = vld [vmem:[%s5907_s9 + $0x1f8] sm:$0xff] }
 0x258   : > { %v3146_v54 = vld [vmem:[%s5907_s9 + $0x3d0] sm:$0xff]  ;;  %3153 = vmatpush.msra.mxu0 %v3052_v48  ;;  %v3144_v58 = vld [vmem:[%s5907_s9 + $0x3c0] sm:$0xff]  ;;  %3194 = vmatpush.msra.mxu2 %v3114_v47  ;;  %v3149_v47 = vld [vmem:[%s5907_s9 + $0x3e8] sm:$0xff] }
 0x259   : > { %v3050_v55 = vld [vmem:[%s5907_s9 + $0xd0] sm:$0xff]  ;;  %3173 = vmatpush.msra.mxu1 %v3084_v51  ;;  %3214 = vmatpush.msra.mxu3 %v3146_v54  ;;  %v3048_v46 = vld [vmem:[%s5907_s9 + $0xc0] sm:$0xff]  ;;  %v3115_v1 = vld [vmem:[%s5907_s9 + $0x2d8] sm:$0xff] }
 0x25a   : > { %v3082_v57 = vld [vmem:[%s5907_s9 + $0x1d0] sm:$0xff]  ;;  %v3080_v59 = vld [vmem:[%s5907_s9 + $0x1c0] sm:$0xff]  ;;  %3154 = vmatpush.msra.mxu0 %v3050_v55  ;;  %3195 = vmatpush.msra.mxu2 %v3112_v56  ;;  %v3053_v48 = vld [vmem:[%s5907_s9 + $0xe8] sm:$0xff] }
 0x25b   : > { %3174 = vmatpush.msra.mxu1 %v3082_v57  ;;  %v3110_v50 = vld [vmem:[%s5907_s9 + $0x2b0] sm:$0xff]  ;;  %3215 = vmatpush.msra.mxu3 %v3144_v58  ;;  %v3108_v34 = vld [vmem:[%s5907_s9 + $0x2a0] sm:$0xff]  ;;  %v3085_v51 = vld [vmem:[%s5907_s9 + $0x1e8] sm:$0xff] }
 0x25c   : > { %v3142_v38 = vld [vmem:[%s5907_s9 + $0x3b0] sm:$0xff]  ;;  %3155 = vmatpush.msra.mxu0 %v3048_v46  ;;  %v3140_v61 = vld [vmem:[%s5907_s9 + $0x3a0] sm:$0xff]  ;;  %3196 = vmatpush.msra.mxu2 %v3110_v50  ;;  %v3147_v54 = vld [vmem:[%s5907_s9 + $0x3d8] sm:$0xff] }
 0x25d   : > { %v3046_v28 = vld [vmem:[%s5907_s9 + $0xb0] sm:$0xff]  ;;  %3175 = vmatpush.msra.mxu1 %v3080_v59  ;;  %3216 = vmatpush.msra.mxu3 %v3142_v38  ;;  %v3044_v63 = vld [vmem:[%s5907_s9 + $0xa0] sm:$0xff]  ;;  %v3113_v55 = vld [vmem:[%s5907_s9 + $0x2c8] sm:$0xff] }
 0x25e   : > { %v3078_v60 = vld [vmem:[%s5907_s9 + $0x1b0] sm:$0xff]  ;;  %v3076_v0 = vld [vmem:[%s5907_s9 + $0x1a0] sm:$0xff]  ;;  %3156 = vmatpush.msra.mxu0 %v3046_v28  ;;  %3197 = vmatpush.msra.mxu2 %v3108_v34  ;;  %v3051_v56 = vld [vmem:[%s5907_s9 + $0xd8] sm:$0xff] }
 0x25f   : > { %3176 = vmatpush.msra.mxu1 %v3078_v60  ;;  %v3106_v2 = vld [vmem:[%s5907_s9 + $0x290] sm:$0xff]  ;;  %3217 = vmatpush.msra.mxu3 %v3140_v61  ;;  %v3104_v5 = vld [vmem:[%s5907_s9 + $0x280] sm:$0xff]  ;;  %v3083_v57 = vld [vmem:[%s5907_s9 + $0x1d8] sm:$0xff] }
 0x260   : > { %v3138_v3 = vld [vmem:[%s5907_s9 + $0x390] sm:$0xff]  ;;  %3157 = vmatpush.msra.mxu0 %v3044_v63  ;;  %v3136_v6 = vld [vmem:[%s5907_s9 + $0x380] sm:$0xff]  ;;  %3198 = vmatpush.msra.mxu2 %v3106_v2  ;;  %v3145_v58 = vld [vmem:[%s5907_s9 + $0x3c8] sm:$0xff] }
 0x261   : > { %v3042_v4 = vld [vmem:[%s5907_s9 + $0x90] sm:$0xff]  ;;  %3177 = vmatpush.msra.mxu1 %v3076_v0  ;;  %3218 = vmatpush.msra.mxu3 %v3138_v3  ;;  %v3040_v9 = vld [vmem:[%s5907_s9 + $0x80] sm:$0xff]  ;;  %v3111_v46 = vld [vmem:[%s5907_s9 + $0x2b8] sm:$0xff] }
 0x262   : > { %v3074_v43 = vld [vmem:[%s5907_s9 + $0x190] sm:$0xff]  ;;  %v3072_v10 = vld [vmem:[%s5907_s9 + $0x180] sm:$0xff]  ;;  %3158 = vmatpush.msra.mxu0 %v3042_v4  ;;  %3199 = vmatpush.msra.mxu2 %v3104_v5  ;;  %v3049_v59 = vld [vmem:[%s5907_s9 + $0xc8] sm:$0xff] }
 0x263   : > { %3178 = vmatpush.msra.mxu1 %v3074_v43  ;;  %v3102_v44 = vld [vmem:[%s5907_s9 + $0x270] sm:$0xff]  ;;  %3219 = vmatpush.msra.mxu3 %v3136_v6  ;;  %v3100_v23 = vld [vmem:[%s5907_s9 + $0x260] sm:$0xff]  ;;  %v3081_v50 = vld [vmem:[%s5907_s9 + $0x1c8] sm:$0xff] }
 0x264   : > { %v3134_v12 = vld [vmem:[%s5907_s9 + $0x370] sm:$0xff]  ;;  %3159 = vmatpush.msra.mxu0 %v3040_v9  ;;  %v3132_v16 = vld [vmem:[%s5907_s9 + $0x360] sm:$0xff]  ;;  %3200 = vmatpush.msra.mxu2 %v3102_v44  ;;  %v3143_v38 = vld [vmem:[%s5907_s9 + $0x3b8] sm:$0xff] }
 0x265   : > { %v3038_v14 = vld [vmem:[%s5907_s9 + $0x70] sm:$0xff]  ;;  %3179 = vmatpush.msra.mxu1 %v3072_v10  ;;  %3220 = vmatpush.msra.mxu3 %v3134_v12  ;;  %v3036_v17 = vld [vmem:[%s5907_s9 + $0x60] sm:$0xff]  ;;  %v3109_v28 = vld [vmem:[%s5907_s9 + $0x2a8] sm:$0xff] }
 0x266   : > { %v3070_v15 = vld [vmem:[%s5907_s9 + $0x170] sm:$0xff]  ;;  %v3068_v18 = vld [vmem:[%s5907_s9 + $0x160] sm:$0xff]  ;;  %3160 = vmatpush.msra.mxu0 %v3038_v14  ;;  %3201 = vmatpush.msra.mxu2 %v3100_v23  ;;  %v3047_v60 = vld [vmem:[%s5907_s9 + $0xb8] sm:$0xff] }
 0x267   : > { %3180 = vmatpush.msra.mxu1 %v3070_v15  ;;  %v3098_v53 = vld [vmem:[%s5907_s9 + $0x250] sm:$0xff]  ;;  %3221 = vmatpush.msra.mxu3 %v3132_v16  ;;  %v3096_v62 = vld [vmem:[%s5907_s9 + $0x240] sm:$0xff]  ;;  %v3079_v34 = vld [vmem:[%s5907_s9 + $0x1b8] sm:$0xff] }
 0x268   : > { %v3130_v19 = vld [vmem:[%s5907_s9 + $0x350] sm:$0xff]  ;;  %3161 = vmatpush.msra.mxu0 %v3036_v17  ;;  %v3128_v22 = vld [vmem:[%s5907_s9 + $0x340] sm:$0xff]  ;;  %3202 = vmatpush.msra.mxu2 %v3098_v53  ;;  %v3141_v61 = vld [vmem:[%s5907_s9 + $0x3a8] sm:$0xff] }
 0x269   : > { %v3034_v20 = vld [vmem:[%s5907_s9 + $0x50] sm:$0xff]  ;;  %3181 = vmatpush.msra.mxu1 %v3068_v18  ;;  %3222 = vmatpush.msra.mxu3 %v3130_v19  ;;  %v3032_v24 = vld [vmem:[%s5907_s9 + $0x40] sm:$0xff]  ;;  %v3107_v63 = vld [vmem:[%s5907_s9 + $0x298] sm:$0xff] }
 0x26a   : > { %v3066_v21 = vld [vmem:[%s5907_s9 + $0x150] sm:$0xff]  ;;  %v3064_v25 = vld [vmem:[%s5907_s9 + $0x140] sm:$0xff]  ;;  %3162 = vmatpush.msra.mxu0 %v3034_v20  ;;  %3203 = vmatpush.msra.mxu2 %v3096_v62  ;;  %v3045_v0 = vld [vmem:[%s5907_s9 + $0xa8] sm:$0xff] }
 0x26b   : > { %3182 = vmatpush.msra.mxu1 %v3066_v21  ;;  %v3094_v49 = vld [vmem:[%s5907_s9 + $0x230] sm:$0xff]  ;;  %3223 = vmatpush.msra.mxu3 %v3128_v22  ;;  %v3092_v26 = vld [vmem:[%s5907_s9 + $0x220] sm:$0xff]  ;;  %v3077_v2 = vld [vmem:[%s5907_s9 + $0x1a8] sm:$0xff] }
 0x26c   : > { %v3126_v31 = vld [vmem:[%s5907_s9 + $0x330] sm:$0xff]  ;;  %3163 = vmatpush.msra.mxu0 %v3032_v24  ;;  %v3124_v35 = vld [vmem:[%s5907_s9 + $0x320] sm:$0xff]  ;;  %3204 = vmatpush.msra.mxu2 %v3094_v49  ;;  %v3139_v3 = vld [vmem:[%s5907_s9 + $0x398] sm:$0xff] }
 0x26d   : > { %v3030_v8 = vld [vmem:[%s5907_s9 + $0x30] sm:$0xff]  ;;  %3183 = vmatpush.msra.mxu1 %v3064_v25  ;;  %3224 = vmatpush.msra.mxu3 %v3126_v31  ;;  %v3028_v52 = vld [vmem:[%s5907_s9 + $0x20] sm:$0xff]  ;;  %v3105_v4 = vld [vmem:[%s5907_s9 + $0x288] sm:$0xff] }
 0x26e   : > { %v3062_v32 = vld [vmem:[%s5907_s9 + $0x130] sm:$0xff]  ;;  %v3060_v36 = vld [vmem:[%s5907_s9 + $0x120] sm:$0xff]  ;;  %3164 = vmatpush.msra.mxu0 %v3030_v8  ;;  %3205 = vmatpush.msra.mxu2 %v3092_v26  ;;  %v3043_v43 = vld [vmem:[%s5907_s9 + $0x98] sm:$0xff] }
 0x26f   : > { %3184 = vmatpush.msra.mxu1 %v3062_v32  ;;  %v3090_v33 = vld [vmem:[%s5907_s9 + $0x210] sm:$0xff]  ;;  %3225 = vmatpush.msra.mxu3 %v3124_v35  ;;  %v3088_v29 = vld [vmem:[%s5907_s9 + $0x200] sm:$0xff]  ;;  %v3075_v5 = vld [vmem:[%s5907_s9 + $0x198] sm:$0xff] }
 0x270   : > { %v3122_v37 = vld [vmem:[%s5907_s9 + $0x310] sm:$0xff]  ;;  %3165 = vmatpush.msra.mxu0 %v3028_v52  ;;  %v3120_v40 = vld [vmem:[%s5907_s9 + $0x300] sm:$0xff]  ;;  %3206 = vmatpush.msra.mxu2 %v3090_v33  ;;  %v3137_v6 = vld [vmem:[%s5907_s9 + $0x388] sm:$0xff] }
 0x271   : > { %v3026_v39 = vld [vmem:[%s5907_s9 + $0x10] sm:$0xff]  ;;  %3185 = vmatpush.msra.mxu1 %v3060_v36  ;;  %3226 = vmatpush.msra.mxu3 %v3122_v37  ;;  %v3024_v30 = vld [vmem:[%s5907_s9] sm:$0xff]  ;;  %v3103_v9 = vld [vmem:[%s5907_s9 + $0x278] sm:$0xff] }
 0x272   : > { %v3058_v27 = vld [vmem:[%s5907_s9 + $0x110] sm:$0xff]  ;;  %3166 = vmatpush.msra.mxu0 %v3026_v39  ;;  %v3056_v45 = vld [vmem:[%s5907_s9 + $0x100] sm:$0xff]  ;;  %3207 = vmatpush.msra.mxu2 %v3088_v29  ;;  %v3041_v10 = vld [vmem:[%s5907_s9 + $0x88] sm:$0xff] }
 0x273   : > { %3186 = vmatpush.msra.mxu1 %v3058_v27  ;;  %3227 = vmatpush.msra.mxu3 %v3120_v40  ;;  %v3073_v44 = vld [vmem:[%s5907_s9 + $0x188] sm:$0xff]  ;;  %v3135_v12 = vld [vmem:[%s5907_s9 + $0x378] sm:$0xff]  ;;  %v6779_v17 = vld [vmem:[#allocation2 + $0x18] sm:$0xff] }
 0x274   : > { %3272 = vmatpush.msrb.mxu2 %v3119_v41  ;;  %3167 = vmatpush.msra.mxu0 %v3024_v30  ;;  %v3101_v14 = vld [vmem:[%s5907_s9 + $0x268] sm:$0xff]  ;;  %v3039_v15 = vld [vmem:[%s5907_s9 + $0x78] sm:$0xff]  ;;  %v3017_v21 = vld [vmem:[#allocation2 + $0x8] sm:$0xff]  ;;  %v3020_v22 = vmax.f32 %v6779_v17, 0.0 }
 0x275   : > { %3292 = vmatpush.msrb.mxu3 %v3151_v42  ;;  %3187 = vmatpush.msra.mxu1 %v3056_v45  ;;  %v3071_v23 = vld [vmem:[%s5907_s9 + $0x178] sm:$0xff]  ;;  %v3133_v16 = vld [vmem:[%s5907_s9 + $0x368] sm:$0xff]  ;;  %v3021_v32 = vmax.f32 %v3017_v21, 0.0 }
 0x276   : > { %3273 = vmatpush.msrb.mxu2 %v3117_v11  ;;  %3232 = vmatpush.msrb.mxu0 %v3055_v13  ;;  %v3099_v18 = vld [vmem:[%s5907_s9 + $0x258] sm:$0xff]  ;;  %v3037_v53 = vld [vmem:[%s5907_s9 + $0x68] sm:$0xff] }
 0x277   : > { %3252 = vmatpush.msrb.mxu1 %v3087_v7  ;;  %3293 = vmatpush.msrb.mxu3 %v3149_v47  ;;  %v3069_v19 = vld [vmem:[%s5907_s9 + $0x168] sm:$0xff]  ;;  %v3131_v20 = vld [vmem:[%s5907_s9 + $0x358] sm:$0xff] }
 0x278   : > { %3274 = vmatpush.msrb.mxu2 %v3115_v1  ;;  %3233 = vmatpush.msrb.mxu0 %v3053_v48  ;;  %v3097_v62 = vld [vmem:[%s5907_s9 + $0x248] sm:$0xff]  ;;  %v3035_v24 = vld [vmem:[%s5907_s9 + $0x58] sm:$0xff] }
 0x279   : > { %3253 = vmatpush.msrb.mxu1 %v3085_v51  ;;  %3294 = vmatpush.msrb.mxu3 %v3147_v54  ;;  %v3067_v25 = vld [vmem:[%s5907_s9 + $0x158] sm:$0xff]  ;;  %v3129_v8 = vld [vmem:[%s5907_s9 + $0x348] sm:$0xff] }
 0x27a   : > { %3275 = vmatpush.msrb.mxu2 %v3113_v55  ;;  %3234 = vmatpush.msrb.mxu0 %v3051_v56  ;;  %v3014_v49 = vld [vmem:[#allocation2 + $0x10] sm:$0xff]  ;;  %v3015_v26 = vld [vmem:[#allocation2] sm:$0xff] }
 0x27b   : > { %3254 = vmatpush.msrb.mxu1 %v3083_v57  ;;  %3295 = vmatpush.msrb.mxu3 %v3145_v58  ;;  %v3095_v31 = vld [vmem:[%s5907_s9 + $0x238] sm:$0xff]  ;;  %v3033_v35 = vld [vmem:[%s5907_s9 + $0x48] sm:$0xff]  ;;  %v3018_v33 = vmax.f32 %v3014_v49, 0.0  ;;  %v3019_v39 = vmax.f32 %v3015_v26, 0.0 }
 0x27c   : > { %3276 = vmatpush.msrb.mxu2 %v3111_v46  ;;  %3235 = vmatpush.msrb.mxu0 %v3049_v59  ;;  %v3065_v52 = vld [vmem:[%s5907_s9 + $0x148] sm:$0xff]  ;;  %v3127_v37 = vld [vmem:[%s5907_s9 + $0x338] sm:$0xff] }
 0x27d   : > { %3255 = vmatpush.msrb.mxu1 %v3081_v50  ;;  %3296 = vmatpush.msrb.mxu3 %v3143_v38  ;;  %v3093_v36 = vld [vmem:[%s5907_s9 + $0x228] sm:$0xff]  ;;  %v3031_v27 = vld [vmem:[%s5907_s9 + $0x38] sm:$0xff] }
 0x27e   : > { %3277 = vmatpush.msrb.mxu2 %v3109_v28  ;;  %3236 = vmatpush.msrb.mxu0 %v3047_v60  ;;  %v3063_v29 = vld [vmem:[%s5907_s9 + $0x138] sm:$0xff]  ;;  %v3125_v41 = vld [vmem:[%s5907_s9 + $0x328] sm:$0xff] }
 0x27f   : > { %3256 = vmatpush.msrb.mxu1 %v3079_v34  ;;  %3297 = vmatpush.msrb.mxu3 %v3141_v61  ;;  %v3091_v40 = vld [vmem:[%s5907_s9 + $0x218] sm:$0xff]  ;;  %v3029_v42 = vld [vmem:[%s5907_s9 + $0x28] sm:$0xff] }
 0x280   : > { %3278 = vmatpush.msrb.mxu2 %v3107_v63  ;;  %3237 = vmatpush.msrb.mxu0 %v3045_v0  ;;  %v3061_v30 = vld [vmem:[%s5907_s9 + $0x128] sm:$0xff]  ;;  %v3123_v11 = vld [vmem:[%s5907_s9 + $0x318] sm:$0xff]  ;;  %v3023_v63 = vld [vmem:[#allocation3 + $0x8] sm:$0xff] }
 0x281   : > { %3257 = vmatpush.msrb.mxu1 %v3077_v2  ;;  %3298 = vmatpush.msrb.mxu3 %v3139_v3  ;;  %v3089_v45 = vld [vmem:[%s5907_s9 + $0x208] sm:$0xff]  ;;  %v3027_v13 = vld [vmem:[%s5907_s9 + $0x18] sm:$0xff] }
 0x282   : > { %3279 = vmatpush.msrb.mxu2 %v3105_v4  ;;  %3238 = vmatpush.msrb.mxu0 %v3043_v43  ;;  %v3059_v7 = vld [vmem:[%s5907_s9 + $0x118] sm:$0xff]  ;;  %v3121_v47 = vld [vmem:[%s5907_s9 + $0x308] sm:$0xff] }
 0x283   : > { %3258 = vmatpush.msrb.mxu1 %v3075_v5  ;;  %3299 = vmatpush.msrb.mxu3 %v3137_v6  ;;  %v3025_v1 = vld [vmem:[%s5907_s9 + $0x8] sm:$0xff] }
 0x284   : > { %3280 = vmatpush.msrb.mxu2 %v3103_v9  ;;  %3239 = vmatpush.msrb.mxu0 %v3041_v10  ;;  %v3057_v48 = vld [vmem:[%s5907_s9 + $0x108] sm:$0xff] }
 0x285   : > { %3259 = vmatpush.msrb.mxu1 %v3073_v44  ;;  %3300 = vmatpush.msrb.mxu3 %v3135_v12  ;;  %v3022_v46 = vld [vmem:[#allocation3] sm:$0xff] }
 0x286   : > { %3281 = vmatpush.msrb.mxu2 %v3101_v14  ;;  %3240 = vmatpush.msrb.mxu0 %v3039_v15 }
 0x287   : > { %3260 = vmatpush.msrb.mxu1 %v3071_v23  ;;  %3301 = vmatpush.msrb.mxu3 %v3133_v16 }
 0x288   : > { %3282 = vmatpush.msrb.mxu2 %v3099_v18  ;;  %3241 = vmatpush.msrb.mxu0 %v3037_v53 }
 0x289   : > { %3261 = vmatpush.msrb.mxu1 %v3069_v19  ;;  %3302 = vmatpush.msrb.mxu3 %v3131_v20 }
 0x28a   : > { %3283 = vmatpush.msrb.mxu2 %v3097_v62  ;;  %3242 = vmatpush.msrb.mxu0 %v3035_v24 }
 0x28b   : > { %3208 = vmatmul.f32.vlgmr.msra.gmra.mxu2 %v3020_v22  ;;  %3262 = vmatpush.msrb.mxu1 %v3067_v25 }
 0x28c   : > { %3284 = vmatpush.msrb.mxu2 %v3095_v31  ;;  %3303 = vmatpush.msrb.mxu3 %v3129_v8 }
 0x28d   : > { %3228 = vmatmul.f32.vlgmr.msra.gmra.mxu3 %v3021_v32  ;;  %3243 = vmatpush.msrb.mxu0 %v3033_v35 }
 0x28e   : > { %3263 = vmatpush.msrb.mxu1 %v3065_v52  ;;  %3285 = vmatpush.msrb.mxu2 %v3093_v36 }
 0x28f   : > { %3304 = vmatpush.msrb.mxu3 %v3127_v37  ;;  %3168 = vmatmul.f32.vlgmr.msra.gmra.mxu0 %v3018_v33 }
 0x290   : > { %3188 = vmatmul.f32.vlgmr.msra.gmra.mxu1 %v3019_v39  ;;  %3244 = vmatpush.msrb.mxu0 %v3031_v27 }
 0x291   : > { %3264 = vmatpush.msrb.mxu1 %v3063_v29  ;;  %3286 = vmatpush.msrb.mxu2 %v3091_v40 }
 0x292   : > { %3305 = vmatpush.msrb.mxu3 %v3125_v41  ;;  %3245 = vmatpush.msrb.mxu0 %v3029_v42 }
 0x293   : > { %3265 = vmatpush.msrb.mxu1 %v3061_v30  ;;  %3287 = vmatpush.msrb.mxu2 %v3089_v45 }
 0x294   : > { %3306 = vmatpush.msrb.mxu3 %v3123_v11  ;;  %3288 = vmatmul.f32.vlgmr.msrb.gmra.mxu2 %v3020_v22 }
 0x295   : > { %3246 = vmatpush.msrb.mxu0 %v3027_v13  ;;  %3266 = vmatpush.msrb.mxu1 %v3059_v7 }
 0x296   : > { %3307 = vmatpush.msrb.mxu3 %v3121_v47 }
 0x297   : > { %3308 = vmatmul.f32.vlgmr.msrb.gmra.mxu3 %v3021_v32  ;;  %3247 = vmatpush.msrb.mxu0 %v3025_v1 }
 0x298   : > { %3267 = vmatpush.msrb.mxu1 %v3057_v48  ;;  %3248 = vmatmul.f32.vlgmr.msrb.gmra.mxu0 %v3018_v33 }
 0x299   : > { %3268 = vmatmul.f32.vlgmr.msrb.gmra.mxu1 %v3019_v39 }
 0x30c   : > { %v3169_v51 = vpop.f32.mrf.mxu0 }
 0x30d   : > { %v3189_v54 = vpop.f32.mrf.mxu1 }
 0x30e   : > { %v3190_v55 = vadd.f32 %v3189_v54, %v3169_v51  ;;  %v3209_v56 = vpop.f32.mrf.mxu2 }
 0x310   : > { %v3210_v57 = vadd.f32 %v3209_v56, %v3190_v55  ;;  %v3229_v58 = vpop.f32.mrf.mxu3 }
 0x312   : > { %v3230_v59 = vadd.f32 %v3229_v58, %v3210_v57 }
 0x314   : > { %v3312_v50 = vadd.f32 %v3230_v59, %v3022_v46 }
 0x315   : > { %v3249_v38 = vpop.f32.mrf.mxu0 }
 0x316   : > { %3314 = vst [vmem:[#allocation3] sm:$0xff] %v3312_v50  ;;  %v3269_v28 = vpop.f32.mrf.mxu1 }
 0x317   : > { %v3270_v60 = vadd.f32 %v3269_v28, %v3249_v38  ;;  %v3289_v34 = vpop.f32.mrf.mxu2 }
 0x319   : > { %v3290_v61 = vadd.f32 %v3289_v34, %v3270_v60 }
 0x31a   : > { %v3309_v0 = vpop.f32.mrf.mxu3 }
 0x31b   : > { %v3310_v2 = vadd.f32 %v3309_v0, %v3290_v61 }
 0x31d   : > { %v3313_v3 = vadd.f32 %v3310_v2, %v3023_v63 }
 0x31f   : > { %3315 = vst [vmem:[#allocation3 + $0x8] sm:$0xff] %v3313_v3 }
 0x320 PF: > { %s7021_s27 = sld [smem:[#allocation20_spill]] }
 0x326   : > { %p3316_p0 = scmp.eq.s32.totalorder %s7021_s27, 1 }
 0x328   : > { %p3317_p2 = pnand %p3316_p0, %p3010_p12 }
 0x329   : > { %s7023_s0 = sld [smem:[#allocation32_spill]] (!%p3317_p2) }
 0x32a   : > { %3320 = sbr.rel (%p3317_p2) target bundleno = 1378 (0x562), region = 96  ;;  %s7024_s5 = sld [smem:[#allocation33_spill]] (!%p3317_p2) }
 0x32b   : > { %s7025_s15 = sld [smem:[#allocation34_spill]] (!%p3317_p2) }
 0x32f   : > { %v3340_v4 = vld [vmem:[%s7023_s0 + $0x78] sm:$0xff]  ;;  %v3339_v43 = vld [vmem:[%s7023_s0 + $0x70] sm:$0xff]  ;;  %v3338_v9 = vld [vmem:[%s7023_s0 + $0x68] sm:$0xff]  ;;  %vm3410_vm0 = vcmask 261120   ;;  %vm3434_vm1 = vcmask 15360  }
 0x330   : > { %v3356_v5 = vld [vmem:[%s7023_s0 + $0xf8] sm:$0xff]  ;;  %3361 = vmatpush.msra.mxu0 %v3340_v4  ;;  %v3355_v6 = vld [vmem:[%s7023_s0 + $0xf0] sm:$0xff]  ;;  %v3354_v10 = vld [vmem:[%s7023_s0 + $0xe8] sm:$0xff] }
 0x331   : > { %3381 = vmatpush.msra.mxu1 %v3356_v5  ;;  %v3337_v44 = vld [vmem:[%s7023_s0 + $0x60] sm:$0xff]  ;;  %v3336_v14 = vld [vmem:[%s7023_s0 + $0x58] sm:$0xff]  ;;  %v3335_v23 = vld [vmem:[%s7023_s0 + $0x50] sm:$0xff] }
 0x332   : > { %3362 = vmatpush.msra.mxu0 %v3339_v43  ;;  %v3353_v12 = vld [vmem:[%s7023_s0 + $0xe0] sm:$0xff]  ;;  %v3352_v15 = vld [vmem:[%s7023_s0 + $0xd8] sm:$0xff]  ;;  %v3351_v16 = vld [vmem:[%s7023_s0 + $0xd0] sm:$0xff] }
 0x333   : > { %3382 = vmatpush.msra.mxu1 %v3355_v6  ;;  %v3334_v17 = vld [vmem:[%s7023_s0 + $0x48] sm:$0xff]  ;;  %v3333_v53 = vld [vmem:[%s7023_s0 + $0x40] sm:$0xff]  ;;  %v3332_v20 = vld [vmem:[%s7023_s0 + $0x38] sm:$0xff] }
 0x334   : > { %3363 = vmatpush.msra.mxu0 %v3338_v9  ;;  %v3350_v18 = vld [vmem:[%s7023_s0 + $0xc8] sm:$0xff]  ;;  %v3349_v19 = vld [vmem:[%s7023_s0 + $0xc0] sm:$0xff]  ;;  %v3348_v21 = vld [vmem:[%s7023_s0 + $0xb8] sm:$0xff] }
 0x335   : > { %3383 = vmatpush.msra.mxu1 %v3354_v10  ;;  %v3331_v62 = vld [vmem:[%s7023_s0 + $0x30] sm:$0xff]  ;;  %v3330_v24 = vld [vmem:[%s7023_s0 + $0x28] sm:$0xff]  ;;  %v3329_v49 = vld [vmem:[%s7023_s0 + $0x20] sm:$0xff] }
 0x336   : > { %3364 = vmatpush.msra.mxu0 %v3337_v44  ;;  %v3347_v22 = vld [vmem:[%s7023_s0 + $0xb0] sm:$0xff]  ;;  %v3346_v25 = vld [vmem:[%s7023_s0 + $0xa8] sm:$0xff]  ;;  %v3345_v31 = vld [vmem:[%s7023_s0 + $0xa0] sm:$0xff] }
 0x337   : > { %3384 = vmatpush.msra.mxu1 %v3353_v12  ;;  %v3328_v8 = vld [vmem:[%s7023_s0 + $0x18] sm:$0xff]  ;;  %v3327_v26 = vld [vmem:[%s7023_s0 + $0x10] sm:$0xff]  ;;  %v3321_v52 = vld [vmem:[#allocation3] sm:$0xff] }
 0x338   : > { %3365 = vmatpush.msra.mxu0 %v3336_v14  ;;  %v3344_v32 = vld [vmem:[%s7023_s0 + $0x98] sm:$0xff]  ;;  %v3343_v35 = vld [vmem:[%s7023_s0 + $0x90] sm:$0xff]  ;;  %v3322_v36 = vld [vmem:[#allocation3 + $0x8] sm:$0xff]  ;;  %v3323_v27 = vmax.f32 %v3321_v52, 0.0 }
 0x339   : > { %3385 = vmatpush.msra.mxu1 %v3352_v15  ;;  %v3326_v33 = vld [vmem:[%s7023_s0 + $0x8] sm:$0xff]  ;;  %v3325_v39 = vld [vmem:[%s7023_s0] sm:$0xff]  ;;  %v3324_v40 = vmax.f32 %v3322_v36, 0.0  ;;  %v3405_v41 = vld [vmem:[%s7024_s5 + $0x18] sm:$0xff] }
 0x33a   : > { %3366 = vmatpush.msra.mxu0 %v3335_v23  ;;  %v3342_v37 = vld [vmem:[%s7023_s0 + $0x88] sm:$0xff]  ;;  %v3341_v29 = vld [vmem:[%s7023_s0 + $0x80] sm:$0xff]  ;;  %3426 = vmatpush.msra.mxu2 %v3405_v41  ;;  %v3404_v42 = vld [vmem:[%s7024_s5 + $0x10] sm:$0xff] }
 0x33b   : > { %3386 = vmatpush.msra.mxu1 %v3351_v16  ;;  %v3403_v30 = vld [vmem:[%s7024_s5 + $0x8] sm:$0xff]  ;;  %v3402_v45 = vld [vmem:[%s7024_s5] sm:$0xff]  ;;  %v5360_v11 = vld [vmem:[#allocation11] ss:$0 sm:$0xff] }
 0x33c   : > { %3367 = vmatpush.msra.mxu0 %v3334_v17  ;;  %3427 = vmatpush.msra.mxu2 %v3404_v42  ;;  %v5361_v51 = vld [vmem:[#allocation12] ss:$0 sm:$0xff] }
 0x33d   : > { %3387 = vmatpush.msra.mxu1 %v3350_v18 }
 0x33e   : > { %3368 = vmatpush.msra.mxu0 %v3333_v53  ;;  %3428 = vmatpush.msra.mxu2 %v3403_v30 }
 0x33f   : > { %3388 = vmatpush.msra.mxu1 %v3349_v19 }
 0x340   : > { %3369 = vmatpush.msra.mxu0 %v3332_v20  ;;  %3429 = vmatpush.msra.mxu2 %v3402_v45 }
 0x341   : > { %3389 = vmatpush.msra.mxu1 %v3348_v21 }
 0x342   : > { %3370 = vmatpush.msra.mxu0 %v3331_v62 }
 0x343   : > { %3390 = vmatpush.msra.mxu1 %v3347_v22 }
 0x344   : > { %3371 = vmatpush.msra.mxu0 %v3330_v24 }
 0x345   : > { %3391 = vmatpush.msra.mxu1 %v3346_v25 }
 0x346   : > { %3372 = vmatpush.msra.mxu0 %v3329_v49 }
 0x347   : > { %3392 = vmatpush.msra.mxu1 %v3345_v31 }
 0x348   : > { %3373 = vmatpush.msra.mxu0 %v3328_v8 }
 0x349   : > { %3393 = vmatpush.msra.mxu1 %v3344_v32 }
 0x34a   : > { %3374 = vmatpush.msra.mxu0 %v3327_v26 }
 0x34b   : > { %3394 = vmatpush.msra.mxu1 %v3343_v35 }
 0x34c   : > { %3375 = vmatpush.msra.mxu0 %v3326_v33 }
 0x34d   : > { %3395 = vmatpush.msra.mxu1 %v3342_v37 }
 0x34e   : > { %3376 = vmatpush.msra.mxu0 %v3325_v39 }
 0x34f   : > { %3396 = vmatpush.msra.mxu1 %v3341_v29  ;;  %3377 = vmatmul.f32.vlgmr.msra.gmra.mxu0 %v3323_v27 }
 0x350   : > { %3397 = vmatmul.f32.vlgmr.msra.gmra.mxu1 %v3324_v40 }
 0x3cc   : > { %v3378_v13 = vpop.f32.mrf.mxu0 }
 0x3cd   : > { %v3398_v7 = vpop.f32.mrf.mxu1  ;;  %v3379_v47 = vadd.f32 %v5360_v11, %v3378_v13 }
 0x3cf   : > { %v3399_v1 = vadd.f32 %v3398_v7, %v3379_v47 }
 0x3d1   : > { %v3401_v48 = vmax.f32 %v3399_v1, 0.0 }
 0x3d3   : > { %4892 = vmatmul.msk.f32.vlgmr.msra.gmra.mxu2 %vm3410_vm0, %v3401_v48 }
 0x456   : > { %v3431_v54 = vpop.f32.mrf.mxu2 }
 0x457   : > { %v3432_v55 = vadd.f32 %v5361_v51, %v3431_v54 }
 0x459   : > { %v3435_v56 = vsel %vm3434_vm1, %v3432_v55, -inf }
 0x45a   : > { %3436 = vmax.xlane.f32.xlu0 %v3435_v56 }
 0x4cd   : > { %v3437_v57 = vpop.xlane.xlu0 %3436 }
 0x4ce   : > { %v3438_v58 = vsub.f32 %v3432_v55, %v3437_v57 }
 0x4d0   : > { %v3439_v46 = vmul.f32 1.442695, %v3438_v58 }
 0x4d2   : > { %5362 = vpow2.f32 %v3439_v46 }
 0x4d8   : > { %v5363_v59 = vpop.eup %5362 }
 0x4d9   : > { %v3441_v50 = vsel %vm3434_vm1, %v5363_v59, 0.0 }
 0x4da   : > { %3442 = vadd.xlane.f32.xlu0 %v3441_v50 }
 0x54d   : > { %v3443_v38 = vpop.xlane.xlu0 %3442 }
 0x54e   : > { %5364 = vrcp.f32 %v3443_v38  ;;  %v3455_v61 = vand.u32 2147483648, %v3443_v38  ;;  %v3453_v0 = vand.u32 2147483647, %v3443_v38  ;;  %vm3449_vm3 = vweird.f32 %v3443_v38 }
 0x550   : > { %v3456_v3 = vor.u32 1.1754944e-38, %v3455_v61  ;;  %vm3454_vm5 = vcmp.eq.f32.partialorder %v3453_v0, 8.507059e+37 }
 0x554   : > { %v5365_v28 = vpop.eup %5364 }
 0x555   : > { %v3445_v60 = vmul.f32 %v5365_v28, %v3443_v38  ;;  %vm3450_vm2 = vweird.f32 %v5365_v28 }
 0x556   : > { %vm3451_vm4 = vmor %vm3449_vm3, %vm3450_vm2 }
 0x557   : > { %v3446_v34 = vsub.f32 1.0, %v3445_v60 }
 0x559   : > { %v3447_v63 = vmul.f32 %v5365_v28, %v3446_v34 }
 0x55b   : > { %v3448_v2 = vadd.f32 %v5365_v28, %v3447_v63 }
 0x55d   : > { %v3452_v4 = vsel %vm3451_vm4, %v5365_v28, %v3448_v2 }
 0x55e   : > { %v3457_v43 = vsel %vm3454_vm5, %v3456_v3, %v3452_v4 }
 0x55f   : > { %v3458_v5 = vmul.f32 %v5363_v59, %v3457_v43 }
 0x561   : > { %3459 = vst.msk [vmem:[%s7025_s15] sm:$0xff] %vm3434_vm1, %v3458_v5 }
 0x562 PF: > { %s27_s19 = sadd.s32 1, %s5648_s19   ;;  %s7026_s30 = sld [smem:[#allocation18_spill]] }
 0x563   : > { %p24_p3 = scmp.ge.s32.totalorder %s27_s19, 14   ;;  %s7027_s25 = sld [smem:[#allocation27_spill]] }
 0x564   : > { %s7028_s22 = sld [smem:[#allocation28_spill]]  ;;  %s7032_s10 = smov %s5616_s11 }
 0x565   : > { %s7029_s15 = sld [smem:[#allocation21_spill]]  ;;  %s7034_s12 = smov %s5624_s13 }
 0x566   : > { %s7030_s17 = sld [smem:[#allocation24_spill]]  ;;  %s7035_s13 = smov %s5628_s14 }
 0x567   : > { %s7031_s29 = sld [smem:[#allocation25_spill]]  ;;  %s7037_s16 = smov %s5644_s18 }
 0x569   : > { %s7033_s11 = smov %s7027_s25  ;;  %26 = sbr.rel (!%p24_p3) target bundleno = 18 (0x12), region = 145 }
 0x56a   : > { %s7036_s14 = smov %s7028_s22 }
 0x56d   : > { %s7038_s18 = smov %s7031_s29 }
 0x56e   :  { %3471 = vsyncpa [#allocation5], 1 }
 0x56f   :  { %3473 = vsyncpa [#allocation5 + $0x1], 1 }
 0x570   :  { %3474 = vsyncpa [#allocation7], 1 }
 0x571   :  { %3476 = vsyncpa [#allocation7 + $0x1], 1 }
 0x572   :  { %3477 = vsyncpa [#allocation10], 1 }
 0x573   :  { %3478 = vsyncpa [#allocation13], 1 }

</bundles_post_ra>
